<compile_context>
chip_gen: v6e
topology: v6e:2x2x1
jax: 0.10.0
libtpu: 0.0.40
codegen_flags: <defaults>
</compile_context>

<pallas_src>
import math
import numpy as np

import jax
import jax.numpy as jnp
from jax.experimental import pallas as pl
from jax.experimental.pallas import tpu as pltpu

# ----------------------------- configuration ----------------------------------
DIM = 32
DEPTH = 2
DIM_HEAD = 16
HEADS = 4
FF_MULT = 4
INNER = FF_MULT * DIM
COSINE_SIM_SCALE = 16.0          # Attention.scale (cosine_sim=True)
NUM_BUCKETS = 32                 # RelPosBias
MAX_DISTANCE = 128
ROT_DIM = min(32, DIM_HEAD)      # RotaryEmbedding(dim=min(32, dim_head))
TEXT_DIM = 384
TEXT_MID = 256
LN_EPS = 1e-5                    # fp32 path
L2_EPS = 1e-12                   # F.normalize default eps

HD = HEADS * DIM_HEAD            # 64
PROJ_COLS = 2 * HD + 3 * DIM_HEAD  # [Wq | Wq@Rbd | Wk | Wk@R | Wv] = 176


# ----------------------------- in-kernel numeric helpers ----------------------
def _ln_gain(x, g):
    # custom LayerNorm: (x - mean) * rsqrt(var + eps) * g   (biased var)
    mean = jnp.mean(x, axis=-1, keepdims=True)
    var = jnp.mean((x - mean) ** 2, axis=-1, keepdims=True)
    return (x - mean) * jax.lax.rsqrt(var + LN_EPS) * g


def _ln_affine(x, g, b):
    # standard nn.LayerNorm with weight & bias
    mean = jnp.mean(x, axis=-1, keepdims=True)
    var = jnp.mean((x - mean) ** 2, axis=-1, keepdims=True)
    return (x - mean) * jax.lax.rsqrt(var + LN_EPS) * g + b


# ----------------------------- fused Pallas kernel ----------------------------
def _fused_kernel(text_ref, ex_ref, x_ref, mask_ref,
                  s_text_ref, s_ex_ref, s_x_ref,
                  bias_ref,
                  cosq_ref, sinq_ref, cosk_ref, sink_ref,
                  ones_bd_ref, rowrep_ref, colrep_ref, maskv_ref, nullmask_ref,
                  mask_emb_ref,
                  tf_ln1_g, tf_ln1_b, tf_w1, tf_b1,
                  tf_ln2_g, tf_ln2_b, tf_w2, tf_b2,
                  tf_ln3_g, tf_ln3_b,
                  w_all_ref, g_attn_ref, nk_row_ref, nv_row_ref,
                  wo_ref, g_out_ref, g_ff_ref, wff1_ref, wff2_ref,
                  final_g_ref, w_proj_ref,
                  o_ref):
    dh = DIM_HEAD
    sqrt_scale = math.sqrt(COSINE_SIM_SCALE)

    # ------------------ text feature mapping ---------------------------------
    t = text_ref[0]                                               # (n_text, 384)
    h = _ln_affine(t, tf_ln1_g[...], tf_ln1_b[...])
    h = jnp.dot(h, tf_w1[...], preferred_element_type=jnp.float32) + tf_b1[...]
    h = _ln_affine(h, tf_ln2_g[...], tf_ln2_b[...])
    h = jnp.dot(h, tf_w2[...], preferred_element_type=jnp.float32) + tf_b2[...]
    text_mapped = _ln_affine(h, tf_ln3_g[...], tf_ln3_b[...])     # (n_text, dim)

    # ------------------ mask tokens + assemble [text | exemplar | x] ---------
    m = mask_ref[0]                                               # (n_x, 1)
    x_masked = x_ref[0] * (1.0 - m) + mask_emb_ref[...] * m       # (n_x, dim)
    seq = (jnp.dot(s_text_ref[...], text_mapped, preferred_element_type=jnp.float32)
           + jnp.dot(s_ex_ref[...], ex_ref[0], preferred_element_type=jnp.float32)
           + jnp.dot(s_x_ref[...], x_masked, preferred_element_type=jnp.float32))

    cosq = cosq_ref[...]     # (n, H*dh)
    sinq = sinq_ref[...]
    cosk = cosk_ref[...]     # (n, dh)
    sink = sink_ref[...]
    ones_bd = ones_bd_ref[...]     # (H*dh, H*dh) block-diag ones (per-head reduce)
    rowrep = rowrep_ref[...]       # (H*(n+1), n)  stacks keys, zero null row/block
    colrep = colrep_ref[...]       # (dh, H*dh)    lane-tiles a dh-wide row
    maskv = maskv_ref[...]         # (H*(n+1), H*dh) block-diag ones
    nullmask = nullmask_ref[...]   # (H*(n+1), H*dh) ones at each block's null row
    bias = bias_ref[...]           # (n, H*(n+1)) rel-pos bias incl. null column

    # ------------------ transformer layers (static unroll over DEPTH) --------
    for l in range(DEPTH):
        xn = _ln_gain(seq, g_attn_ref[l])
        # fused projection: [Q | Q@rot_half | K | K@rot_half | V] in one matmul
        proj = jnp.dot(xn, w_all_ref[l], preferred_element_type=jnp.float32)
        q = proj[:, :HD]
        qr = proj[:, HD:2 * HD]
        k = proj[:, 2 * HD:2 * HD + dh]
        kr = proj[:, 2 * HD + dh:2 * HD + 2 * dh]
        v = proj[:, 2 * HD + 2 * dh:]

        # rotary (rotate_half folded into the weights above)
        q = q * cosq + qr * sinq                                  # (n, H*dh)
        k = k * cosk + kr * sink                                  # (n, dh)

        # per-head L2-normalize q (block-ones matmul -> per-head sum of squares)
        qss = jnp.dot(q * q, ones_bd, preferred_element_type=jnp.float32)
        q = q * (sqrt_scale / jnp.maximum(jnp.sqrt(qss), L2_EPS))
        kss = jnp.sum(k * k, axis=-1, keepdims=True)
        k = k * (sqrt_scale / jnp.maximum(jnp.sqrt(kss), L2_EPS))

        # block-diag spread of the (head-shared) K/V to every head's column
        # block, null key/value in row 0 of each block.  Matmuls + masks only.
        ks = jnp.dot(rowrep, k, preferred_element_type=jnp.float32)   # (H*n1, dh)
        vs = jnp.dot(rowrep, v, preferred_element_type=jnp.float32)
        k_big = (jnp.dot(ks, colrep, preferred_element_type=jnp.float32) * maskv
                 + nullmask * nk_row_ref[l])                          # (H*n1, HD)
        v_big = (jnp.dot(vs, colrep, preferred_element_type=jnp.float32) * maskv
                 + nullmask * nv_row_ref[l])

        # all-head scores in one MXU pass; per-head softmax over each key block
        # with a single global row max (a valid shift — scores are bounded by
        # the cosine-sim scale, so no underflow of the per-head denominators).
        s = jax.lax.dot_general(q, k_big, (((1,), (1,)), ((), ())),
                                preferred_element_type=jnp.float32) + bias
        mx = jnp.max(s, axis=-1, keepdims=True)
        e = jnp.exp(s - mx)                                           # (n, H*n1)
        denom_hd = jnp.dot(e, maskv, preferred_element_type=jnp.float32)  # (n, HD)
        out_h = (jnp.dot(e, v_big, preferred_element_type=jnp.float32)
                 * pl.reciprocal(denom_hd, approx=True))              # (n, HD)
        attn = jnp.dot(out_h, wo_ref[l], preferred_element_type=jnp.float32)

        seq = seq + _ln_gain(attn, g_out_ref[l])                      # residual

        # ---------------- feed-forward (SwiGLU) -------------------------------
        fn = _ln_gain(seq, g_ff_ref[l])
        hidden = jnp.dot(fn, wff1_ref[l], preferred_element_type=jnp.float32)
        a = hidden[:, :INNER]
        gate = hidden[:, INNER:]
        seq = seq + jnp.dot(a * (gate * jax.nn.sigmoid(gate)), wff2_ref[l],
                            preferred_element_type=jnp.float32)

    # ------------------ final stable-LayerNorm + project_out ------------------
    y = seq / jnp.max(seq, axis=-1, keepdims=True)                # stable=True
    y = _ln_gain(y, final_g_ref[...])
    o_ref[0] = jnp.dot(y, w_proj_ref[...], preferred_element_type=jnp.float32)


# ----------------------------- pallas_call wrapper ----------------------------
def _bspec_batched(shape):
    nd = len(shape)
    return pl.BlockSpec((1,) + tuple(shape[1:]),
                        lambda i, _nd=nd: (i,) + (0,) * (_nd - 1))


def _bspec_full(shape):
    nd = len(shape)
    return pl.BlockSpec(tuple(shape), lambda i, _nd=nd: (0,) * _nd)


def _fused_forward(text, exemplar, x, mask_f, consts, pk):
    b = x.shape[0]
    n = consts["n"]
    args = [
        text, exemplar, x, mask_f,
        consts["s_text"], consts["s_ex"], consts["s_x"],
        consts["bias_cols"],
        consts["cosq"], consts["sinq"], consts["cosk"], consts["sink"],
        consts["ones_bd"], consts["rowrep"], consts["colrep"],
        consts["maskv"], consts["nullmask"],
        pk["mask_emb"],
        pk["tf_ln1_g"], pk["tf_ln1_b"], pk["tf_w1"], pk["tf_b1"],
        pk["tf_ln2_g"], pk["tf_ln2_b"], pk["tf_w2"], pk["tf_b2"],
        pk["tf_ln3_g"], pk["tf_ln3_b"],
        pk["w_all_s"], pk["g_attn_s"], pk["nk_row_s"], pk["nv_row_s"],
        pk["wo_s"], pk["g_out_s"], pk["g_ff_s"], pk["wff1_s"], pk["wff2_s"],
        pk["final_g"], pk["w_proj"],
    ]
    in_specs = ([_bspec_batched(a.shape) for a in args[:4]]
                + [_bspec_full(a.shape) for a in args[4:]])
    return pl.pallas_call(
        _fused_kernel,
        out_shape=jax.ShapeDtypeStruct((b, n, DIM), jnp.float32),
        grid=(b,),
        in_specs=in_specs,
        out_specs=_bspec_batched((b, n, DIM)),
        compiler_params=pltpu.CompilerParams(dimension_semantics=("parallel",)),
    )(*args)


# ----------------------------- plain-JAX setup helpers ------------------------
def rel_pos_bias(table, i, j):
    # RelPosBias.forward(i, j) -> (heads, i, j)
    q_pos = jnp.arange(i, dtype=jnp.int32)
    k_pos = jnp.arange(j, dtype=jnp.int32)
    rel = k_pos[None, :] - q_pos[:, None]
    n = jnp.maximum(-rel, 0)
    max_exact = NUM_BUCKETS // 2
    is_small = n < max_exact
    nf = jnp.maximum(n.astype(jnp.float32), 1.0)    # avoid log(0); masked by is_small
    val_if_large = max_exact + (
        jnp.log(nf / max_exact) / math.log(MAX_DISTANCE / max_exact)
        * (NUM_BUCKETS - max_exact)).astype(jnp.int32)
    val_if_large = jnp.minimum(val_if_large, NUM_BUCKETS - 1)
    bucket = jnp.where(is_small, n, val_if_large)
    values = table[bucket]                          # (i, j, heads)
    return jnp.transpose(values, (2, 0, 1)).astype(jnp.float32)


def rotary_cos_sin(n, dim_head, rot_dim, theta=10000.0):
    inv_freq = 1.0 / (theta ** (jnp.arange(0, rot_dim, 2, dtype=jnp.float32) / rot_dim))
    t = jnp.arange(n, dtype=jnp.float32)
    ang = t[:, None] * inv_freq[None, :]            # (n, rot_dim//2)
    ang = jnp.repeat(ang, 2, axis=-1)               # (n, rot_dim), interleaved
    cos = jnp.cos(ang)
    sin = jnp.sin(ang)
    pad = dim_head - rot_dim
    cos = jnp.pad(cos, ((0, 0), (0, pad)), constant_values=1.0)
    sin = jnp.pad(sin, ((0, 0), (0, pad)), constant_values=0.0)
    return cos.astype(jnp.float32), sin.astype(jnp.float32)


def _rotate_half_matrix_np(dim_head, rot_dim):
    # rotate_half(x) == x @ R   (interleaved pairs: out[2i]=-x[2i+1], out[2i+1]=x[2i])
    r = np.zeros((dim_head, dim_head), dtype=np.float32)
    for i in range(rot_dim // 2):
        r[2 * i + 1, 2 * i] = -1.0
        r[2 * i, 2 * i + 1] = 1.0
    return r


def build_constants(n_text, n_ex, n_x, rel_pos_table):
    n = n_text + n_ex + n_x
    n1 = n + 1
    bias = rel_pos_bias(rel_pos_table, n, n1)                   # (heads, n, n+1)
    # one lane-dense slab: column h*(n+1)+j holds bias[h, :, j] (j=0 is null key)
    bias_cols = jnp.transpose(bias, (1, 0, 2)).reshape(n, HEADS * n1)
    cos, sin = rotary_cos_sin(n, DIM_HEAD, ROT_DIM)

    # selection matrices: seq = S_text @ text + S_ex @ exemplar + S_x @ x_masked
    s_text = np.zeros((n, n_text), np.float32)
    s_text[:n_text] = np.eye(n_text, dtype=np.float32)
    s_ex = np.zeros((n, n_ex), np.float32)
    s_ex[n_text:n_text + n_ex] = np.eye(n_ex, dtype=np.float32)
    s_x = np.zeros((n, n_x), np.float32)
    s_x[n_text + n_ex:] = np.eye(n_x, dtype=np.float32)

    eye_h = np.eye(HEADS, dtype=np.float32)
    ones_bd = np.kron(eye_h, np.ones((DIM_HEAD, DIM_HEAD), np.float32))
    # block-diag K/V expansion helpers (attend over [null | keys] per head)
    prepend = np.zeros((n1, n), np.float32)
    prepend[1:, :] = np.eye(n, dtype=np.float32)
    rowrep = np.kron(np.ones((HEADS, 1), np.float32), prepend)          # (H*n1, n)
    colrep = np.kron(np.ones((1, HEADS), np.float32),
                     np.eye(DIM_HEAD, dtype=np.float32))                # (dh, HD)
    maskv = np.kron(eye_h, np.ones((n1, DIM_HEAD), np.float32))         # (H*n1, HD)
    null_row = np.zeros((n1, DIM_HEAD), np.float32)
    null_row[0, :] = 1.0
    nullmask = np.kron(eye_h, null_row)                                 # (H*n1, HD)

    return dict(
        n=n,
        bias_cols=bias_cols,
        cosq=jnp.tile(cos, (1, HEADS)), sinq=jnp.tile(sin, (1, HEADS)),
        cosk=cos, sink=sin,
        s_text=jnp.asarray(s_text), s_ex=jnp.asarray(s_ex), s_x=jnp.asarray(s_x),
        ones_bd=jnp.asarray(ones_bd), rowrep=jnp.asarray(rowrep),
        colrep=jnp.asarray(colrep), maskv=jnp.asarray(maskv),
        nullmask=jnp.asarray(nullmask),
    )


# ----------------------------- parameters -------------------------------------
def init_params(key):
    keys = jax.random.split(key, 128)
    it = iter(keys)

    def nrm(shape, scl=0.05):
        return (scl * jax.random.normal(next(it), shape)).astype(jnp.float32)

    p = {}
    p["mask_emb"] = nrm((DIM,), 0.5)                      # nn.Parameter (zeros in ref)
    p["rel_pos_table"] = nrm((NUM_BUCKETS, HEADS), 0.02)  # nn.Embedding(32, heads)
    # text_feature_mapping: LN(384)->Linear(384,256)->LN(256)->Linear(256,dim)->LN(dim)
    p["tf_ln1_g"] = jnp.ones((1, TEXT_DIM), jnp.float32)
    p["tf_ln1_b"] = jnp.zeros((1, TEXT_DIM), jnp.float32)
    p["tf_w1"] = nrm((TEXT_DIM, TEXT_MID))
    p["tf_b1"] = nrm((1, TEXT_MID))
    p["tf_ln2_g"] = jnp.ones((1, TEXT_MID), jnp.float32)
    p["tf_ln2_b"] = jnp.zeros((1, TEXT_MID), jnp.float32)
    p["tf_w2"] = nrm((TEXT_MID, DIM))
    p["tf_b2"] = nrm((1, DIM))
    p["tf_ln3_g"] = jnp.ones((1, DIM), jnp.float32)
    p["tf_ln3_b"] = jnp.zeros((1, DIM), jnp.float32)

    layers = []
    for _ in range(DEPTH):
        layers.append(dict(
            g_attn=jnp.ones((1, DIM), jnp.float32),
            wq=nrm((DIM, HEADS * DIM_HEAD)),
            wkv=nrm((DIM, 2 * DIM_HEAD)),
            null_k=nrm((1, DIM_HEAD), 1.0),
            null_v=nrm((1, DIM_HEAD), 1.0),
            wo=nrm((HEADS * DIM_HEAD, DIM)),
            g_out=jnp.ones((1, DIM), jnp.float32),
            g_ff=jnp.ones((1, DIM), jnp.float32),
            wff1=nrm((DIM, 2 * INNER)),
            wff2=nrm((INNER, DIM)),
        ))
    p["layers"] = layers
    p["final_g"] = jnp.ones((1, DIM), jnp.float32)
    p["w_proj"] = nrm((DIM, DIM))
    return p


def pack_params(p):
    """Fold rotate_half into the projection weights, pre-normalize & lane-tile
    the null key/value, and stack per-layer weights along a leading DEPTH axis."""
    sqrt_scale = math.sqrt(COSINE_SIM_SCALE)
    r_np = _rotate_half_matrix_np(DIM_HEAD, ROT_DIM)
    R = jnp.asarray(r_np)                                           # (dh, dh)
    Rbd = jnp.asarray(np.kron(np.eye(HEADS, dtype=np.float32), r_np))  # (H*dh, H*dh)

    packed = {
        "rel_pos_table": p["rel_pos_table"],
        "mask_emb": p["mask_emb"].reshape(1, DIM),
        "final_g": p["final_g"],
        "w_proj": p["w_proj"],
    }
    for k in ["tf_ln1_g", "tf_ln1_b", "tf_w1", "tf_b1", "tf_ln2_g", "tf_ln2_b",
              "tf_w2", "tf_b2", "tf_ln3_g", "tf_ln3_b"]:
        packed[k] = p[k]

    (w_all, g_attn, nk_rows, nv_rows, wos,
     g_out, g_ff, wff1, wff2) = ([] for _ in range(9))
    for lp in p["layers"]:
        wq = lp["wq"]
        wk = lp["wkv"][:, :DIM_HEAD]
        wv = lp["wkv"][:, DIM_HEAD:]
        w_all.append(jnp.concatenate([wq, wq @ Rbd, wk, wk @ R, wv], axis=1))
        g_attn.append(lp["g_attn"])
        nk = lp["null_k"]
        nk_n = (nk / jnp.maximum(jnp.linalg.norm(nk, axis=-1, keepdims=True),
                                 L2_EPS)) * sqrt_scale
        nk_rows.append(jnp.tile(nk_n, (1, HEADS)))      # (1, H*dh)
        nv_rows.append(jnp.tile(lp["null_v"], (1, HEADS)))
        wos.append(lp["wo"])
        g_out.append(lp["g_out"])
        g_ff.append(lp["g_ff"])
        wff1.append(lp["wff1"])
        wff2.append(lp["wff2"])

    packed["w_all_s"] = jnp.stack(w_all)       # (DEPTH, dim, 176)
    packed["g_attn_s"] = jnp.stack(g_attn)     # (DEPTH, 1, dim)
    packed["nk_row_s"] = jnp.stack(nk_rows)    # (DEPTH, 1, H*dh)
    packed["nv_row_s"] = jnp.stack(nv_rows)    # (DEPTH, 1, H*dh)
    packed["wo_s"] = jnp.stack(wos)            # (DEPTH, H*dh, dim)
    packed["g_out_s"] = jnp.stack(g_out)
    packed["g_ff_s"] = jnp.stack(g_ff)
    packed["wff1_s"] = jnp.stack(wff1)         # (DEPTH, dim, 2*inner)
    packed["wff2_s"] = jnp.stack(wff2)         # (DEPTH, inner, dim)
    return packed


# ----------------------------- full forward -----------------------------------
def non_causal_transformer_language(packed, x, exemplar_frame_embeddings,
                                    text_embedding, masks):
    n_text = text_embedding.shape[1]
    n_ex = exemplar_frame_embeddings.shape[1]
    n_x = x.shape[1]
    consts = build_constants(n_text, n_ex, n_x, packed["rel_pos_table"])
    mask_f = masks.astype(jnp.float32)[:, :, None]        # (b, n_x, 1)
    return _fused_forward(text_embedding, exemplar_frame_embeddings, x,
                          mask_f, consts, packed)


# ----------------------------- demo --------------------------------------------
if __name__ == "__main__":
    key = jax.random.PRNGKey(0)
    kp, kx, ke, kt, km = jax.random.split(key, 5)

    B, N_TEXT, N_EX, N_X = 2, 3, 4, 5
    params = pack_params(init_params(kp))
    x = jax.random.normal(kx, (B, N_X, DIM), dtype=jnp.float32)
    exemplar = jax.random.normal(ke, (B, N_EX, DIM), dtype=jnp.float32)
    text = jax.random.normal(kt, (B, N_TEXT, TEXT_DIM), dtype=jnp.float32)
    masks = jax.random.bernoulli(km, 0.3, (B, N_X))

    fwd = jax.jit(non_causal_transformer_language)
    out = fwd(params, x, exemplar, text, masks)
    out = jax.block_until_ready(out)
    assert out.shape == (B, N_TEXT + N_EX + N_X, DIM)
    assert bool(jnp.all(jnp.isfinite(out)))
    print("KERNEL_OK")
</pallas_src>

<mosaic_0001>
module attributes {stable_mosaic.version = 11 : i64} {
  func.func @_fused_kernel(%arg0: i32, %arg1: memref<1x3x384xf32, #tpu.memory_space<vmem>>, %arg2: memref<1x4x32xf32, #tpu.memory_space<vmem>>, %arg3: memref<1x5x32xf32, #tpu.memory_space<vmem>>, %arg4: memref<1x5x1xf32, #tpu.memory_space<vmem>>, %arg5: memref<12x3xf32, #tpu.memory_space<vmem>>, %arg6: memref<12x4xf32, #tpu.memory_space<vmem>>, %arg7: memref<12x5xf32, #tpu.memory_space<vmem>>, %arg8: memref<12x52xf32, #tpu.memory_space<vmem>>, %arg9: memref<12x64xf32, #tpu.memory_space<vmem>>, %arg10: memref<12x64xf32, #tpu.memory_space<vmem>>, %arg11: memref<12x16xf32, #tpu.memory_space<vmem>>, %arg12: memref<12x16xf32, #tpu.memory_space<vmem>>, %arg13: memref<64x64xf32, #tpu.memory_space<vmem>>, %arg14: memref<52x12xf32, #tpu.memory_space<vmem>>, %arg15: memref<16x64xf32, #tpu.memory_space<vmem>>, %arg16: memref<52x64xf32, #tpu.memory_space<vmem>>, %arg17: memref<52x64xf32, #tpu.memory_space<vmem>>, %arg18: memref<1x32xf32, #tpu.memory_space<vmem>>, %arg19: memref<1x384xf32, #tpu.memory_space<vmem>>, %arg20: memref<1x384xf32, #tpu.memory_space<vmem>>, %arg21: memref<384x256xf32, #tpu.memory_space<vmem>>, %arg22: memref<1x256xf32, #tpu.memory_space<vmem>>, %arg23: memref<1x256xf32, #tpu.memory_space<vmem>>, %arg24: memref<1x256xf32, #tpu.memory_space<vmem>>, %arg25: memref<256x32xf32, #tpu.memory_space<vmem>>, %arg26: memref<1x32xf32, #tpu.memory_space<vmem>>, %arg27: memref<1x32xf32, #tpu.memory_space<vmem>>, %arg28: memref<1x32xf32, #tpu.memory_space<vmem>>, %arg29: memref<2x32x176xf32, #tpu.memory_space<vmem>>, %arg30: memref<2x1x32xf32, #tpu.memory_space<vmem>>, %arg31: memref<2x1x64xf32, #tpu.memory_space<vmem>>, %arg32: memref<2x1x64xf32, #tpu.memory_space<vmem>>, %arg33: memref<2x64x32xf32, #tpu.memory_space<vmem>>, %arg34: memref<2x1x32xf32, #tpu.memory_space<vmem>>, %arg35: memref<2x1x32xf32, #tpu.memory_space<vmem>>, %arg36: memref<2x32x256xf32, #tpu.memory_space<vmem>>, %arg37: memref<2x128x32xf32, #tpu.memory_space<vmem>>, %arg38: memref<1x32xf32, #tpu.memory_space<vmem>>, %arg39: memref<32x32xf32, #tpu.memory_space<vmem>>, %arg40: memref<1x12x32xf32, #tpu.memory_space<vmem>>) attributes {dimension_semantics = [#tpu.dimension_semantics<parallel>], iteration_bounds = array<i64: 2>, scalar_prefetch = 0 : i64, scratch_operands = 0 : i64, tpu.core_type = #tpu.core_type<tc>, window_params = [{transform_indices = @transform_0, window_bounds = array<i64: 1, 3, 384>}, {transform_indices = @transform_1, window_bounds = array<i64: 1, 4, 32>}, {transform_indices = @transform_2, window_bounds = array<i64: 1, 5, 32>}, {transform_indices = @transform_3, window_bounds = array<i64: 1, 5, 1>}, {pipeline_mode = #tpu.pipeline_mode<synchronous>, transform_indices = @transform_4, window_bounds = array<i64: 12, 3>}, {pipeline_mode = #tpu.pipeline_mode<synchronous>, transform_indices = @transform_5, window_bounds = array<i64: 12, 4>}, {pipeline_mode = #tpu.pipeline_mode<synchronous>, transform_indices = @transform_6, window_bounds = array<i64: 12, 5>}, {pipeline_mode = #tpu.pipeline_mode<synchronous>, transform_indices = @transform_7, window_bounds = array<i64: 12, 52>}, {pipeline_mode = #tpu.pipeline_mode<synchronous>, transform_indices = @transform_8, window_bounds = array<i64: 12, 64>}, {pipeline_mode = #tpu.pipeline_mode<synchronous>, transform_indices = @transform_9, window_bounds = array<i64: 12, 64>}, {pipeline_mode = #tpu.pipeline_mode<synchronous>, transform_indices = @transform_10, window_bounds = array<i64: 12, 16>}, {pipeline_mode = #tpu.pipeline_mode<synchronous>, transform_indices = @transform_11, window_bounds = array<i64: 12, 16>}, {pipeline_mode = #tpu.pipeline_mode<synchronous>, transform_indices = @transform_12, window_bounds = array<i64: 64, 64>}, {pipeline_mode = #tpu.pipeline_mode<synchronous>, transform_indices = @transform_13, window_bounds = array<i64: 52, 12>}, {pipeline_mode = #tpu.pipeline_mode<synchronous>, transform_indices = @transform_14, window_bounds = array<i64: 16, 64>}, {pipeline_mode = #tpu.pipeline_mode<synchronous>, transform_indices = @transform_15, window_bounds = array<i64: 52, 64>}, {pipeline_mode = #tpu.pipeline_mode<synchronous>, transform_indices = @transform_16, window_bounds = array<i64: 52, 64>}, {pipeline_mode = #tpu.pipeline_mode<synchronous>, transform_indices = @transform_17, window_bounds = array<i64: 1, 32>}, {pipeline_mode = #tpu.pipeline_mode<synchronous>, transform_indices = @transform_18, window_bounds = array<i64: 1, 384>}, {pipeline_mode = #tpu.pipeline_mode<synchronous>, transform_indices = @transform_19, window_bounds = array<i64: 1, 384>}, {pipeline_mode = #tpu.pipeline_mode<synchronous>, transform_indices = @transform_20, window_bounds = array<i64: 384, 256>}, {pipeline_mode = #tpu.pipeline_mode<synchronous>, transform_indices = @transform_21, window_bounds = array<i64: 1, 256>}, {pipeline_mode = #tpu.pipeline_mode<synchronous>, transform_indices = @transform_22, window_bounds = array<i64: 1, 256>}, {pipeline_mode = #tpu.pipeline_mode<synchronous>, transform_indices = @transform_23, window_bounds = array<i64: 1, 256>}, {pipeline_mode = #tpu.pipeline_mode<synchronous>, transform_indices = @transform_24, window_bounds = array<i64: 256, 32>}, {pipeline_mode = #tpu.pipeline_mode<synchronous>, transform_indices = @transform_25, window_bounds = array<i64: 1, 32>}, {pipeline_mode = #tpu.pipeline_mode<synchronous>, transform_indices = @transform_26, window_bounds = array<i64: 1, 32>}, {pipeline_mode = #tpu.pipeline_mode<synchronous>, transform_indices = @transform_27, window_bounds = array<i64: 1, 32>}, {pipeline_mode = #tpu.pipeline_mode<synchronous>, transform_indices = @transform_28, window_bounds = array<i64: 2, 32, 176>}, {pipeline_mode = #tpu.pipeline_mode<synchronous>, transform_indices = @transform_29, window_bounds = array<i64: 2, 1, 32>}, {pipeline_mode = #tpu.pipeline_mode<synchronous>, transform_indices = @transform_30, window_bounds = array<i64: 2, 1, 64>}, {pipeline_mode = #tpu.pipeline_mode<synchronous>, transform_indices = @transform_31, window_bounds = array<i64: 2, 1, 64>}, {pipeline_mode = #tpu.pipeline_mode<synchronous>, transform_indices = @transform_32, window_bounds = array<i64: 2, 64, 32>}, {pipeline_mode = #tpu.pipeline_mode<synchronous>, transform_indices = @transform_33, window_bounds = array<i64: 2, 1, 32>}, {pipeline_mode = #tpu.pipeline_mode<synchronous>, transform_indices = @transform_34, window_bounds = array<i64: 2, 1, 32>}, {pipeline_mode = #tpu.pipeline_mode<synchronous>, transform_indices = @transform_35, window_bounds = array<i64: 2, 32, 256>}, {pipeline_mode = #tpu.pipeline_mode<synchronous>, transform_indices = @transform_36, window_bounds = array<i64: 2, 128, 32>}, {pipeline_mode = #tpu.pipeline_mode<synchronous>, transform_indices = @transform_37, window_bounds = array<i64: 1, 32>}, {pipeline_mode = #tpu.pipeline_mode<synchronous>, transform_indices = @transform_38, window_bounds = array<i64: 32, 32>}, {transform_indices = @transform_39, window_bounds = array<i64: 1, 12, 32>}]} {
    %c0 = arith.constant 0 : index
    %c0_0 = arith.constant 0 : index
    %c0_1 = arith.constant 0 : index
    %0 = vector.load %arg1[%c0, %c0_0, %c0_1] : memref<1x3x384xf32, #tpu.memory_space<vmem>>, vector<1x3x384xf32>
    %1 = vector.shape_cast %0 : vector<1x3x384xf32> to vector<3x384xf32>
    %c0_2 = arith.constant 0 : index
    %c0_3 = arith.constant 0 : index
    %2 = vector.load %arg19[%c0_2, %c0_3] : memref<1x384xf32, #tpu.memory_space<vmem>>, vector<1x384xf32>
    %c0_4 = arith.constant 0 : index
    %c0_5 = arith.constant 0 : index
    %3 = vector.load %arg20[%c0_4, %c0_5] : memref<1x384xf32, #tpu.memory_space<vmem>>, vector<1x384xf32>
    %cst = arith.constant dense<0.000000e+00> : vector<3xf32>
    %4 = vector.multi_reduction <add>, %1, %cst [1] : vector<3x384xf32> to vector<3xf32>
    %5 = vector.shape_cast %4 : vector<3xf32> to vector<3x1xf32>
    %cst_6 = arith.constant 3.840000e+02 : f32
    %6 = vector.broadcast %cst_6 : f32 to vector<3x1xf32>
    %7 = arith.divf %5, %6 : vector<3x1xf32>
    %8 = vector.broadcast %7 : vector<3x1xf32> to vector<3x384xf32>
    %9 = arith.subf %1, %8 : vector<3x384xf32>
    %10 = arith.mulf %9, %9 : vector<3x384xf32>
    %cst_7 = arith.constant dense<0.000000e+00> : vector<3xf32>
    %11 = vector.multi_reduction <add>, %10, %cst_7 [1] : vector<3x384xf32> to vector<3xf32>
    %12 = vector.shape_cast %11 : vector<3xf32> to vector<3x1xf32>
    %cst_8 = arith.constant 3.840000e+02 : f32
    %13 = vector.broadcast %cst_8 : f32 to vector<3x1xf32>
    %14 = arith.divf %12, %13 : vector<3x1xf32>
    %15 = vector.broadcast %7 : vector<3x1xf32> to vector<3x384xf32>
    %16 = arith.subf %1, %15 : vector<3x384xf32>
    %cst_9 = arith.constant 9.99999974E-6 : f32
    %17 = vector.broadcast %cst_9 : f32 to vector<3x1xf32>
    %18 = arith.addf %14, %17 : vector<3x1xf32>
    %19 = math.rsqrt %18 : vector<3x1xf32>
    %20 = vector.broadcast %19 : vector<3x1xf32> to vector<3x384xf32>
    %21 = arith.mulf %16, %20 : vector<3x384xf32>
    %22 = vector.broadcast %2 : vector<1x384xf32> to vector<3x384xf32>
    %23 = arith.mulf %21, %22 : vector<3x384xf32>
    %24 = vector.broadcast %3 : vector<1x384xf32> to vector<3x384xf32>
    %25 = arith.addf %23, %24 : vector<3x384xf32>
    %c0_10 = arith.constant 0 : index
    %c0_11 = arith.constant 0 : index
    %26 = vector.load %arg21[%c0_10, %c0_11] : memref<384x256xf32, #tpu.memory_space<vmem>>, vector<384x256xf32>
    %cst_12 = arith.constant dense<0.000000e+00> : vector<3x256xf32>
    %27 = tpu.matmul %25, %26, %cst_12 {dimension_numbers = #tpu.dot_dimension_numbers<[1], [0], [0], [1], [0, 0, 1, 1], [], []>} : vector<3x384xf32>, vector<384x256xf32>, vector<3x256xf32> -> vector<3x256xf32>
    %c0_13 = arith.constant 0 : index
    %c0_14 = arith.constant 0 : index
    %28 = vector.load %arg22[%c0_13, %c0_14] : memref<1x256xf32, #tpu.memory_space<vmem>>, vector<1x256xf32>
    %29 = vector.broadcast %28 : vector<1x256xf32> to vector<3x256xf32>
    %30 = arith.addf %27, %29 : vector<3x256xf32>
    %c0_15 = arith.constant 0 : index
    %c0_16 = arith.constant 0 : index
    %31 = vector.load %arg23[%c0_15, %c0_16] : memref<1x256xf32, #tpu.memory_space<vmem>>, vector<1x256xf32>
    %c0_17 = arith.constant 0 : index
    %c0_18 = arith.constant 0 : index
    %32 = vector.load %arg24[%c0_17, %c0_18] : memref<1x256xf32, #tpu.memory_space<vmem>>, vector<1x256xf32>
    %cst_19 = arith.constant dense<0.000000e+00> : vector<3xf32>
    %33 = vector.multi_reduction <add>, %30, %cst_19 [1] : vector<3x256xf32> to vector<3xf32>
    %34 = vector.shape_cast %33 : vector<3xf32> to vector<3x1xf32>
    %cst_20 = arith.constant 2.560000e+02 : f32
    %35 = vector.broadcast %cst_20 : f32 to vector<3x1xf32>
    %36 = arith.divf %34, %35 : vector<3x1xf32>
    %37 = vector.broadcast %36 : vector<3x1xf32> to vector<3x256xf32>
    %38 = arith.subf %30, %37 : vector<3x256xf32>
    %39 = arith.mulf %38, %38 : vector<3x256xf32>
    %cst_21 = arith.constant dense<0.000000e+00> : vector<3xf32>
    %40 = vector.multi_reduction <add>, %39, %cst_21 [1] : vector<3x256xf32> to vector<3xf32>
    %41 = vector.shape_cast %40 : vector<3xf32> to vector<3x1xf32>
    %cst_22 = arith.constant 2.560000e+02 : f32
    %42 = vector.broadcast %cst_22 : f32 to vector<3x1xf32>
    %43 = arith.divf %41, %42 : vector<3x1xf32>
    %44 = vector.broadcast %36 : vector<3x1xf32> to vector<3x256xf32>
    %45 = arith.subf %30, %44 : vector<3x256xf32>
    %cst_23 = arith.constant 9.99999974E-6 : f32
    %46 = vector.broadcast %cst_23 : f32 to vector<3x1xf32>
    %47 = arith.addf %43, %46 : vector<3x1xf32>
    %48 = math.rsqrt %47 : vector<3x1xf32>
    %49 = vector.broadcast %48 : vector<3x1xf32> to vector<3x256xf32>
    %50 = arith.mulf %45, %49 : vector<3x256xf32>
    %51 = vector.broadcast %31 : vector<1x256xf32> to vector<3x256xf32>
    %52 = arith.mulf %50, %51 : vector<3x256xf32>
    %53 = vector.broadcast %32 : vector<1x256xf32> to vector<3x256xf32>
    %54 = arith.addf %52, %53 : vector<3x256xf32>
    %c0_24 = arith.constant 0 : index
    %c0_25 = arith.constant 0 : index
    %55 = vector.load %arg25[%c0_24, %c0_25] : memref<256x32xf32, #tpu.memory_space<vmem>>, vector<256x32xf32>
    %cst_26 = arith.constant dense<0.000000e+00> : vector<3x32xf32>
    %56 = tpu.matmul %54, %55, %cst_26 {dimension_numbers = #tpu.dot_dimension_numbers<[1], [0], [0], [1], [0, 0, 1, 1], [], []>} : vector<3x256xf32>, vector<256x32xf32>, vector<3x32xf32> -> vector<3x32xf32>
    %c0_27 = arith.constant 0 : index
    %c0_28 = arith.constant 0 : index
    %57 = vector.load %arg26[%c0_27, %c0_28] : memref<1x32xf32, #tpu.memory_space<vmem>>, vector<1x32xf32>
    %58 = vector.broadcast %57 : vector<1x32xf32> to vector<3x32xf32>
    %59 = arith.addf %56, %58 : vector<3x32xf32>
    %c0_29 = arith.constant 0 : index
    %c0_30 = arith.constant 0 : index
    %60 = vector.load %arg27[%c0_29, %c0_30] : memref<1x32xf32, #tpu.memory_space<vmem>>, vector<1x32xf32>
    %c0_31 = arith.constant 0 : index
    %c0_32 = arith.constant 0 : index
    %61 = vector.load %arg28[%c0_31, %c0_32] : memref<1x32xf32, #tpu.memory_space<vmem>>, vector<1x32xf32>
    %cst_33 = arith.constant dense<0.000000e+00> : vector<3xf32>
    %62 = vector.multi_reduction <add>, %59, %cst_33 [1] : vector<3x32xf32> to vector<3xf32>
    %63 = vector.shape_cast %62 : vector<3xf32> to vector<3x1xf32>
    %cst_34 = arith.constant 3.200000e+01 : f32
    %64 = vector.broadcast %cst_34 : f32 to vector<3x1xf32>
    %65 = arith.divf %63, %64 : vector<3x1xf32>
    %66 = vector.broadcast %65 : vector<3x1xf32> to vector<3x32xf32>
    %67 = arith.subf %59, %66 : vector<3x32xf32>
    %68 = arith.mulf %67, %67 : vector<3x32xf32>
    %cst_35 = arith.constant dense<0.000000e+00> : vector<3xf32>
    %69 = vector.multi_reduction <add>, %68, %cst_35 [1] : vector<3x32xf32> to vector<3xf32>
    %70 = vector.shape_cast %69 : vector<3xf32> to vector<3x1xf32>
    %cst_36 = arith.constant 3.200000e+01 : f32
    %71 = vector.broadcast %cst_36 : f32 to vector<3x1xf32>
    %72 = arith.divf %70, %71 : vector<3x1xf32>
    %73 = vector.broadcast %65 : vector<3x1xf32> to vector<3x32xf32>
    %74 = arith.subf %59, %73 : vector<3x32xf32>
    %cst_37 = arith.constant 9.99999974E-6 : f32
    %75 = vector.broadcast %cst_37 : f32 to vector<3x1xf32>
    %76 = arith.addf %72, %75 : vector<3x1xf32>
    %77 = math.rsqrt %76 : vector<3x1xf32>
    %78 = vector.broadcast %77 : vector<3x1xf32> to vector<3x32xf32>
    %79 = arith.mulf %74, %78 : vector<3x32xf32>
    %80 = vector.broadcast %60 : vector<1x32xf32> to vector<3x32xf32>
    %81 = arith.mulf %79, %80 : vector<3x32xf32>
    %82 = vector.broadcast %61 : vector<1x32xf32> to vector<3x32xf32>
    %83 = arith.addf %81, %82 : vector<3x32xf32>
    %c0_38 = arith.constant 0 : index
    %c0_39 = arith.constant 0 : index
    %c0_40 = arith.constant 0 : index
    %84 = vector.load %arg4[%c0_38, %c0_39, %c0_40] : memref<1x5x1xf32, #tpu.memory_space<vmem>>, vector<1x5x1xf32>
    %85 = vector.shape_cast %84 : vector<1x5x1xf32> to vector<5x1xf32>
    %c0_41 = arith.constant 0 : index
    %c0_42 = arith.constant 0 : index
    %c0_43 = arith.constant 0 : index
    %86 = vector.load %arg3[%c0_41, %c0_42, %c0_43] : memref<1x5x32xf32, #tpu.memory_space<vmem>>, vector<1x5x32xf32>
    %87 = vector.shape_cast %86 : vector<1x5x32xf32> to vector<5x32xf32>
    %cst_44 = arith.constant 1.000000e+00 : f32
    %88 = vector.broadcast %cst_44 : f32 to vector<5x1xf32>
    %89 = arith.subf %88, %85 : vector<5x1xf32>
    %90 = vector.broadcast %89 : vector<5x1xf32> to vector<5x32xf32>
    %91 = arith.mulf %87, %90 : vector<5x32xf32>
    %c0_45 = arith.constant 0 : index
    %c0_46 = arith.constant 0 : index
    %92 = vector.load %arg18[%c0_45, %c0_46] : memref<1x32xf32, #tpu.memory_space<vmem>>, vector<1x32xf32>
    %93 = vector.broadcast %92 : vector<1x32xf32> to vector<5x32xf32>
    %94 = vector.broadcast %85 : vector<5x1xf32> to vector<5x32xf32>
    %95 = arith.mulf %93, %94 : vector<5x32xf32>
    %96 = arith.addf %91, %95 : vector<5x32xf32>
    %c0_47 = arith.constant 0 : index
    %c0_48 = arith.constant 0 : index
    %97 = vector.load %arg5[%c0_47, %c0_48] : memref<12x3xf32, #tpu.memory_space<vmem>>, vector<12x3xf32>
    %cst_49 = arith.constant dense<0.000000e+00> : vector<12x32xf32>
    %98 = tpu.matmul %97, %83, %cst_49 {dimension_numbers = #tpu.dot_dimension_numbers<[1], [0], [0], [1], [0, 0, 1, 1], [], []>} : vector<12x3xf32>, vector<3x32xf32>, vector<12x32xf32> -> vector<12x32xf32>
    %c0_50 = arith.constant 0 : index
    %c0_51 = arith.constant 0 : index
    %99 = vector.load %arg6[%c0_50, %c0_51] : memref<12x4xf32, #tpu.memory_space<vmem>>, vector<12x4xf32>
    %c0_52 = arith.constant 0 : index
    %c0_53 = arith.constant 0 : index
    %c0_54 = arith.constant 0 : index
    %100 = vector.load %arg2[%c0_52, %c0_53, %c0_54] : memref<1x4x32xf32, #tpu.memory_space<vmem>>, vector<1x4x32xf32>
    %101 = vector.shape_cast %100 : vector<1x4x32xf32> to vector<4x32xf32>
    %cst_55 = arith.constant dense<0.000000e+00> : vector<12x32xf32>
    %102 = tpu.matmul %99, %101, %cst_55 {dimension_numbers = #tpu.dot_dimension_numbers<[1], [0], [0], [1], [0, 0, 1, 1], [], []>} : vector<12x4xf32>, vector<4x32xf32>, vector<12x32xf32> -> vector<12x32xf32>
    %103 = arith.addf %98, %102 : vector<12x32xf32>
    %c0_56 = arith.constant 0 : index
    %c0_57 = arith.constant 0 : index
    %104 = vector.load %arg7[%c0_56, %c0_57] : memref<12x5xf32, #tpu.memory_space<vmem>>, vector<12x5xf32>
    %cst_58 = arith.constant dense<0.000000e+00> : vector<12x32xf32>
    %105 = tpu.matmul %104, %96, %cst_58 {dimension_numbers = #tpu.dot_dimension_numbers<[1], [0], [0], [1], [0, 0, 1, 1], [], []>} : vector<12x5xf32>, vector<5x32xf32>, vector<12x32xf32> -> vector<12x32xf32>
    %106 = arith.addf %103, %105 : vector<12x32xf32>
    %c0_59 = arith.constant 0 : index
    %c0_60 = arith.constant 0 : index
    %107 = vector.load %arg9[%c0_59, %c0_60] : memref<12x64xf32, #tpu.memory_space<vmem>>, vector<12x64xf32>
    %c0_61 = arith.constant 0 : index
    %c0_62 = arith.constant 0 : index
    %108 = vector.load %arg10[%c0_61, %c0_62] : memref<12x64xf32, #tpu.memory_space<vmem>>, vector<12x64xf32>
    %c0_63 = arith.constant 0 : index
    %c0_64 = arith.constant 0 : index
    %109 = vector.load %arg11[%c0_63, %c0_64] : memref<12x16xf32, #tpu.memory_space<vmem>>, vector<12x16xf32>
    %c0_65 = arith.constant 0 : index
    %c0_66 = arith.constant 0 : index
    %110 = vector.load %arg12[%c0_65, %c0_66] : memref<12x16xf32, #tpu.memory_space<vmem>>, vector<12x16xf32>
    %c0_67 = arith.constant 0 : index
    %c0_68 = arith.constant 0 : index
    %111 = vector.load %arg13[%c0_67, %c0_68] : memref<64x64xf32, #tpu.memory_space<vmem>>, vector<64x64xf32>
    %c0_69 = arith.constant 0 : index
    %c0_70 = arith.constant 0 : index
    %112 = vector.load %arg14[%c0_69, %c0_70] : memref<52x12xf32, #tpu.memory_space<vmem>>, vector<52x12xf32>
    %c0_71 = arith.constant 0 : index
    %c0_72 = arith.constant 0 : index
    %113 = vector.load %arg15[%c0_71, %c0_72] : memref<16x64xf32, #tpu.memory_space<vmem>>, vector<16x64xf32>
    %c0_73 = arith.constant 0 : index
    %c0_74 = arith.constant 0 : index
    %114 = vector.load %arg16[%c0_73, %c0_74] : memref<52x64xf32, #tpu.memory_space<vmem>>, vector<52x64xf32>
    %c0_75 = arith.constant 0 : index
    %c0_76 = arith.constant 0 : index
    %115 = vector.load %arg17[%c0_75, %c0_76] : memref<52x64xf32, #tpu.memory_space<vmem>>, vector<52x64xf32>
    %c0_77 = arith.constant 0 : index
    %c0_78 = arith.constant 0 : index
    %116 = vector.load %arg8[%c0_77, %c0_78] : memref<12x52xf32, #tpu.memory_space<vmem>>, vector<12x52xf32>
    %c0_79 = arith.constant 0 : index
    %c0_80 = arith.constant 0 : index
    %c0_81 = arith.constant 0 : index
    %117 = vector.load %arg30[%c0_79, %c0_80, %c0_81] : memref<2x1x32xf32, #tpu.memory_space<vmem>>, vector<1x1x32xf32>
    %118 = vector.shape_cast %117 : vector<1x1x32xf32> to vector<1x32xf32>
    %cst_82 = arith.constant dense<0.000000e+00> : vector<12xf32>
    %119 = vector.multi_reduction <add>, %106, %cst_82 [1] : vector<12x32xf32> to vector<12xf32>
    %120 = vector.shape_cast %119 : vector<12xf32> to vector<12x1xf32>
    %cst_83 = arith.constant 3.200000e+01 : f32
    %121 = vector.broadcast %cst_83 : f32 to vector<12x1xf32>
    %122 = arith.divf %120, %121 : vector<12x1xf32>
    %123 = vector.broadcast %122 : vector<12x1xf32> to vector<12x32xf32>
    %124 = arith.subf %106, %123 : vector<12x32xf32>
    %125 = arith.mulf %124, %124 : vector<12x32xf32>
    %cst_84 = arith.constant dense<0.000000e+00> : vector<12xf32>
    %126 = vector.multi_reduction <add>, %125, %cst_84 [1] : vector<12x32xf32> to vector<12xf32>
    %127 = vector.shape_cast %126 : vector<12xf32> to vector<12x1xf32>
    %cst_85 = arith.constant 3.200000e+01 : f32
    %128 = vector.broadcast %cst_85 : f32 to vector<12x1xf32>
    %129 = arith.divf %127, %128 : vector<12x1xf32>
    %130 = vector.broadcast %122 : vector<12x1xf32> to vector<12x32xf32>
    %131 = arith.subf %106, %130 : vector<12x32xf32>
    %cst_86 = arith.constant 9.99999974E-6 : f32
    %132 = vector.broadcast %cst_86 : f32 to vector<12x1xf32>
    %133 = arith.addf %129, %132 : vector<12x1xf32>
    %134 = math.rsqrt %133 : vector<12x1xf32>
    %135 = vector.broadcast %134 : vector<12x1xf32> to vector<12x32xf32>
    %136 = arith.mulf %131, %135 : vector<12x32xf32>
    %137 = vector.broadcast %118 : vector<1x32xf32> to vector<12x32xf32>
    %138 = arith.mulf %136, %137 : vector<12x32xf32>
    %c0_87 = arith.constant 0 : index
    %c0_88 = arith.constant 0 : index
    %c0_89 = arith.constant 0 : index
    %139 = vector.load %arg29[%c0_87, %c0_88, %c0_89] : memref<2x32x176xf32, #tpu.memory_space<vmem>>, vector<1x32x176xf32>
    %140 = vector.shape_cast %139 : vector<1x32x176xf32> to vector<32x176xf32>
    %cst_90 = arith.constant dense<0.000000e+00> : vector<12x176xf32>
    %141 = tpu.matmul %138, %140, %cst_90 {dimension_numbers = #tpu.dot_dimension_numbers<[1], [0], [0], [1], [0, 0, 1, 1], [], []>} : vector<12x32xf32>, vector<32x176xf32>, vector<12x176xf32> -> vector<12x176xf32>
    %142 = vector.extract_strided_slice %141 {offsets = [0, 0], sizes = [12, 64], strides = [1, 1]} : vector<12x176xf32> to vector<12x64xf32>
    %143 = vector.extract_strided_slice %141 {offsets = [0, 64], sizes = [12, 64], strides = [1, 1]} : vector<12x176xf32> to vector<12x64xf32>
    %144 = vector.extract_strided_slice %141 {offsets = [0, 128], sizes = [12, 16], strides = [1, 1]} : vector<12x176xf32> to vector<12x16xf32>
    %145 = vector.extract_strided_slice %141 {offsets = [0, 144], sizes = [12, 16], strides = [1, 1]} : vector<12x176xf32> to vector<12x16xf32>
    %146 = vector.extract_strided_slice %141 {offsets = [0, 160], sizes = [12, 16], strides = [1, 1]} : vector<12x176xf32> to vector<12x16xf32>
    %147 = arith.mulf %142, %107 : vector<12x64xf32>
    %148 = arith.mulf %143, %108 : vector<12x64xf32>
    %149 = arith.addf %147, %148 : vector<12x64xf32>
    %150 = arith.mulf %144, %109 : vector<12x16xf32>
    %151 = arith.mulf %145, %110 : vector<12x16xf32>
    %152 = arith.addf %150, %151 : vector<12x16xf32>
    %153 = arith.mulf %149, %149 : vector<12x64xf32>
    %cst_91 = arith.constant dense<0.000000e+00> : vector<12x64xf32>
    %154 = tpu.matmul %153, %111, %cst_91 {dimension_numbers = #tpu.dot_dimension_numbers<[1], [0], [0], [1], [0, 0, 1, 1], [], []>} : vector<12x64xf32>, vector<64x64xf32>, vector<12x64xf32> -> vector<12x64xf32>
    %155 = math.sqrt %154 : vector<12x64xf32>
    %cst_92 = arith.constant 9.99999996E-13 : f32
    %156 = vector.broadcast %cst_92 : f32 to vector<12x64xf32>
    %157 = arith.maximumf %155, %156 : vector<12x64xf32>
    %cst_93 = arith.constant 4.000000e+00 : f32
    %158 = vector.broadcast %cst_93 : f32 to vector<12x64xf32>
    %159 = arith.divf %158, %157 : vector<12x64xf32>
    %160 = arith.mulf %149, %159 : vector<12x64xf32>
    %161 = arith.mulf %152, %152 : vector<12x16xf32>
    %cst_94 = arith.constant dense<0.000000e+00> : vector<12xf32>
    %162 = vector.multi_reduction <add>, %161, %cst_94 [1] : vector<12x16xf32> to vector<12xf32>
    %163 = vector.shape_cast %162 : vector<12xf32> to vector<12x1xf32>
    %164 = math.sqrt %163 : vector<12x1xf32>
    %cst_95 = arith.constant 9.99999996E-13 : f32
    %165 = vector.broadcast %cst_95 : f32 to vector<12x1xf32>
    %166 = arith.maximumf %164, %165 : vector<12x1xf32>
    %cst_96 = arith.constant 4.000000e+00 : f32
    %167 = vector.broadcast %cst_96 : f32 to vector<12x1xf32>
    %168 = arith.divf %167, %166 : vector<12x1xf32>
    %169 = vector.broadcast %168 : vector<12x1xf32> to vector<12x16xf32>
    %170 = arith.mulf %152, %169 : vector<12x16xf32>
    %cst_97 = arith.constant dense<0.000000e+00> : vector<52x16xf32>
    %171 = tpu.matmul %112, %170, %cst_97 {dimension_numbers = #tpu.dot_dimension_numbers<[1], [0], [0], [1], [0, 0, 1, 1], [], []>} : vector<52x12xf32>, vector<12x16xf32>, vector<52x16xf32> -> vector<52x16xf32>
    %cst_98 = arith.constant dense<0.000000e+00> : vector<52x16xf32>
    %172 = tpu.matmul %112, %146, %cst_98 {dimension_numbers = #tpu.dot_dimension_numbers<[1], [0], [0], [1], [0, 0, 1, 1], [], []>} : vector<52x12xf32>, vector<12x16xf32>, vector<52x16xf32> -> vector<52x16xf32>
    %cst_99 = arith.constant dense<0.000000e+00> : vector<52x64xf32>
    %173 = tpu.matmul %171, %113, %cst_99 {dimension_numbers = #tpu.dot_dimension_numbers<[1], [0], [0], [1], [0, 0, 1, 1], [], []>} : vector<52x16xf32>, vector<16x64xf32>, vector<52x64xf32> -> vector<52x64xf32>
    %174 = arith.mulf %173, %114 : vector<52x64xf32>
    %c0_100 = arith.constant 0 : index
    %c0_101 = arith.constant 0 : index
    %c0_102 = arith.constant 0 : index
    %175 = vector.load %arg31[%c0_100, %c0_101, %c0_102] : memref<2x1x64xf32, #tpu.memory_space<vmem>>, vector<1x1x64xf32>
    %176 = vector.shape_cast %175 : vector<1x1x64xf32> to vector<1x64xf32>
    %177 = vector.broadcast %176 : vector<1x64xf32> to vector<52x64xf32>
    %178 = arith.mulf %115, %177 : vector<52x64xf32>
    %179 = arith.addf %174, %178 : vector<52x64xf32>
    %cst_103 = arith.constant dense<0.000000e+00> : vector<52x64xf32>
    %180 = tpu.matmul %172, %113, %cst_103 {dimension_numbers = #tpu.dot_dimension_numbers<[1], [0], [0], [1], [0, 0, 1, 1], [], []>} : vector<52x16xf32>, vector<16x64xf32>, vector<52x64xf32> -> vector<52x64xf32>
    %181 = arith.mulf %180, %114 : vector<52x64xf32>
    %c0_104 = arith.constant 0 : index
    %c0_105 = arith.constant 0 : index
    %c0_106 = arith.constant 0 : index
    %182 = vector.load %arg32[%c0_104, %c0_105, %c0_106] : memref<2x1x64xf32, #tpu.memory_space<vmem>>, vector<1x1x64xf32>
    %183 = vector.shape_cast %182 : vector<1x1x64xf32> to vector<1x64xf32>
    %184 = vector.broadcast %183 : vector<1x64xf32> to vector<52x64xf32>
    %185 = arith.mulf %115, %184 : vector<52x64xf32>
    %186 = arith.addf %181, %185 : vector<52x64xf32>
    %cst_107 = arith.constant dense<0.000000e+00> : vector<12x52xf32>
    %187 = tpu.matmul %160, %179, %cst_107 {dimension_numbers = #tpu.dot_dimension_numbers<[1], [1], [0], [0], [0, 0, 1, 0], [], []>} : vector<12x64xf32>, vector<52x64xf32>, vector<12x52xf32> -> vector<12x52xf32>
    %188 = arith.addf %187, %116 : vector<12x52xf32>
    %cst_108 = arith.constant dense<0xFF800000> : vector<12xf32>
    %189 = vector.multi_reduction <maximumf>, %188, %cst_108 [1] : vector<12x52xf32> to vector<12xf32>
    %190 = vector.shape_cast %189 : vector<12xf32> to vector<12x1xf32>
    %191 = vector.broadcast %190 : vector<12x1xf32> to vector<12x52xf32>
    %192 = arith.subf %188, %191 : vector<12x52xf32>
    %193 = math.exp %192 : vector<12x52xf32>
    %cst_109 = arith.constant dense<0.000000e+00> : vector<12x64xf32>
    %194 = tpu.matmul %193, %114, %cst_109 {dimension_numbers = #tpu.dot_dimension_numbers<[1], [0], [0], [1], [0, 0, 1, 1], [], []>} : vector<12x52xf32>, vector<52x64xf32>, vector<12x64xf32> -> vector<12x64xf32>
    %cst_110 = arith.constant dense<0.000000e+00> : vector<12x64xf32>
    %195 = tpu.matmul %193, %186, %cst_110 {dimension_numbers = #tpu.dot_dimension_numbers<[1], [0], [0], [1], [0, 0, 1, 1], [], []>} : vector<12x52xf32>, vector<52x64xf32>, vector<12x64xf32> -> vector<12x64xf32>
    %196 = tpu.reciprocal %194 {approx = true} : vector<12x64xf32> -> vector<12x64xf32>
    %197 = arith.mulf %195, %196 : vector<12x64xf32>
    %c0_111 = arith.constant 0 : index
    %c0_112 = arith.constant 0 : index
    %c0_113 = arith.constant 0 : index
    %198 = vector.load %arg33[%c0_111, %c0_112, %c0_113] : memref<2x64x32xf32, #tpu.memory_space<vmem>>, vector<1x64x32xf32>
    %199 = vector.shape_cast %198 : vector<1x64x32xf32> to vector<64x32xf32>
    %cst_114 = arith.constant dense<0.000000e+00> : vector<12x32xf32>
    %200 = tpu.matmul %197, %199, %cst_114 {dimension_numbers = #tpu.dot_dimension_numbers<[1], [0], [0], [1], [0, 0, 1, 1], [], []>} : vector<12x64xf32>, vector<64x32xf32>, vector<12x32xf32> -> vector<12x32xf32>
    %c0_115 = arith.constant 0 : index
    %c0_116 = arith.constant 0 : index
    %c0_117 = arith.constant 0 : index
    %201 = vector.load %arg34[%c0_115, %c0_116, %c0_117] : memref<2x1x32xf32, #tpu.memory_space<vmem>>, vector<1x1x32xf32>
    %202 = vector.shape_cast %201 : vector<1x1x32xf32> to vector<1x32xf32>
    %cst_118 = arith.constant dense<0.000000e+00> : vector<12xf32>
    %203 = vector.multi_reduction <add>, %200, %cst_118 [1] : vector<12x32xf32> to vector<12xf32>
    %204 = vector.shape_cast %203 : vector<12xf32> to vector<12x1xf32>
    %cst_119 = arith.constant 3.200000e+01 : f32
    %205 = vector.broadcast %cst_119 : f32 to vector<12x1xf32>
    %206 = arith.divf %204, %205 : vector<12x1xf32>
    %207 = vector.broadcast %206 : vector<12x1xf32> to vector<12x32xf32>
    %208 = arith.subf %200, %207 : vector<12x32xf32>
    %209 = arith.mulf %208, %208 : vector<12x32xf32>
    %cst_120 = arith.constant dense<0.000000e+00> : vector<12xf32>
    %210 = vector.multi_reduction <add>, %209, %cst_120 [1] : vector<12x32xf32> to vector<12xf32>
    %211 = vector.shape_cast %210 : vector<12xf32> to vector<12x1xf32>
    %cst_121 = arith.constant 3.200000e+01 : f32
    %212 = vector.broadcast %cst_121 : f32 to vector<12x1xf32>
    %213 = arith.divf %211, %212 : vector<12x1xf32>
    %214 = vector.broadcast %206 : vector<12x1xf32> to vector<12x32xf32>
    %215 = arith.subf %200, %214 : vector<12x32xf32>
    %cst_122 = arith.constant 9.99999974E-6 : f32
    %216 = vector.broadcast %cst_122 : f32 to vector<12x1xf32>
    %217 = arith.addf %213, %216 : vector<12x1xf32>
    %218 = math.rsqrt %217 : vector<12x1xf32>
    %219 = vector.broadcast %218 : vector<12x1xf32> to vector<12x32xf32>
    %220 = arith.mulf %215, %219 : vector<12x32xf32>
    %221 = vector.broadcast %202 : vector<1x32xf32> to vector<12x32xf32>
    %222 = arith.mulf %220, %221 : vector<12x32xf32>
    %223 = arith.addf %106, %222 : vector<12x32xf32>
    %c0_123 = arith.constant 0 : index
    %c0_124 = arith.constant 0 : index
    %c0_125 = arith.constant 0 : index
    %224 = vector.load %arg35[%c0_123, %c0_124, %c0_125] : memref<2x1x32xf32, #tpu.memory_space<vmem>>, vector<1x1x32xf32>
    %225 = vector.shape_cast %224 : vector<1x1x32xf32> to vector<1x32xf32>
    %cst_126 = arith.constant dense<0.000000e+00> : vector<12xf32>
    %226 = vector.multi_reduction <add>, %223, %cst_126 [1] : vector<12x32xf32> to vector<12xf32>
    %227 = vector.shape_cast %226 : vector<12xf32> to vector<12x1xf32>
    %cst_127 = arith.constant 3.200000e+01 : f32
    %228 = vector.broadcast %cst_127 : f32 to vector<12x1xf32>
    %229 = arith.divf %227, %228 : vector<12x1xf32>
    %230 = vector.broadcast %229 : vector<12x1xf32> to vector<12x32xf32>
    %231 = arith.subf %223, %230 : vector<12x32xf32>
    %232 = arith.mulf %231, %231 : vector<12x32xf32>
    %cst_128 = arith.constant dense<0.000000e+00> : vector<12xf32>
    %233 = vector.multi_reduction <add>, %232, %cst_128 [1] : vector<12x32xf32> to vector<12xf32>
    %234 = vector.shape_cast %233 : vector<12xf32> to vector<12x1xf32>
    %cst_129 = arith.constant 3.200000e+01 : f32
    %235 = vector.broadcast %cst_129 : f32 to vector<12x1xf32>
    %236 = arith.divf %234, %235 : vector<12x1xf32>
    %237 = vector.broadcast %229 : vector<12x1xf32> to vector<12x32xf32>
    %238 = arith.subf %223, %237 : vector<12x32xf32>
    %cst_130 = arith.constant 9.99999974E-6 : f32
    %239 = vector.broadcast %cst_130 : f32 to vector<12x1xf32>
    %240 = arith.addf %236, %239 : vector<12x1xf32>
    %241 = math.rsqrt %240 : vector<12x1xf32>
    %242 = vector.broadcast %241 : vector<12x1xf32> to vector<12x32xf32>
    %243 = arith.mulf %238, %242 : vector<12x32xf32>
    %244 = vector.broadcast %225 : vector<1x32xf32> to vector<12x32xf32>
    %245 = arith.mulf %243, %244 : vector<12x32xf32>
    %c0_131 = arith.constant 0 : index
    %c0_132 = arith.constant 0 : index
    %c0_133 = arith.constant 0 : index
    %246 = vector.load %arg36[%c0_131, %c0_132, %c0_133] : memref<2x32x256xf32, #tpu.memory_space<vmem>>, vector<1x32x256xf32>
    %247 = vector.shape_cast %246 : vector<1x32x256xf32> to vector<32x256xf32>
    %cst_134 = arith.constant dense<0.000000e+00> : vector<12x256xf32>
    %248 = tpu.matmul %245, %247, %cst_134 {dimension_numbers = #tpu.dot_dimension_numbers<[1], [0], [0], [1], [0, 0, 1, 1], [], []>} : vector<12x32xf32>, vector<32x256xf32>, vector<12x256xf32> -> vector<12x256xf32>
    %249 = vector.extract_strided_slice %248 {offsets = [0, 0], sizes = [12, 128], strides = [1, 1]} : vector<12x256xf32> to vector<12x128xf32>
    %250 = vector.extract_strided_slice %248 {offsets = [0, 128], sizes = [12, 128], strides = [1, 1]} : vector<12x256xf32> to vector<12x128xf32>
    %251 = arith.negf %250 : vector<12x128xf32>
    %252 = math.exp %251 : vector<12x128xf32>
    %cst_135 = arith.constant 1.000000e+00 : f32
    %253 = vector.broadcast %cst_135 : f32 to vector<12x128xf32>
    %254 = arith.addf %253, %252 : vector<12x128xf32>
    %255 = arith.divf %253, %254 : vector<12x128xf32>
    %256 = arith.mulf %250, %255 : vector<12x128xf32>
    %257 = arith.mulf %249, %256 : vector<12x128xf32>
    %c0_136 = arith.constant 0 : index
    %c0_137 = arith.constant 0 : index
    %c0_138 = arith.constant 0 : index
    %258 = vector.load %arg37[%c0_136, %c0_137, %c0_138] : memref<2x128x32xf32, #tpu.memory_space<vmem>>, vector<1x128x32xf32>
    %259 = vector.shape_cast %258 : vector<1x128x32xf32> to vector<128x32xf32>
    %cst_139 = arith.constant dense<0.000000e+00> : vector<12x32xf32>
    %260 = tpu.matmul %257, %259, %cst_139 {dimension_numbers = #tpu.dot_dimension_numbers<[1], [0], [0], [1], [0, 0, 1, 1], [], []>} : vector<12x128xf32>, vector<128x32xf32>, vector<12x32xf32> -> vector<12x32xf32>
    %261 = arith.addf %223, %260 : vector<12x32xf32>
    %c1 = arith.constant 1 : index
    %c0_140 = arith.constant 0 : index
    %c0_141 = arith.constant 0 : index
    %262 = vector.load %arg30[%c1, %c0_140, %c0_141] : memref<2x1x32xf32, #tpu.memory_space<vmem>>, vector<1x1x32xf32>
    %263 = vector.shape_cast %262 : vector<1x1x32xf32> to vector<1x32xf32>
    %cst_142 = arith.constant dense<0.000000e+00> : vector<12xf32>
    %264 = vector.multi_reduction <add>, %261, %cst_142 [1] : vector<12x32xf32> to vector<12xf32>
    %265 = vector.shape_cast %264 : vector<12xf32> to vector<12x1xf32>
    %cst_143 = arith.constant 3.200000e+01 : f32
    %266 = vector.broadcast %cst_143 : f32 to vector<12x1xf32>
    %267 = arith.divf %265, %266 : vector<12x1xf32>
    %268 = vector.broadcast %267 : vector<12x1xf32> to vector<12x32xf32>
    %269 = arith.subf %261, %268 : vector<12x32xf32>
    %270 = arith.mulf %269, %269 : vector<12x32xf32>
    %cst_144 = arith.constant dense<0.000000e+00> : vector<12xf32>
    %271 = vector.multi_reduction <add>, %270, %cst_144 [1] : vector<12x32xf32> to vector<12xf32>
    %272 = vector.shape_cast %271 : vector<12xf32> to vector<12x1xf32>
    %cst_145 = arith.constant 3.200000e+01 : f32
    %273 = vector.broadcast %cst_145 : f32 to vector<12x1xf32>
    %274 = arith.divf %272, %273 : vector<12x1xf32>
    %275 = vector.broadcast %267 : vector<12x1xf32> to vector<12x32xf32>
    %276 = arith.subf %261, %275 : vector<12x32xf32>
    %cst_146 = arith.constant 9.99999974E-6 : f32
    %277 = vector.broadcast %cst_146 : f32 to vector<12x1xf32>
    %278 = arith.addf %274, %277 : vector<12x1xf32>
    %279 = math.rsqrt %278 : vector<12x1xf32>
    %280 = vector.broadcast %279 : vector<12x1xf32> to vector<12x32xf32>
    %281 = arith.mulf %276, %280 : vector<12x32xf32>
    %282 = vector.broadcast %263 : vector<1x32xf32> to vector<12x32xf32>
    %283 = arith.mulf %281, %282 : vector<12x32xf32>
    %c1_147 = arith.constant 1 : index
    %c0_148 = arith.constant 0 : index
    %c0_149 = arith.constant 0 : index
    %284 = vector.load %arg29[%c1_147, %c0_148, %c0_149] : memref<2x32x176xf32, #tpu.memory_space<vmem>>, vector<1x32x176xf32>
    %285 = vector.shape_cast %284 : vector<1x32x176xf32> to vector<32x176xf32>
    %cst_150 = arith.constant dense<0.000000e+00> : vector<12x176xf32>
    %286 = tpu.matmul %283, %285, %cst_150 {dimension_numbers = #tpu.dot_dimension_numbers<[1], [0], [0], [1], [0, 0, 1, 1], [], []>} : vector<12x32xf32>, vector<32x176xf32>, vector<12x176xf32> -> vector<12x176xf32>
    %287 = vector.extract_strided_slice %286 {offsets = [0, 0], sizes = [12, 64], strides = [1, 1]} : vector<12x176xf32> to vector<12x64xf32>
    %288 = vector.extract_strided_slice %286 {offsets = [0, 64], sizes = [12, 64], strides = [1, 1]} : vector<12x176xf32> to vector<12x64xf32>
    %289 = vector.extract_strided_slice %286 {offsets = [0, 128], sizes = [12, 16], strides = [1, 1]} : vector<12x176xf32> to vector<12x16xf32>
    %290 = vector.extract_strided_slice %286 {offsets = [0, 144], sizes = [12, 16], strides = [1, 1]} : vector<12x176xf32> to vector<12x16xf32>
    %291 = vector.extract_strided_slice %286 {offsets = [0, 160], sizes = [12, 16], strides = [1, 1]} : vector<12x176xf32> to vector<12x16xf32>
    %292 = arith.mulf %287, %107 : vector<12x64xf32>
    %293 = arith.mulf %288, %108 : vector<12x64xf32>
    %294 = arith.addf %292, %293 : vector<12x64xf32>
    %295 = arith.mulf %289, %109 : vector<12x16xf32>
    %296 = arith.mulf %290, %110 : vector<12x16xf32>
    %297 = arith.addf %295, %296 : vector<12x16xf32>
    %298 = arith.mulf %294, %294 : vector<12x64xf32>
    %cst_151 = arith.constant dense<0.000000e+00> : vector<12x64xf32>
    %299 = tpu.matmul %298, %111, %cst_151 {dimension_numbers = #tpu.dot_dimension_numbers<[1], [0], [0], [1], [0, 0, 1, 1], [], []>} : vector<12x64xf32>, vector<64x64xf32>, vector<12x64xf32> -> vector<12x64xf32>
    %300 = math.sqrt %299 : vector<12x64xf32>
    %cst_152 = arith.constant 9.99999996E-13 : f32
    %301 = vector.broadcast %cst_152 : f32 to vector<12x64xf32>
    %302 = arith.maximumf %300, %301 : vector<12x64xf32>
    %cst_153 = arith.constant 4.000000e+00 : f32
    %303 = vector.broadcast %cst_153 : f32 to vector<12x64xf32>
    %304 = arith.divf %303, %302 : vector<12x64xf32>
    %305 = arith.mulf %294, %304 : vector<12x64xf32>
    %306 = arith.mulf %297, %297 : vector<12x16xf32>
    %cst_154 = arith.constant dense<0.000000e+00> : vector<12xf32>
    %307 = vector.multi_reduction <add>, %306, %cst_154 [1] : vector<12x16xf32> to vector<12xf32>
    %308 = vector.shape_cast %307 : vector<12xf32> to vector<12x1xf32>
    %309 = math.sqrt %308 : vector<12x1xf32>
    %cst_155 = arith.constant 9.99999996E-13 : f32
    %310 = vector.broadcast %cst_155 : f32 to vector<12x1xf32>
    %311 = arith.maximumf %309, %310 : vector<12x1xf32>
    %cst_156 = arith.constant 4.000000e+00 : f32
    %312 = vector.broadcast %cst_156 : f32 to vector<12x1xf32>
    %313 = arith.divf %312, %311 : vector<12x1xf32>
    %314 = vector.broadcast %313 : vector<12x1xf32> to vector<12x16xf32>
    %315 = arith.mulf %297, %314 : vector<12x16xf32>
    %cst_157 = arith.constant dense<0.000000e+00> : vector<52x16xf32>
    %316 = tpu.matmul %112, %315, %cst_157 {dimension_numbers = #tpu.dot_dimension_numbers<[1], [0], [0], [1], [0, 0, 1, 1], [], []>} : vector<52x12xf32>, vector<12x16xf32>, vector<52x16xf32> -> vector<52x16xf32>
    %cst_158 = arith.constant dense<0.000000e+00> : vector<52x16xf32>
    %317 = tpu.matmul %112, %291, %cst_158 {dimension_numbers = #tpu.dot_dimension_numbers<[1], [0], [0], [1], [0, 0, 1, 1], [], []>} : vector<52x12xf32>, vector<12x16xf32>, vector<52x16xf32> -> vector<52x16xf32>
    %cst_159 = arith.constant dense<0.000000e+00> : vector<52x64xf32>
    %318 = tpu.matmul %316, %113, %cst_159 {dimension_numbers = #tpu.dot_dimension_numbers<[1], [0], [0], [1], [0, 0, 1, 1], [], []>} : vector<52x16xf32>, vector<16x64xf32>, vector<52x64xf32> -> vector<52x64xf32>
    %319 = arith.mulf %318, %114 : vector<52x64xf32>
    %c1_160 = arith.constant 1 : index
    %c0_161 = arith.constant 0 : index
    %c0_162 = arith.constant 0 : index
    %320 = vector.load %arg31[%c1_160, %c0_161, %c0_162] : memref<2x1x64xf32, #tpu.memory_space<vmem>>, vector<1x1x64xf32>
    %321 = vector.shape_cast %320 : vector<1x1x64xf32> to vector<1x64xf32>
    %322 = vector.broadcast %321 : vector<1x64xf32> to vector<52x64xf32>
    %323 = arith.mulf %115, %322 : vector<52x64xf32>
    %324 = arith.addf %319, %323 : vector<52x64xf32>
    %cst_163 = arith.constant dense<0.000000e+00> : vector<52x64xf32>
    %325 = tpu.matmul %317, %113, %cst_163 {dimension_numbers = #tpu.dot_dimension_numbers<[1], [0], [0], [1], [0, 0, 1, 1], [], []>} : vector<52x16xf32>, vector<16x64xf32>, vector<52x64xf32> -> vector<52x64xf32>
    %326 = arith.mulf %325, %114 : vector<52x64xf32>
    %c1_164 = arith.constant 1 : index
    %c0_165 = arith.constant 0 : index
    %c0_166 = arith.constant 0 : index
    %327 = vector.load %arg32[%c1_164, %c0_165, %c0_166] : memref<2x1x64xf32, #tpu.memory_space<vmem>>, vector<1x1x64xf32>
    %328 = vector.shape_cast %327 : vector<1x1x64xf32> to vector<1x64xf32>
    %329 = vector.broadcast %328 : vector<1x64xf32> to vector<52x64xf32>
    %330 = arith.mulf %115, %329 : vector<52x64xf32>
    %331 = arith.addf %326, %330 : vector<52x64xf32>
    %cst_167 = arith.constant dense<0.000000e+00> : vector<12x52xf32>
    %332 = tpu.matmul %305, %324, %cst_167 {dimension_numbers = #tpu.dot_dimension_numbers<[1], [1], [0], [0], [0, 0, 1, 0], [], []>} : vector<12x64xf32>, vector<52x64xf32>, vector<12x52xf32> -> vector<12x52xf32>
    %333 = arith.addf %332, %116 : vector<12x52xf32>
    %cst_168 = arith.constant dense<0xFF800000> : vector<12xf32>
    %334 = vector.multi_reduction <maximumf>, %333, %cst_168 [1] : vector<12x52xf32> to vector<12xf32>
    %335 = vector.shape_cast %334 : vector<12xf32> to vector<12x1xf32>
    %336 = vector.broadcast %335 : vector<12x1xf32> to vector<12x52xf32>
    %337 = arith.subf %333, %336 : vector<12x52xf32>
    %338 = math.exp %337 : vector<12x52xf32>
    %cst_169 = arith.constant dense<0.000000e+00> : vector<12x64xf32>
    %339 = tpu.matmul %338, %114, %cst_169 {dimension_numbers = #tpu.dot_dimension_numbers<[1], [0], [0], [1], [0, 0, 1, 1], [], []>} : vector<12x52xf32>, vector<52x64xf32>, vector<12x64xf32> -> vector<12x64xf32>
    %cst_170 = arith.constant dense<0.000000e+00> : vector<12x64xf32>
    %340 = tpu.matmul %338, %331, %cst_170 {dimension_numbers = #tpu.dot_dimension_numbers<[1], [0], [0], [1], [0, 0, 1, 1], [], []>} : vector<12x52xf32>, vector<52x64xf32>, vector<12x64xf32> -> vector<12x64xf32>
    %341 = tpu.reciprocal %339 {approx = true} : vector<12x64xf32> -> vector<12x64xf32>
    %342 = arith.mulf %340, %341 : vector<12x64xf32>
    %c1_171 = arith.constant 1 : index
    %c0_172 = arith.constant 0 : index
    %c0_173 = arith.constant 0 : index
    %343 = vector.load %arg33[%c1_171, %c0_172, %c0_173] : memref<2x64x32xf32, #tpu.memory_space<vmem>>, vector<1x64x32xf32>
    %344 = vector.shape_cast %343 : vector<1x64x32xf32> to vector<64x32xf32>
    %cst_174 = arith.constant dense<0.000000e+00> : vector<12x32xf32>
    %345 = tpu.matmul %342, %344, %cst_174 {dimension_numbers = #tpu.dot_dimension_numbers<[1], [0], [0], [1], [0, 0, 1, 1], [], []>} : vector<12x64xf32>, vector<64x32xf32>, vector<12x32xf32> -> vector<12x32xf32>
    %c1_175 = arith.constant 1 : index
    %c0_176 = arith.constant 0 : index
    %c0_177 = arith.constant 0 : index
    %346 = vector.load %arg34[%c1_175, %c0_176, %c0_177] : memref<2x1x32xf32, #tpu.memory_space<vmem>>, vector<1x1x32xf32>
    %347 = vector.shape_cast %346 : vector<1x1x32xf32> to vector<1x32xf32>
    %cst_178 = arith.constant dense<0.000000e+00> : vector<12xf32>
    %348 = vector.multi_reduction <add>, %345, %cst_178 [1] : vector<12x32xf32> to vector<12xf32>
    %349 = vector.shape_cast %348 : vector<12xf32> to vector<12x1xf32>
    %cst_179 = arith.constant 3.200000e+01 : f32
    %350 = vector.broadcast %cst_179 : f32 to vector<12x1xf32>
    %351 = arith.divf %349, %350 : vector<12x1xf32>
    %352 = vector.broadcast %351 : vector<12x1xf32> to vector<12x32xf32>
    %353 = arith.subf %345, %352 : vector<12x32xf32>
    %354 = arith.mulf %353, %353 : vector<12x32xf32>
    %cst_180 = arith.constant dense<0.000000e+00> : vector<12xf32>
    %355 = vector.multi_reduction <add>, %354, %cst_180 [1] : vector<12x32xf32> to vector<12xf32>
    %356 = vector.shape_cast %355 : vector<12xf32> to vector<12x1xf32>
    %cst_181 = arith.constant 3.200000e+01 : f32
    %357 = vector.broadcast %cst_181 : f32 to vector<12x1xf32>
    %358 = arith.divf %356, %357 : vector<12x1xf32>
    %359 = vector.broadcast %351 : vector<12x1xf32> to vector<12x32xf32>
    %360 = arith.subf %345, %359 : vector<12x32xf32>
    %cst_182 = arith.constant 9.99999974E-6 : f32
    %361 = vector.broadcast %cst_182 : f32 to vector<12x1xf32>
    %362 = arith.addf %358, %361 : vector<12x1xf32>
    %363 = math.rsqrt %362 : vector<12x1xf32>
    %364 = vector.broadcast %363 : vector<12x1xf32> to vector<12x32xf32>
    %365 = arith.mulf %360, %364 : vector<12x32xf32>
    %366 = vector.broadcast %347 : vector<1x32xf32> to vector<12x32xf32>
    %367 = arith.mulf %365, %366 : vector<12x32xf32>
    %368 = arith.addf %261, %367 : vector<12x32xf32>
    %c1_183 = arith.constant 1 : index
    %c0_184 = arith.constant 0 : index
    %c0_185 = arith.constant 0 : index
    %369 = vector.load %arg35[%c1_183, %c0_184, %c0_185] : memref<2x1x32xf32, #tpu.memory_space<vmem>>, vector<1x1x32xf32>
    %370 = vector.shape_cast %369 : vector<1x1x32xf32> to vector<1x32xf32>
    %cst_186 = arith.constant dense<0.000000e+00> : vector<12xf32>
    %371 = vector.multi_reduction <add>, %368, %cst_186 [1] : vector<12x32xf32> to vector<12xf32>
    %372 = vector.shape_cast %371 : vector<12xf32> to vector<12x1xf32>
    %cst_187 = arith.constant 3.200000e+01 : f32
    %373 = vector.broadcast %cst_187 : f32 to vector<12x1xf32>
    %374 = arith.divf %372, %373 : vector<12x1xf32>
    %375 = vector.broadcast %374 : vector<12x1xf32> to vector<12x32xf32>
    %376 = arith.subf %368, %375 : vector<12x32xf32>
    %377 = arith.mulf %376, %376 : vector<12x32xf32>
    %cst_188 = arith.constant dense<0.000000e+00> : vector<12xf32>
    %378 = vector.multi_reduction <add>, %377, %cst_188 [1] : vector<12x32xf32> to vector<12xf32>
    %379 = vector.shape_cast %378 : vector<12xf32> to vector<12x1xf32>
    %cst_189 = arith.constant 3.200000e+01 : f32
    %380 = vector.broadcast %cst_189 : f32 to vector<12x1xf32>
    %381 = arith.divf %379, %380 : vector<12x1xf32>
    %382 = vector.broadcast %374 : vector<12x1xf32> to vector<12x32xf32>
    %383 = arith.subf %368, %382 : vector<12x32xf32>
    %cst_190 = arith.constant 9.99999974E-6 : f32
    %384 = vector.broadcast %cst_190 : f32 to vector<12x1xf32>
    %385 = arith.addf %381, %384 : vector<12x1xf32>
    %386 = math.rsqrt %385 : vector<12x1xf32>
    %387 = vector.broadcast %386 : vector<12x1xf32> to vector<12x32xf32>
    %388 = arith.mulf %383, %387 : vector<12x32xf32>
    %389 = vector.broadcast %370 : vector<1x32xf32> to vector<12x32xf32>
    %390 = arith.mulf %388, %389 : vector<12x32xf32>
    %c1_191 = arith.constant 1 : index
    %c0_192 = arith.constant 0 : index
    %c0_193 = arith.constant 0 : index
    %391 = vector.load %arg36[%c1_191, %c0_192, %c0_193] : memref<2x32x256xf32, #tpu.memory_space<vmem>>, vector<1x32x256xf32>
    %392 = vector.shape_cast %391 : vector<1x32x256xf32> to vector<32x256xf32>
    %cst_194 = arith.constant dense<0.000000e+00> : vector<12x256xf32>
    %393 = tpu.matmul %390, %392, %cst_194 {dimension_numbers = #tpu.dot_dimension_numbers<[1], [0], [0], [1], [0, 0, 1, 1], [], []>} : vector<12x32xf32>, vector<32x256xf32>, vector<12x256xf32> -> vector<12x256xf32>
    %394 = vector.extract_strided_slice %393 {offsets = [0, 0], sizes = [12, 128], strides = [1, 1]} : vector<12x256xf32> to vector<12x128xf32>
    %395 = vector.extract_strided_slice %393 {offsets = [0, 128], sizes = [12, 128], strides = [1, 1]} : vector<12x256xf32> to vector<12x128xf32>
    %396 = arith.negf %395 : vector<12x128xf32>
    %397 = math.exp %396 : vector<12x128xf32>
    %cst_195 = arith.constant 1.000000e+00 : f32
    %398 = vector.broadcast %cst_195 : f32 to vector<12x128xf32>
    %399 = arith.addf %398, %397 : vector<12x128xf32>
    %400 = arith.divf %398, %399 : vector<12x128xf32>
    %401 = arith.mulf %395, %400 : vector<12x128xf32>
    %402 = arith.mulf %394, %401 : vector<12x128xf32>
    %c1_196 = arith.constant 1 : index
    %c0_197 = arith.constant 0 : index
    %c0_198 = arith.constant 0 : index
    %403 = vector.load %arg37[%c1_196, %c0_197, %c0_198] : memref<2x128x32xf32, #tpu.memory_space<vmem>>, vector<1x128x32xf32>
    %404 = vector.shape_cast %403 : vector<1x128x32xf32> to vector<128x32xf32>
    %cst_199 = arith.constant dense<0.000000e+00> : vector<12x32xf32>
    %405 = tpu.matmul %402, %404, %cst_199 {dimension_numbers = #tpu.dot_dimension_numbers<[1], [0], [0], [1], [0, 0, 1, 1], [], []>} : vector<12x128xf32>, vector<128x32xf32>, vector<12x32xf32> -> vector<12x32xf32>
    %406 = arith.addf %368, %405 : vector<12x32xf32>
    %cst_200 = arith.constant dense<0xFF800000> : vector<12xf32>
    %407 = vector.multi_reduction <maximumf>, %406, %cst_200 [1] : vector<12x32xf32> to vector<12xf32>
    %408 = vector.shape_cast %407 : vector<12xf32> to vector<12x1xf32>
    %409 = vector.broadcast %408 : vector<12x1xf32> to vector<12x32xf32>
    %410 = arith.divf %406, %409 : vector<12x32xf32>
    %c0_201 = arith.constant 0 : index
    %c0_202 = arith.constant 0 : index
    %411 = vector.load %arg38[%c0_201, %c0_202] : memref<1x32xf32, #tpu.memory_space<vmem>>, vector<1x32xf32>
    %cst_203 = arith.constant dense<0.000000e+00> : vector<12xf32>
    %412 = vector.multi_reduction <add>, %410, %cst_203 [1] : vector<12x32xf32> to vector<12xf32>
    %413 = vector.shape_cast %412 : vector<12xf32> to vector<12x1xf32>
    %cst_204 = arith.constant 3.200000e+01 : f32
    %414 = vector.broadcast %cst_204 : f32 to vector<12x1xf32>
    %415 = arith.divf %413, %414 : vector<12x1xf32>
    %416 = vector.broadcast %415 : vector<12x1xf32> to vector<12x32xf32>
    %417 = arith.subf %410, %416 : vector<12x32xf32>
    %418 = arith.mulf %417, %417 : vector<12x32xf32>
    %cst_205 = arith.constant dense<0.000000e+00> : vector<12xf32>
    %419 = vector.multi_reduction <add>, %418, %cst_205 [1] : vector<12x32xf32> to vector<12xf32>
    %420 = vector.shape_cast %419 : vector<12xf32> to vector<12x1xf32>
    %cst_206 = arith.constant 3.200000e+01 : f32
    %421 = vector.broadcast %cst_206 : f32 to vector<12x1xf32>
    %422 = arith.divf %420, %421 : vector<12x1xf32>
    %423 = vector.broadcast %415 : vector<12x1xf32> to vector<12x32xf32>
    %424 = arith.subf %410, %423 : vector<12x32xf32>
    %cst_207 = arith.constant 9.99999974E-6 : f32
    %425 = vector.broadcast %cst_207 : f32 to vector<12x1xf32>
    %426 = arith.addf %422, %425 : vector<12x1xf32>
    %427 = math.rsqrt %426 : vector<12x1xf32>
    %428 = vector.broadcast %427 : vector<12x1xf32> to vector<12x32xf32>
    %429 = arith.mulf %424, %428 : vector<12x32xf32>
    %430 = vector.broadcast %411 : vector<1x32xf32> to vector<12x32xf32>
    %431 = arith.mulf %429, %430 : vector<12x32xf32>
    %c0_208 = arith.constant 0 : index
    %c0_209 = arith.constant 0 : index
    %432 = vector.load %arg39[%c0_208, %c0_209] : memref<32x32xf32, #tpu.memory_space<vmem>>, vector<32x32xf32>
    %cst_210 = arith.constant dense<0.000000e+00> : vector<12x32xf32>
    %433 = tpu.matmul %431, %432, %cst_210 {dimension_numbers = #tpu.dot_dimension_numbers<[1], [0], [0], [1], [0, 0, 1, 1], [], []>} : vector<12x32xf32>, vector<32x32xf32>, vector<12x32xf32> -> vector<12x32xf32>
    %c0_211 = arith.constant 0 : index
    %c0_212 = arith.constant 0 : index
    %c0_213 = arith.constant 0 : index
    %434 = vector.load %arg40[%c0_211, %c0_212, %c0_213] : memref<1x12x32xf32, #tpu.memory_space<vmem>>, vector<1x12x32xf32>
    %435 = vector.shape_cast %434 : vector<1x12x32xf32> to vector<12x32xf32>
    %436 = vector.shape_cast %433 : vector<12x32xf32> to vector<1x12x32xf32>
    tpu.vector_store %arg40[%c0_211, %c0_212, %c0_213], %436 {strides = array<i32>} : memref<1x12x32xf32, #tpu.memory_space<vmem>>, vector<1x12x32xf32>,
    return
  }
  func.func @transform_0(%arg0: i32) -> (i32, i32, i32) {
    %c0_i32 = arith.constant 0 : i32
    %c0_i32_0 = arith.constant 0 : i32
    %c0_i32_1 = arith.constant 0 : i32
    return %arg0, %c0_i32, %c0_i32_0 : i32, i32, i32
  }
  func.func @transform_1(%arg0: i32) -> (i32, i32, i32) {
    %c0_i32 = arith.constant 0 : i32
    %c0_i32_0 = arith.constant 0 : i32
    %c0_i32_1 = arith.constant 0 : i32
    return %arg0, %c0_i32, %c0_i32_0 : i32, i32, i32
  }
  func.func @transform_2(%arg0: i32) -> (i32, i32, i32) {
    %c0_i32 = arith.constant 0 : i32
    %c0_i32_0 = arith.constant 0 : i32
    %c0_i32_1 = arith.constant 0 : i32
    return %arg0, %c0_i32, %c0_i32_0 : i32, i32, i32
  }
  func.func @transform_3(%arg0: i32) -> (i32, i32, i32) {
    %c0_i32 = arith.constant 0 : i32
    %c0_i32_0 = arith.constant 0 : i32
    %c0_i32_1 = arith.constant 0 : i32
    return %arg0, %c0_i32, %c0_i32_0 : i32, i32, i32
  }
  func.func @transform_4(%arg0: i32) -> (i32, i32) {
    %c0_i32 = arith.constant 0 : i32
    %c0_i32_0 = arith.constant 0 : i32
    %c0_i32_1 = arith.constant 0 : i32
    return %c0_i32, %c0_i32_0 : i32, i32
  }
  func.func @transform_5(%arg0: i32) -> (i32, i32) {
    %c0_i32 = arith.constant 0 : i32
    %c0_i32_0 = arith.constant 0 : i32
    %c0_i32_1 = arith.constant 0 : i32
    return %c0_i32, %c0_i32_0 : i32, i32
  }
  func.func @transform_6(%arg0: i32) -> (i32, i32) {
    %c0_i32 = arith.constant 0 : i32
    %c0_i32_0 = arith.constant 0 : i32
    %c0_i32_1 = arith.constant 0 : i32
    return %c0_i32, %c0_i32_0 : i32, i32
  }
  func.func @transform_7(%arg0: i32) -> (i32, i32) {
    %c0_i32 = arith.constant 0 : i32
    %c0_i32_0 = arith.constant 0 : i32
    %c0_i32_1 = arith.constant 0 : i32
    return %c0_i32, %c0_i32_0 : i32, i32
  }
  func.func @transform_8(%arg0: i32) -> (i32, i32) {
    %c0_i32 = arith.constant 0 : i32
    %c0_i32_0 = arith.constant 0 : i32
    %c0_i32_1 = arith.constant 0 : i32
    return %c0_i32, %c0_i32_0 : i32, i32
  }
  func.func @transform_9(%arg0: i32) -> (i32, i32) {
    %c0_i32 = arith.constant 0 : i32
    %c0_i32_0 = arith.constant 0 : i32
    %c0_i32_1 = arith.constant 0 : i32
    return %c0_i32, %c0_i32_0 : i32, i32
  }
  func.func @transform_10(%arg0: i32) -> (i32, i32) {
    %c0_i32 = arith.constant 0 : i32
    %c0_i32_0 = arith.constant 0 : i32
    %c0_i32_1 = arith.constant 0 : i32
    return %c0_i32, %c0_i32_0 : i32, i32
  }
  func.func @transform_11(%arg0: i32) -> (i32, i32) {
    %c0_i32 = arith.constant 0 : i32
    %c0_i32_0 = arith.constant 0 : i32
    %c0_i32_1 = arith.constant 0 : i32
    return %c0_i32, %c0_i32_0 : i32, i32
  }
  func.func @transform_12(%arg0: i32) -> (i32, i32) {
    %c0_i32 = arith.constant 0 : i32
    %c0_i32_0 = arith.constant 0 : i32
    %c0_i32_1 = arith.constant 0 : i32
    return %c0_i32, %c0_i32_0 : i32, i32
  }
  func.func @transform_13(%arg0: i32) -> (i32, i32) {
    %c0_i32 = arith.constant 0 : i32
    %c0_i32_0 = arith.constant 0 : i32
    %c0_i32_1 = arith.constant 0 : i32
    return %c0_i32, %c0_i32_0 : i32, i32
  }
  func.func @transform_14(%arg0: i32) -> (i32, i32) {
    %c0_i32 = arith.constant 0 : i32
    %c0_i32_0 = arith.constant 0 : i32
    %c0_i32_1 = arith.constant 0 : i32
    return %c0_i32, %c0_i32_0 : i32, i32
  }
  func.func @transform_15(%arg0: i32) -> (i32, i32) {
    %c0_i32 = arith.constant 0 : i32
    %c0_i32_0 = arith.constant 0 : i32
    %c0_i32_1 = arith.constant 0 : i32
    return %c0_i32, %c0_i32_0 : i32, i32
  }
  func.func @transform_16(%arg0: i32) -> (i32, i32) {
    %c0_i32 = arith.constant 0 : i32
    %c0_i32_0 = arith.constant 0 : i32
    %c0_i32_1 = arith.constant 0 : i32
    return %c0_i32, %c0_i32_0 : i32, i32
  }
  func.func @transform_17(%arg0: i32) -> (i32, i32) {
    %c0_i32 = arith.constant 0 : i32
    %c0_i32_0 = arith.constant 0 : i32
    %c0_i32_1 = arith.constant 0 : i32
    return %c0_i32, %c0_i32_0 : i32, i32
  }
  func.func @transform_18(%arg0: i32) -> (i32, i32) {
    %c0_i32 = arith.constant 0 : i32
    %c0_i32_0 = arith.constant 0 : i32
    %c0_i32_1 = arith.constant 0 : i32
    return %c0_i32, %c0_i32_0 : i32, i32
  }
  func.func @transform_19(%arg0: i32) -> (i32, i32) {
    %c0_i32 = arith.constant 0 : i32
    %c0_i32_0 = arith.constant 0 : i32
    %c0_i32_1 = arith.constant 0 : i32
    return %c0_i32, %c0_i32_0 : i32, i32
  }
  func.func @transform_20(%arg0: i32) -> (i32, i32) {
    %c0_i32 = arith.constant 0 : i32
    %c0_i32_0 = arith.constant 0 : i32
    %c0_i32_1 = arith.constant 0 : i32
    return %c0_i32, %c0_i32_0 : i32, i32
  }
  func.func @transform_21(%arg0: i32) -> (i32, i32) {
    %c0_i32 = arith.constant 0 : i32
    %c0_i32_0 = arith.constant 0 : i32
    %c0_i32_1 = arith.constant 0 : i32
    return %c0_i32, %c0_i32_0 : i32, i32
  }
  func.func @transform_22(%arg0: i32) -> (i32, i32) {
    %c0_i32 = arith.constant 0 : i32
    %c0_i32_0 = arith.constant 0 : i32
    %c0_i32_1 = arith.constant 0 : i32
    return %c0_i32, %c0_i32_0 : i32, i32
  }
  func.func @transform_23(%arg0: i32) -> (i32, i32) {
    %c0_i32 = arith.constant 0 : i32
    %c0_i32_0 = arith.constant 0 : i32
    %c0_i32_1 = arith.constant 0 : i32
    return %c0_i32, %c0_i32_0 : i32, i32
  }
  func.func @transform_24(%arg0: i32) -> (i32, i32) {
    %c0_i32 = arith.constant 0 : i32
    %c0_i32_0 = arith.constant 0 : i32
    %c0_i32_1 = arith.constant 0 : i32
    return %c0_i32, %c0_i32_0 : i32, i32
  }
  func.func @transform_25(%arg0: i32) -> (i32, i32) {
    %c0_i32 = arith.constant 0 : i32
    %c0_i32_0 = arith.constant 0 : i32
    %c0_i32_1 = arith.constant 0 : i32
    return %c0_i32, %c0_i32_0 : i32, i32
  }
  func.func @transform_26(%arg0: i32) -> (i32, i32) {
    %c0_i32 = arith.constant 0 : i32
    %c0_i32_0 = arith.constant 0 : i32
    %c0_i32_1 = arith.constant 0 : i32
    return %c0_i32, %c0_i32_0 : i32, i32
  }
  func.func @transform_27(%arg0: i32) -> (i32, i32) {
    %c0_i32 = arith.constant 0 : i32
    %c0_i32_0 = arith.constant 0 : i32
    %c0_i32_1 = arith.constant 0 : i32
    return %c0_i32, %c0_i32_0 : i32, i32
  }
  func.func @transform_28(%arg0: i32) -> (i32, i32, i32) {
    %c0_i32 = arith.constant 0 : i32
    %c0_i32_0 = arith.constant 0 : i32
    %c0_i32_1 = arith.constant 0 : i32
    %c0_i32_2 = arith.constant 0 : i32
    return %c0_i32, %c0_i32_0, %c0_i32_1 : i32, i32, i32
  }
  func.func @transform_29(%arg0: i32) -> (i32, i32, i32) {
    %c0_i32 = arith.constant 0 : i32
    %c0_i32_0 = arith.constant 0 : i32
    %c0_i32_1 = arith.constant 0 : i32
    %c0_i32_2 = arith.constant 0 : i32
    return %c0_i32, %c0_i32_0, %c0_i32_1 : i32, i32, i32
  }
  func.func @transform_30(%arg0: i32) -> (i32, i32, i32) {
    %c0_i32 = arith.constant 0 : i32
    %c0_i32_0 = arith.constant 0 : i32
    %c0_i32_1 = arith.constant 0 : i32
    %c0_i32_2 = arith.constant 0 : i32
    return %c0_i32, %c0_i32_0, %c0_i32_1 : i32, i32, i32
  }
  func.func @transform_31(%arg0: i32) -> (i32, i32, i32) {
    %c0_i32 = arith.constant 0 : i32
    %c0_i32_0 = arith.constant 0 : i32
    %c0_i32_1 = arith.constant 0 : i32
    %c0_i32_2 = arith.constant 0 : i32
    return %c0_i32, %c0_i32_0, %c0_i32_1 : i32, i32, i32
  }
  func.func @transform_32(%arg0: i32) -> (i32, i32, i32) {
    %c0_i32 = arith.constant 0 : i32
    %c0_i32_0 = arith.constant 0 : i32
    %c0_i32_1 = arith.constant 0 : i32
    %c0_i32_2 = arith.constant 0 : i32
    return %c0_i32, %c0_i32_0, %c0_i32_1 : i32, i32, i32
  }
  func.func @transform_33(%arg0: i32) -> (i32, i32, i32) {
    %c0_i32 = arith.constant 0 : i32
    %c0_i32_0 = arith.constant 0 : i32
    %c0_i32_1 = arith.constant 0 : i32
    %c0_i32_2 = arith.constant 0 : i32
    return %c0_i32, %c0_i32_0, %c0_i32_1 : i32, i32, i32
  }
  func.func @transform_34(%arg0: i32) -> (i32, i32, i32) {
    %c0_i32 = arith.constant 0 : i32
    %c0_i32_0 = arith.constant 0 : i32
    %c0_i32_1 = arith.constant 0 : i32
    %c0_i32_2 = arith.constant 0 : i32
    return %c0_i32, %c0_i32_0, %c0_i32_1 : i32, i32, i32
  }
  func.func @transform_35(%arg0: i32) -> (i32, i32, i32) {
    %c0_i32 = arith.constant 0 : i32
    %c0_i32_0 = arith.constant 0 : i32
    %c0_i32_1 = arith.constant 0 : i32
    %c0_i32_2 = arith.constant 0 : i32
    return %c0_i32, %c0_i32_0, %c0_i32_1 : i32, i32, i32
  }
  func.func @transform_36(%arg0: i32) -> (i32, i32, i32) {
    %c0_i32 = arith.constant 0 : i32
    %c0_i32_0 = arith.constant 0 : i32
    %c0_i32_1 = arith.constant 0 : i32
    %c0_i32_2 = arith.constant 0 : i32
    return %c0_i32, %c0_i32_0, %c0_i32_1 : i32, i32, i32
  }
  func.func @transform_37(%arg0: i32) -> (i32, i32) {
    %c0_i32 = arith.constant 0 : i32
    %c0_i32_0 = arith.constant 0 : i32
    %c0_i32_1 = arith.constant 0 : i32
    return %c0_i32, %c0_i32_0 : i32, i32
  }
  func.func @transform_38(%arg0: i32) -> (i32, i32) {
    %c0_i32 = arith.constant 0 : i32
    %c0_i32_0 = arith.constant 0 : i32
    %c0_i32_1 = arith.constant 0 : i32
    return %c0_i32, %c0_i32_0 : i32, i32
  }
  func.func @transform_39(%arg0: i32) -> (i32, i32, i32) {
    %c0_i32 = arith.constant 0 : i32
    %c0_i32_0 = arith.constant 0 : i32
    %c0_i32_1 = arith.constant 0 : i32
    return %arg0, %c0_i32, %c0_i32_0 : i32, i32, i32
  }
}

</mosaic_0001>

<bundles_post_ra>
// kernel: tile.14
= control target key start
LH: loop header
LB: loop body
LE: loop exit
PB: predicated region body
PF: predicated region fallthrough
CT: control target
= control target key end

     0   :  { %vm63_vm0 = vcmask 1047556   ;;  %s152_s30 = smov 48   ;;  %vm65_vm1 = vcmask 130048   ;;  %s153_s6 = smov 16   ;;  %vm80_vm2 = vcmask 523648   ;;  %vm97_vm3 = vcmask 392448   ;;  %s228_s0 = inlined_call_operand.vmem [shape: f32[12,4,16], index: 0, kind: input, shape index: {}]   ;;  %s229_s1 = inlined_call_operand.vmem [shape: f32[12,64], index: 1, kind: output, shape index: {}]  }
   0x1   :  { %v133_v0 = vld [vmem:[%s228_s0 + $0x2c] sm:$0xf]  ;;  %v134_v1 = vld [vmem:[%s228_s0 + $0x28] sm:$0xf]  ;;  %v135_v2 = vld [vmem:[%s228_s0 + $0x24] sm:$0xf] }
   0x2   :  { %9 = vst [vmem:[#allocation0 + $0x58] sm:$0xf] %v133_v0  ;;  %14 = vst [vmem:[#allocation0 + $0x50] sm:$0xf] %v134_v1  ;;  %v136_v3 = vld [vmem:[%s228_s0 + $0x20] sm:$0xf] }
   0x3   :  { %19 = vst [vmem:[#allocation0 + $0x48] sm:$0xf] %v135_v2  ;;  %v137_v4 = vld [vmem:[%s228_s0 + $0x1c] sm:$0xf]  ;;  %24 = vst [vmem:[#allocation0 + $0x40] sm:$0xf] %v136_v3 }
   0x4   :  { %29 = vst [vmem:[#allocation0 + $0x38] sm:$0xf] %v137_v4  ;;  %v138_v5 = vld [vmem:[%s228_s0 + $0x18] sm:$0xf]  ;;  %v139_v6 = vld [vmem:[%s228_s0 + $0x14] sm:$0xf] }
   0x5   :  { %v140_v7 = vld [vmem:[%s228_s0 + $0x10] sm:$0xf]  ;;  %34 = vst [vmem:[#allocation0 + $0x30] sm:$0xf] %v138_v5  ;;  %39 = vst [vmem:[#allocation0 + $0x28] sm:$0xf] %v139_v6 }
   0x6   :  { %44 = vst [vmem:[#allocation0 + $0x20] sm:$0xf] %v140_v7  ;;  %v141_v8 = vld [vmem:[%s228_s0 + $0xc] sm:$0xf]  ;;  %v142_v9 = vld [vmem:[%s228_s0 + $0x8] sm:$0xf] }
   0x7   :  { %v143_v10 = vld [vmem:[%s228_s0 + $0x4] sm:$0xf]  ;;  %49 = vst [vmem:[#allocation0 + $0x18] sm:$0xf] %v141_v8  ;;  %54 = vst [vmem:[#allocation0 + $0x10] sm:$0xf] %v142_v9 }
   0x8   :  { %58 = vst [vmem:[#allocation0 + $0x8] sm:$0xf] %v143_v10  ;;  %v59_v11 = vld [vmem:[%s228_s0] sm:$0xf]  ;;  %s151_s0 = smov 32   ;;  %vm114_vm4 = vcmask 261248  }
   0x9   :  { %60 = vst [vmem:[#allocation0] sm:$0xf] %v59_v11 }
   0xa   :  { %v100_v12 = vld [vmem:[#allocation0 + $0x42] ss:$8 sm:$0xf]   ;;  %v83_v13 = vld [vmem:[#allocation0 + $0x43] ss:$8 sm:$0xf]  }
   0xb   :  { %101 = vrot.lane.b32.xlu1 %v100_v12, %s151_s0  ;;  %84 = vrot.lane.b32.xlu0 %v83_v13, %s152_s30  ;;  %v68_v22 = vld [vmem:[#allocation0 + $0x40] ss:$8 sm:$0xf]   ;;  %v117_v25 = vld [vmem:[#allocation0 + $0x41] ss:$8 sm:$0xf]  }
   0xc   :  { %144 = vst.msk [vmem:[%s229_s1 + $0x8] sm:$0xf] %vm65_vm1, %v68_v22  }
   0xd   :  { %v92_v14 = vld [vmem:[#allocation0 + $0x2] ss:$8 sm:$0xf0]   ;;  %v75_v15 = vld [vmem:[#allocation0 + $0x3] ss:$8 sm:$0xf0]  }
   0xe   :  { %v109_v16 = vld [vmem:[#allocation0 + $0x1] ss:$8 sm:$0xf0]   ;;  %v62_v24 = vld [vmem:[#allocation0] ss:$8 sm:$0xf0]  }
  0x10   :  { %v90_v17 = vld [vmem:[#allocation0 + $0x2] ss:$8 sm:$0xf]   ;;  %v73_v18 = vld [vmem:[#allocation0 + $0x3] ss:$8 sm:$0xf]  }
  0x11   :  { %v94_v19 = vsel %vm63_vm0, %v92_v14, %v90_v17  ;;  %v77_v20 = vsel %vm63_vm0, %v75_v15, %v73_v18  ;;  %v107_v21 = vld [vmem:[#allocation0 + $0x1] ss:$8 sm:$0xf]   ;;  %v61_v23 = vld [vmem:[#allocation0] ss:$8 sm:$0xf]  }
  0x12   :  { %95 = vrot.lane.b32.xlu1 %v94_v19, %s151_s0  ;;  %78 = vrot.lane.b32.xlu0 %v77_v20, %s152_s30  ;;  %v111_v26 = vsel %vm63_vm0, %v109_v16, %v107_v21  ;;  %v64_v27 = vsel %vm63_vm0, %v62_v24, %v61_v23 }
  0x13   :  { %66 = vst.msk [vmem:[%s229_s1] sm:$0xff] %vm65_vm1, %v64_v27  }
  0x16   :  { %118 = vrot.lane.b32.xlu1 %v117_v25, %s153_s6  ;;  %112 = vrot.lane.b32.xlu0 %v111_v26, %s153_s6 }
  0x7d   :  { %v102_v28 = vpop.permute.xlu1 %101   ;;  %v85_v29 = vpop.permute.xlu0 %84  }
  0x7e   :  { %145 = vst.msk [vmem:[%s229_s1 + $0x8] sm:$0xf] %vm80_vm2, %v85_v29  }
  0x7f   :  { %146 = vst.msk [vmem:[%s229_s1 + $0x8] sm:$0xf] %vm97_vm3, %v102_v28  }
  0x84   :  { %v96_v30 = vpop.permute.xlu1 %95   ;;  %v79_v31 = vpop.permute.xlu0 %78  }
  0x85   :  { %81 = vst.msk [vmem:[%s229_s1] sm:$0xff] %vm80_vm2, %v79_v31  }
  0x86   :  { %98 = vst.msk [vmem:[%s229_s1] sm:$0xff] %vm97_vm3, %v96_v30  }
  0x88   :  { %v119_v32 = vpop.permute.xlu1 %118   ;;  %v113_v33 = vpop.permute.xlu0 %112  }
  0x89   :  { %147 = vst.msk [vmem:[%s229_s1 + $0x8] sm:$0xf] %vm114_vm4, %v119_v32   ;;  %115 = vst.msk [vmem:[%s229_s1] sm:$0xff] %vm114_vm4, %v113_v33  }

// kernel: non_causal_transformer_language.1
= control target key start
LH: loop header
LB: loop body
LE: loop exit
PB: predicated region body
PF: predicated region fallthrough
CT: control target
= control target key end

     0   :  { %s6416_s6 = smov 1   ;;  %s6417_s10 = smov 2   ;;  %s7630_s0 = inlined_call_operand.smem [shape: u32[40], index: -1, kind: input, shape index: {}] }
   0x1   :  { %s6471_s5 = sld [smem:[%s7630_s0]]   ;;  %s6418_s14 = smov 3  }
   0x2   :  { %s6476_s9 = sld [smem:[%s7630_s0 + %s6416_s6]]   ;;  %s6419_s18 = smov 4  }
   0x3   :  { %s6481_s13 = sld [smem:[%s7630_s0 + %s6417_s10]]   ;;  %s6420_s22 = smov 5  }
   0x4   :  { %s6486_s17 = sld [smem:[%s7630_s0 + %s6418_s14]]   ;;  %s6421_s26 = smov 6  }
   0x5   :  { %s6491_s21 = sld [smem:[%s7630_s0 + %s6419_s18]]   ;;  %s6422_s30 = smov 7  }
   0x6   :  { %s6496_s25 = sld [smem:[%s7630_s0 + %s6420_s22]]   ;;  %s6423_s4 = smov 8  }
   0x7   :  { %7658 = sst [smem:[#allocation2_spill]] %s6471_s5  ;;  %s6424_s10 = smov 9  }
   0x8   :  { %7659 = sst [smem:[#allocation3_spill]] %s6476_s9  ;;  %s6425_s15 = smov 10  }
   0x9   :  { %7660 = sst [smem:[#allocation4_spill]] %s6481_s13  ;;  %s6426_s20 = smov 11  }
   0xa   :  { %s6501_s29 = sld [smem:[%s7630_s0 + %s6421_s26]]   ;;  %s6427_s26 = smov 12  }
   0xb   :  { %s6506_s3 = sld [smem:[%s7630_s0 + %s6422_s30]]   ;;  %s6428_s1 = smov 13  }
   0xc   :  { %s6511_s8 = sld [smem:[%s7630_s0 + %s6423_s4]]   ;;  %s6429_s7 = smov 14  }
   0xd   :  { %s6516_s14 = sld [smem:[%s7630_s0 + %s6424_s10]]   ;;  %s6431_s22 = smov 16  }
   0xe   :  { %s6521_s19 = sld [smem:[%s7630_s0 + %s6425_s15]]   ;;  %s6430_s15 = smov 15  }
   0xf   :  { %s6526_s24 = sld [smem:[%s7630_s0 + %s6426_s20]]   ;;  %s6432_s28 = smov 17  }
  0x10   :  { %s6531_s30 = sld [smem:[%s7630_s0 + %s6427_s26]]  }
  0x11   :  { %7661 = sst [smem:[#allocation5_spill]] %s6506_s3 }
  0x12   :  { %7662 = sst [smem:[#allocation6_spill]] %s6511_s8 }
  0x13   :  { %7663 = sst [smem:[#allocation7_spill]] %s6516_s14 }
  0x14   :  { %7664 = sst [smem:[#allocation8_spill]] %s6521_s19 }
  0x15   :  { %7665 = sst [smem:[#allocation9_spill]] %s6526_s24 }
  0x16   :  { %7666 = sst [smem:[#allocation10_spill]] %s6531_s30 }
  0x17   :  { %s6536_s6 = sld [smem:[%s7630_s0 + %s6428_s1]]  }
  0x18   :  { %s6541_s12 = sld [smem:[%s7630_s0 + %s6429_s7]]   ;;  %s6433_s7 = smov 18  }
  0x19   :  { %s6546_s20 = sld [smem:[%s7630_s0 + %s6430_s15]]   ;;  %s6434_s15 = smov 19  }
  0x1a   :  { %s6551_s27 = sld [smem:[%s7630_s0 + %s6431_s22]]   ;;  %s6435_s22 = smov 20  }
  0x1b   :  { %s6556_s4 = sld [smem:[%s7630_s0 + %s6432_s28]]   ;;  %s6436_s28 = smov 21  }
  0x1c   :  { %s6561_s3 = sld [smem:[%s7630_s0 + %s6433_s7]]   ;;  %s6437_s7 = smov 22  }
  0x1d   :  { %7667 = sst [smem:[#allocation11_spill]] %s6536_s6 }
  0x1e   :  { %7668 = sst [smem:[#allocation12_spill]] %s6541_s12 }
  0x1f   :  { %7669 = sst [smem:[#allocation13_spill]] %s6546_s20 }
  0x20   :  { %7670 = sst [smem:[#allocation14_spill]] %s6551_s27 }
  0x21   :  { %7671 = sst [smem:[#allocation15_spill]] %s6556_s4 }
  0x22   :  { %7672 = sst [smem:[#allocation16_spill]] %s6561_s3 }
  0x23   :  { %s6566_s20 = sld [smem:[%s7630_s0 + %s6434_s15]]   ;;  %s6438_s15 = smov 23  }
  0x24   :  { %s6571_s27 = sld [smem:[%s7630_s0 + %s6435_s22]]   ;;  %s6439_s22 = smov 24  }
  0x25   :  { %s6576_s12 = sld [smem:[%s7630_s0 + %s6436_s28]]   ;;  %s6440_s28 = smov 25  }
  0x26   :  { %s6581_s6 = sld [smem:[%s7630_s0 + %s6437_s7]]   ;;  %s6441_s7 = smov 26  }
  0x27   :  { %s6586_s8 = sld [smem:[%s7630_s0 + %s6438_s15]]   ;;  %s6442_s15 = smov 27  }
  0x28   :  { %s6591_s19 = sld [smem:[%s7630_s0 + %s6439_s22]]   ;;  %s6443_s22 = smov 28  }
  0x29   :  { %s6596_s30 = sld [smem:[%s7630_s0 + %s6440_s28]]   ;;  %s6444_s28 = smov 29  }
  0x2a   :  { %s6601_s14 = sld [smem:[%s7630_s0 + %s6441_s7]]   ;;  %s6445_s7 = smov 30  }
  0x2b   :  { %7673 = sst [smem:[#allocation17_spill]] %s6576_s12 }
  0x2c   :  { %7674 = sst [smem:[#allocation18_spill]] %s6581_s6 }
  0x2d   :  { %7675 = sst [smem:[#allocation19_spill]] %s6586_s8 }
  0x2e   :  { %s6606_s24 = sld [smem:[%s7630_s0 + %s6442_s15]]   ;;  %s6446_s15 = smov 31  }
  0x2f   :  { %s6611_s4 = sld [smem:[%s7630_s0 + %s6443_s22]]   ;;  %s6447_s22 = smov 32  }
  0x30   :  { %7676 = sst [smem:[#allocation20_spill]] %s6601_s14 }
  0x31   :  { %s6616_s13 = sld [smem:[%s7630_s0 + %s6444_s28]]   ;;  %s6448_s28 = smov 33  }
  0x32   :  { %s6621_s14 = sld [smem:[%s7630_s0 + %s6445_s7]]   ;;  %s6449_s7 = smov 34  }
  0x34   :  { %7677 = sst [smem:[#allocation21_spill]] %s6606_s24 }
  0x35   :  { %7678 = sst [smem:[#allocation22_spill]] %s6611_s4 }
  0x36   :  { %s6626_s24 = sld [smem:[%s7630_s0 + %s6446_s15]]   ;;  %s6450_s15 = smov 35  }
  0x37   :  { %7679 = sst [smem:[#allocation23_spill]] %s6616_s13 }
  0x38   :  { %7680 = sst [smem:[#allocation24_spill]] %s6621_s14 }
  0x39   :  { %s6631_s4 = sld [smem:[%s7630_s0 + %s6447_s22]]   ;;  %s6451_s22 = smov 36  }
  0x3a   :  { %s6636_s13 = sld [smem:[%s7630_s0 + %s6448_s28]]   ;;  %s6452_s28 = smov 37  }
  0x3b   :  { %s6641_s14 = sld [smem:[%s7630_s0 + %s6449_s7]]   ;;  %s6453_s7 = smov 38  }
  0x3c   :  { %7681 = sst [smem:[#allocation25_spill]] %s6626_s24 }
  0x3d   :  { %s6646_s24 = sld [smem:[%s7630_s0 + %s6450_s15]]   ;;  %s6454_s15 = smov 39  }
  0x3f   :  { %7682 = sst [smem:[#allocation26_spill]] %s6631_s4 }
  0x40   :  { %7683 = sst [smem:[#allocation27_spill]] %s6636_s13 }
  0x41   :  { %7684 = sst [smem:[#allocation28_spill]] %s6641_s14 }
  0x42   :  { %s6651_s4 = sld [smem:[%s7630_s0 + %s6451_s22]]   ;;  %s6668_s22 = smov 0  }
  0x43   :  { %7685 = sst [smem:[#allocation29_spill]] %s6646_s24 }
  0x44   :  { %s6656_s13 = sld [smem:[%s7630_s0 + %s6452_s28]]  }
  0x45   :  { %s6661_s14 = sld [smem:[%s7630_s0 + %s6453_s7]]  }
  0x46   :  { %s6666_s24 = sld [smem:[%s7630_s0 + %s6454_s15]]  }
  0x47 LB: > { %s5289_s23 = sadd.s32 4294967295, %s6414_s22   ;;  %p5293_p0 = scmp.ge.s32.totalorder %s6414_s22, 1  ;;  %s6414_s22 = sphi %s6668_s22, %s89_s22  }
  0x48   : > { %p1104_p1 = scmp.lt.s32.totalorder %s6414_s22, 3 }
  0x4a   : > { %p1105_p2 = pnand %p5293_p0, %p1104_p1 }
  0x4b   : > { %p1212_p3 = scmp.lt.s32.totalorder (!%p1105_p2), %s5289_s23, 1  ;;  %s7686_s5 = sld [smem:[#allocation2_spill]] (!%p1105_p2) }
  0x4c   : > { %1108 = sbr.rel (%p1105_p2) target bundleno = 8405 (0x20d5), region = 176  ;;  %s7687_s3 = sld [smem:[#allocation16_spill]] (!%p1105_p2) }
  0x4d   : > { %s7688_s12 = sld [smem:[#allocation17_spill]] (!%p1105_p2) }
  0x4e   : > { %s7689_s6 = sld [smem:[#allocation18_spill]] (!%p1105_p2) }
  0x4f   : > { %s7690_s8 = sld [smem:[#allocation19_spill]] (!%p1105_p2) }
  0x50   : > { %s7691_s9 = sld [smem:[#allocation3_spill]] (!%p1105_p2) }
  0x51   : > { %s7718_s23 = smov (!%p1212_p3, %s5289_s23), 1  ;;  %vm1241_vm0 = vcmask 1042432   ;;  %v1355_v8 = vld [vmem:[%s6571_s27 + $0xf8] sm:$0xff]  ;;  %v1354_v9 = vld [vmem:[%s6571_s27 + $0xf0] sm:$0xff]  ;;  %v1353_v10 = vld [vmem:[%s6571_s27 + $0xe8] sm:$0xff]  ;;  %v1255_v51 = vlaneseq  ;;  %vm1737_vm1 = vcmask 256000  }
  0x52   : > { %s6210_s0 = smul.u32 12, %s7718_s23  ;;  %1435 = vmatprep.subr.mxu0 %v1355_v8  ;;  %v1352_v11 = vld [vmem:[%s6571_s27 + $0xe0] sm:$0xff]  ;;  %v1351_v12 = vld [vmem:[%s6571_s27 + $0xd8] sm:$0xff]  ;;  %v1350_v13 = vld [vmem:[%s6571_s27 + $0xd0] sm:$0xff]  ;;  %v6455_v49 = vmov 839922192  }
  0x53   : > { %1436 = vmatpush1.msra.mxu0 %v1354_v9  ;;  %v1349_v14 = vld [vmem:[%s6571_s27 + $0xc8] sm:$0xff]  ;;  %v1348_v15 = vld [vmem:[%s6571_s27 + $0xc0] sm:$0xff]  ;;  %v1347_v16 = vld [vmem:[%s6571_s27 + $0xb8] sm:$0xff]  ;;  %v1253_v50 = vunpack.c.l.s4 %v6455_v49  ;;  %v6732_v53 = vshrl.u32 %v1255_v51, 7  ;;  %s5296_s28 = sshll.u32 %s7718_s23, 3  ;;  %s5295_s2 = sshll.u32 %s7718_s23, 2 }
  0x54   : > { %s1216_s26 = scalar_lea.vmem %s7686_s5, %s6210_s0  ;;  %1437 = vmatprep.subr.mxu0 %v1353_v10  ;;  %v1346_v17 = vld [vmem:[%s6571_s27 + $0xb0] sm:$0xff]  ;;  %v1345_v18 = vld [vmem:[%s6571_s27 + $0xa8] sm:$0xff]  ;;  %v1344_v19 = vld [vmem:[%s6571_s27 + $0xa0] sm:$0xff]  ;;  %s1228_s1 = scalar_lea.vmem %s6486_s17, %s5296_s28  ;;  %vm1801_vm2 = vcmask 1043456   ;;  %vm1794_vm3 = vcmask 31744   ;;  %vm1880_vm4 = vcmask 23552  }
  0x55   : > { %v6680_v0 = vld [vmem:[%s1216_s26] sm:$0x77]  ;;  %v6682_v1 = vld [vmem:[%s1216_s26 + $0x8] sm:$0x7]  ;;  %1438 = vmatpush1.msra.mxu0 %v1352_v11  ;;  %v1343_v20 = vld [vmem:[%s6571_s27 + $0x98] sm:$0xff]  ;;  %v1254_v52 = vunpack.c.0.s8 %v1253_v50  ;;  %s7692_s7 = sld [smem:[#allocation4_spill]] }
  0x56   : > { %v1239_v2 = vcombine.high %v6680_v0, %v6680_v0  ;;  %v1242_v3 = vsel %vm1241_vm0, %v6680_v0, 0.0  ;;  %v1245_v5 = vsel %vm1241_vm0, %v6682_v1, 0.0  ;;  %1439 = vmatprep.subr.mxu0 %v1351_v12  ;;  %v1419_v21 = vld [vmem:[%s6571_s27 + $0x2f8] sm:$0xff]  ;;  %v1418_v22 = vld [vmem:[%s6571_s27 + $0x2f0] sm:$0xff]  ;;  %v1417_v24 = vld [vmem:[%s6571_s27 + $0x2e8] sm:$0xff]  ;;  %s1220_s10 = scalar_lea.vmem %s7691_s9, %s5295_s2  ;;  %s7693_s11 = sld [smem:[#allocation15_spill]] }
  0x57   : > { %1440 = vmatpush1.msra.mxu0 %v1350_v13  ;;  %v1342_v23 = vld [vmem:[%s6571_s27 + $0x90] sm:$0xff]  ;;  %1506 = vmatprep.subr.mxu1 %v1419_v21  ;;  %v1341_v25 = vld [vmem:[%s6571_s27 + $0x88] sm:$0xff]  ;;  %v1416_v26 = vld [vmem:[%s6571_s27 + $0x2e0] sm:$0xff]  ;;  %v6735_v54 = vsub.s32 %v1254_v52, %v6732_v53  ;;  %vm1967_vm5 = vcmask 39936   ;;  %s7694_s16 = sld [smem:[#allocation20_spill]]  ;;  %vm1974_vm6 = vcmask 1044480  }
  0x58   : > { %v1243_v4 = vsel %vm1241_vm0, %v1239_v2, 0.0  ;;  %1441 = vmatprep.subr.mxu0 %v1349_v14  ;;  %1507 = vmatpush1.msra.mxu1 %v1418_v22  ;;  %v1415_v27 = vld [vmem:[%s6571_s27 + $0x2d8] sm:$0xff]  ;;  %v1340_v28 = vld [vmem:[%s6571_s27 + $0x80] sm:$0xff]  ;;  %v1414_v29 = vld [vmem:[%s6571_s27 + $0x2d0] sm:$0xff]  ;;  %s7695_s18 = sld [smem:[#allocation21_spill]]  ;;  %vm2101_vm7 = vcmask 257024  }
  0x59   : > { %v1244_v6 = vadd.f32 %v1243_v4, %v1242_v3  ;;  %1442 = vmatpush1.msra.mxu0 %v1348_v15  ;;  %1508 = vmatprep.subr.mxu1 %v1417_v24  ;;  %v1339_v30 = vld [vmem:[%s6571_s27 + $0x78] sm:$0xff]  ;;  %v1338_v31 = vld [vmem:[%s6571_s27 + $0x70] sm:$0xff]  ;;  %v1337_v32 = vld [vmem:[%s6571_s27 + $0x68] sm:$0xff]  ;;  %vm2097_vm8 = vcmask 261120   ;;  %s7696_s0 = sld [smem:[#allocation22_spill]]  ;;  %vm2380_vm9 = vcmask 125952  }
  0x5a   : > { %1443 = vmatprep.subr.mxu0 %v1347_v16  ;;  %1509 = vmatpush1.msra.mxu1 %v1416_v26  ;;  %v1336_v33 = vld [vmem:[%s6571_s27 + $0x60] sm:$0xff]  ;;  %v1335_v34 = vld [vmem:[%s6571_s27 + $0x58] sm:$0xff]  ;;  %v1334_v35 = vld [vmem:[%s6571_s27 + $0x50] sm:$0xff]  ;;  %s7697_s26 = sld [smem:[#allocation9_spill]]  ;;  %vm2376_vm10 = vcmask 130048   ;;  %vm6462_vm11 = vmmov 0  }
  0x5b   : > { %v1246_v7 = vadd.f32 %v1245_v5, %v1244_v6  ;;  %1444 = vmatpush1.msra.mxu0 %v1346_v17  ;;  %1510 = vmatprep.subr.mxu1 %v1415_v27  ;;  %v1333_v36 = vld [vmem:[%s6571_s27 + $0x48] sm:$0xff]  ;;  %v1332_v37 = vld [vmem:[%s6571_s27 + $0x40] sm:$0xff]  ;;  %v1331_v38 = vld [vmem:[%s6571_s27 + $0x38] sm:$0xff]  ;;  %s1224_s15 = scalar_lea.vmem %s7692_s7, %s5296_s28  ;;  %s7698_s28 = sld [smem:[#allocation23_spill]]  ;;  %vm2270_vm12 = vcmask 523264   ;;  %vm2406_vm13 = vcmask 97280  }
  0x5c   : > { %1445 = vmatprep.subr.mxu0 %v1345_v18  ;;  %1511 = vmatpush1.msra.mxu1 %v1414_v29  ;;  %v1330_v39 = vld [vmem:[%s6571_s27 + $0x30] sm:$0xff]  ;;  %v1329_v40 = vld [vmem:[%s6571_s27 + $0x28] sm:$0xff]  ;;  %v1328_v41 = vld [vmem:[%s6571_s27 + $0x20] sm:$0xff]  ;;  %s7699_s2 = sld [smem:[#allocation7_spill]] }
  0x5d   : > { %1247 = vadd.xlane.f32.xlu0 %v1246_v7  ;;  %1446 = vmatpush1.msra.mxu0 %v1344_v19  ;;  %v1327_v42 = vld [vmem:[%s6571_s27 + $0x18] sm:$0xff]  ;;  %v1326_v43 = vld [vmem:[%s6571_s27 + $0x10] sm:$0xff]  ;;  %v1325_v44 = vld [vmem:[%s6571_s27 + $0x8] sm:$0xff]  ;;  %s7700_s7 = sld [smem:[#allocation10_spill]] }
  0x5e   : > { %1447 = vmatprep.subr.mxu0 %v1343_v20  ;;  %v1324_v45 = vld [vmem:[%s6571_s27] sm:$0xff]  ;;  %v1387_v46 = vld [vmem:[%s6571_s27 + $0x1f8] sm:$0xff]  ;;  %v1386_v47 = vld [vmem:[%s6571_s27 + $0x1f0] sm:$0xff]  ;;  %s7709_s5 = sld [smem:[#allocation5_spill]] }
  0x5f   : > { %1448 = vmatpush1.msra.mxu0 %v1342_v23  ;;  %v1385_v48 = vld [vmem:[%s6571_s27 + $0x1e8] sm:$0xff]  ;;  %v1384_v4 = vld [vmem:[%s6571_s27 + $0x1e0] sm:$0xff]  ;;  %v1383_v6 = vld [vmem:[%s6571_s27 + $0x1d8] sm:$0xff]  ;;  %s7712_s9 = sld [smem:[#allocation29_spill]] }
  0x60   : > { %1449 = vmatprep.subr.mxu0 %v1341_v25  ;;  %v1413_v5 = vld [vmem:[%s6571_s27 + $0x2c8] sm:$0xff]  ;;  %v1412_v7 = vld [vmem:[%s6571_s27 + $0x2c0] sm:$0xff]  ;;  %v1382_v8 = vld [vmem:[%s6571_s27 + $0x1d0] sm:$0xff] }
  0x61   : > { %1450 = vmatpush1.msra.mxu0 %v1340_v28  ;;  %1512 = vmatprep.subr.mxu1 %v1413_v5  ;;  %v1411_v9 = vld [vmem:[%s6571_s27 + $0x2b8] sm:$0xff]  ;;  %v1381_v10 = vld [vmem:[%s6571_s27 + $0x1c8] sm:$0xff]  ;;  %v1410_v11 = vld [vmem:[%s6571_s27 + $0x2b0] sm:$0xff] }
  0x62   : > { %1451 = vmatprep.subr.mxu0 %v1339_v30  ;;  %1513 = vmatpush1.msra.mxu1 %v1412_v7  ;;  %v1380_v12 = vld [vmem:[%s6571_s27 + $0x1c0] sm:$0xff]  ;;  %v1409_v13 = vld [vmem:[%s6571_s27 + $0x2a8] sm:$0xff]  ;;  %v1379_v14 = vld [vmem:[%s6571_s27 + $0x1b8] sm:$0xff]  ;;  %v1299_v7 = vsub.s32 2, %v6732_v53 }
  0x63   : > { %1452 = vmatpush1.msra.mxu0 %v1338_v31  ;;  %1514 = vmatprep.subr.mxu1 %v1411_v9  ;;  %v1408_v15 = vld [vmem:[%s6571_s27 + $0x2a0] sm:$0xff]  ;;  %v1378_v16 = vld [vmem:[%s6571_s27 + $0x1b0] sm:$0xff]  ;;  %v1407_v17 = vld [vmem:[%s6571_s27 + $0x298] sm:$0xff] }
  0x64   : > { %1453 = vmatprep.subr.mxu0 %v1337_v32  ;;  %1515 = vmatpush1.msra.mxu1 %v1410_v11  ;;  %v1377_v18 = vld [vmem:[%s6571_s27 + $0x1a8] sm:$0xff]  ;;  %v1406_v19 = vld [vmem:[%s6571_s27 + $0x290] sm:$0xff]  ;;  %v1376_v20 = vld [vmem:[%s6571_s27 + $0x1a0] sm:$0xff] }
  0x65   : > { %1454 = vmatpush1.msra.mxu0 %v1336_v33  ;;  %1516 = vmatprep.subr.mxu1 %v1409_v13  ;;  %v1405_v21 = vld [vmem:[%s6571_s27 + $0x288] sm:$0xff]  ;;  %v1375_v22 = vld [vmem:[%s6571_s27 + $0x198] sm:$0xff]  ;;  %v1404_v23 = vld [vmem:[%s6571_s27 + $0x280] sm:$0xff] }
  0x66   : > { %1455 = vmatprep.subr.mxu0 %v1335_v34  ;;  %1517 = vmatpush1.msra.mxu1 %v1408_v15  ;;  %v1374_v24 = vld [vmem:[%s6571_s27 + $0x190] sm:$0xff]  ;;  %v1403_v25 = vld [vmem:[%s6571_s27 + $0x278] sm:$0xff]  ;;  %v1373_v26 = vld [vmem:[%s6571_s27 + $0x188] sm:$0xff] }
  0x67   : > { %1456 = vmatpush1.msra.mxu0 %v1334_v35  ;;  %1518 = vmatprep.subr.mxu1 %v1407_v17  ;;  %v1402_v27 = vld [vmem:[%s6571_s27 + $0x270] sm:$0xff]  ;;  %v1372_v28 = vld [vmem:[%s6571_s27 + $0x180] sm:$0xff]  ;;  %v1401_v29 = vld [vmem:[%s6571_s27 + $0x268] sm:$0xff] }
  0x68   : > { %1457 = vmatprep.subr.mxu0 %v1333_v36  ;;  %1519 = vmatpush1.msra.mxu1 %v1406_v19  ;;  %v1371_v30 = vld [vmem:[%s6571_s27 + $0x178] sm:$0xff]  ;;  %v1400_v31 = vld [vmem:[%s6571_s27 + $0x260] sm:$0xff]  ;;  %v1370_v32 = vld [vmem:[%s6571_s27 + $0x170] sm:$0xff] }
  0x69   : > { %1458 = vmatpush1.msra.mxu0 %v1332_v37  ;;  %1520 = vmatprep.subr.mxu1 %v1405_v21  ;;  %v1399_v33 = vld [vmem:[%s6571_s27 + $0x258] sm:$0xff]  ;;  %v1369_v34 = vld [vmem:[%s6571_s27 + $0x168] sm:$0xff]  ;;  %v1398_v35 = vld [vmem:[%s6571_s27 + $0x250] sm:$0xff] }
  0x6a   : > { %1459 = vmatprep.subr.mxu0 %v1331_v38  ;;  %1521 = vmatpush1.msra.mxu1 %v1404_v23  ;;  %v1368_v36 = vld [vmem:[%s6571_s27 + $0x160] sm:$0xff]  ;;  %v1397_v37 = vld [vmem:[%s6571_s27 + $0x248] sm:$0xff]  ;;  %v1367_v38 = vld [vmem:[%s6571_s27 + $0x158] sm:$0xff] }
  0x6b   : > { %1460 = vmatpush1.msra.mxu0 %v1330_v39  ;;  %1522 = vmatprep.subr.mxu1 %v1403_v25  ;;  %v1396_v39 = vld [vmem:[%s6571_s27 + $0x240] sm:$0xff]  ;;  %v1391_v49 = vld [vmem:[%s6571_s27 + $0x218] sm:$0xff]  ;;  %v1361_v50 = vld [vmem:[%s6571_s27 + $0x128] sm:$0xff] }
  0x6c   : > { %1461 = vmatprep.subr.mxu0 %v1329_v40  ;;  %1523 = vmatpush1.msra.mxu1 %v1402_v27  ;;  %v1366_v40 = vld [vmem:[%s6571_s27 + $0x150] sm:$0xff]  ;;  %v1360_v52 = vld [vmem:[%s6571_s27 + $0x120] sm:$0xff] }
  0x6d   : > { %1462 = vmatpush1.msra.mxu0 %v1328_v41  ;;  %1524 = vmatprep.subr.mxu1 %v1401_v29  ;;  %v1395_v41 = vld [vmem:[%s6571_s27 + $0x238] sm:$0xff]  ;;  %v1390_v51 = vld [vmem:[%s6571_s27 + $0x210] sm:$0xff]  ;;  %v1236_v5 = vld [vmem:[%s7687_s3] sm:$0x7]  ;;  %s7708_s3 = sld [smem:[#allocation25_spill]] }
  0x6e   : > { %1463 = vmatprep.subr.mxu0 %v1327_v42  ;;  %1525 = vmatpush1.msra.mxu1 %v1400_v31  ;;  %v1365_v42 = vld [vmem:[%s6571_s27 + $0x148] sm:$0xff] }
  0x6f   : > { %1464 = vmatpush1.msra.mxu0 %v1326_v43  ;;  %1526 = vmatprep.subr.mxu1 %v1399_v33  ;;  %v1394_v43 = vld [vmem:[%s6571_s27 + $0x230] sm:$0xff] }
  0x70   : > { %1465 = vmatprep.subr.mxu0 %v1325_v44  ;;  %1527 = vmatpush1.msra.mxu1 %v1398_v35  ;;  %v1364_v44 = vld [vmem:[%s6571_s27 + $0x140] sm:$0xff]  ;;  %v1657_v35 = vld [vmem:[%s6591_s19 + $0xf8] sm:$0xff] }
  0x71   : > { %1466 = vmatpush1.msra.mxu0 %v1324_v45  ;;  %1528 = vmatprep.subr.mxu1 %v1397_v37  ;;  %v1393_v45 = vld [vmem:[%s6571_s27 + $0x228] sm:$0xff]  ;;  %v1656_v37 = vld [vmem:[%s6591_s19 + $0xf0] sm:$0xff] }
  0x72   : > { %1467 = vmatprep.subr.mxu0 %v1387_v46  ;;  %1529 = vmatpush1.msra.mxu1 %v1396_v39  ;;  %v1363_v46 = vld [vmem:[%s6571_s27 + $0x138] sm:$0xff]  ;;  %v1655_v39 = vld [vmem:[%s6591_s19 + $0xe8] sm:$0xff] }
  0x73   : > { %1468 = vmatpush2.msra.mxu0 %v1386_v47  ;;  %1530 = vmatprep.subr.mxu1 %v1395_v41  ;;  %v1392_v47 = vld [vmem:[%s6571_s27 + $0x220] sm:$0xff] }
  0x74   : > { %1469 = vmatprep.subr.mxu0 %v1385_v48  ;;  %1531 = vmatpush1.msra.mxu1 %v1394_v43  ;;  %v1362_v48 = vld [vmem:[%s6571_s27 + $0x130] sm:$0xff]  ;;  %v1654_v41 = vld [vmem:[%s6591_s19 + $0xe0] sm:$0xff] }
  0x75   : > { %1470 = vmatpush2.msra.mxu0 %v1384_v4  ;;  %1532 = vmatprep.subr.mxu1 %v1393_v45  ;;  %v6811_v4 = vsub.s32 1, %v6732_v53 }
  0x76   : > { %1471 = vmatprep.subr.mxu0 %v1383_v6  ;;  %1533 = vmatpush1.msra.mxu1 %v1392_v47  ;;  %v1237_v6 = vld [vmem:[%s6566_s20] sm:$0x7] }
  0x77   : > { %1472 = vmatpush2.msra.mxu0 %v1382_v8  ;;  %1534 = vmatprep.subr.mxu1 %v1391_v49  ;;  %v1296_v9 = vrot.slane %v1236_v5, %v6811_v4  ;;  %v1314_v11 = vrot.slane %v1237_v6, %v6811_v4  ;;  %v1318_v17 = vrot.slane %v1237_v6, %v1299_v7 }
  0x78   : > { %1473 = vmatprep.subr.mxu0 %v1381_v10  ;;  %1535 = vmatpush1.msra.mxu1 %v1390_v51  ;;  %v1638_v51 = vld [vmem:[%s6591_s19 + $0x60] sm:$0xff] }
  0x79   : > { %1474 = vmatpush2.msra.mxu0 %v1380_v12 }
  0x7a   : > { %1475 = vmatprep.subr.mxu0 %v1379_v14  ;;  %v1300_v14 = vrot.slane %v1236_v5, %v1299_v7  ;;  %v1647_v7 = vld [vmem:[%s6591_s19 + $0xa8] sm:$0xff] }
  0x7b   : > { %1476 = vmatpush2.msra.mxu0 %v1378_v16 }
  0x7c   : > { %1477 = vmatprep.subr.mxu0 %v1377_v18 }
  0x7d   : > { %1478 = vmatpush2.msra.mxu0 %v1376_v20 }
  0x7e   : > { %1479 = vmatprep.subr.mxu0 %v1375_v22 }
  0x7f   : > { %1480 = vmatpush2.msra.mxu0 %v1374_v24  ;;  %v1420_v24 = vld [vmem:[%s7688_s12] sm:$0x3]  ;;  %s7713_s12 = sld [smem:[#allocation28_spill]] }
  0x80   : > { %1481 = vmatprep.subr.mxu0 %v1373_v26 }
  0x81   : > { %1482 = vmatpush2.msra.mxu0 %v1372_v28 }
  0x82   : > { %1483 = vmatprep.subr.mxu0 %v1371_v30 }
  0x83   : > { %1484 = vmatpush2.msra.mxu0 %v1370_v32 }
  0x84   : > { %1485 = vmatprep.subr.mxu0 %v1369_v34 }
  0x85   : > { %1486 = vmatpush2.msra.mxu0 %v1368_v36  ;;  %v1641_v36 = vld [vmem:[%s6591_s19 + $0x78] sm:$0xff] }
  0x86   : > { %1487 = vmatprep.subr.mxu0 %v1367_v38  ;;  %v1640_v38 = vld [vmem:[%s6591_s19 + $0x70] sm:$0xff] }
  0x87   : > { %1488 = vmatpush2.msra.mxu0 %v1366_v40  ;;  %v1639_v40 = vld [vmem:[%s6591_s19 + $0x68] sm:$0xff] }
  0x88   : > { %1489 = vmatprep.subr.mxu0 %v1365_v42 }
  0x89   : > { %1490 = vmatpush2.msra.mxu0 %v1364_v44 }
  0x8a   : > { %1491 = vmatprep.subr.mxu0 %v1363_v46 }
  0x8b   : > { %1492 = vmatpush2.msra.mxu0 %v1362_v48 }
  0x8c   : > { %1493 = vmatprep.subr.mxu0 %v1361_v50 }
  0x8d   : > { %1494 = vmatpush2.msra.mxu0 %v1360_v52  ;;  %v1653_v52 = vld [vmem:[%s6591_s19 + $0xd8] sm:$0xff] }
  0xe6   : > { %v1248_v55 = vpop.xlane.xlu0 %1247 }
  0xe7   : > { %v1250_v56 = vmul.f32 0.0026041667, %v1248_v55  ;;  %v1389_v55 = vld [vmem:[%s6571_s27 + $0x208] sm:$0xff] }
  0xe8   : > { %1536 = vmatprep.subr.mxu1 %v1389_v55  ;;  %v1637_v55 = vld [vmem:[%s6591_s19 + $0x58] sm:$0xff] }
  0xe9   : > { %v1258_v57 = vrot.slane %v1250_v56, %v6735_v54  ;;  %v1359_v56 = vld [vmem:[%s6571_s27 + $0x118] sm:$0xff] }
  0xea   : > { %1495 = vmatprep.subr.mxu0 %v1359_v56  ;;  %v1652_v56 = vld [vmem:[%s6591_s19 + $0xd0] sm:$0xff] }
  0xeb   : > { %v6739_v58 = vsub.f32 %v6680_v0, %v1258_v57  ;;  %v6742_v59 = vsub.f32 %v6682_v1, %v1258_v57  ;;  %v1388_v57 = vld [vmem:[%s6571_s27 + $0x200] sm:$0xff] }
  0xec   : > { %1537 = vmatpush1.msra.mxu1 %v1388_v57  ;;  %v1636_v57 = vld [vmem:[%s6591_s19 + $0x50] sm:$0xff] }
  0xed   : > { %v1262_v60 = vmul.f32 %v6739_v58, %v6739_v58  ;;  %v1263_v61 = vmul.f32 %v6742_v59, %v6742_v59  ;;  %5484 = vmatprep.subr.mxu1 %v1657_v35 }
  0xef   : > { %v1265_v62 = vcombine.high %v1262_v60, %v1262_v60  ;;  %v1267_v63 = vsel %vm1241_vm0, %v1262_v60, 0.0  ;;  %v1270_v0 = vsel %vm1241_vm0, %v1263_v61, 0.0  ;;  %v1358_v60 = vld [vmem:[%s6571_s27 + $0x110] sm:$0xff]  ;;  %v6456_v61 = vmov 0.0  }
  0xf0   : > { %1570 = vmatprep.mubr.f32.mxu1 %v6456_v61  ;;  %1496 = vmatpush2.msra.mxu0 %v1358_v60  ;;  %v1651_v60 = vld [vmem:[%s6591_s19 + $0xc8] sm:$0xff] }
  0xf1   : > { %v1268_v2 = vsel %vm1241_vm0, %v1265_v62, 0.0  ;;  %v1357_v62 = vld [vmem:[%s6571_s27 + $0x108] sm:$0xff] }
  0xf2   : > { %v1269_v3 = vadd.f32 %v1268_v2, %v1267_v63  ;;  %v1356_v63 = vld [vmem:[%s6571_s27 + $0x100] sm:$0xff]  ;;  %1497 = vmatprep.subr.mxu0 %v1357_v62  ;;  %v1635_v62 = vld [vmem:[%s6591_s19 + $0x48] sm:$0xff] }
  0xf3   : > { %1498 = vmatpush2.msra.mxu0 %v1356_v63  ;;  %v1650_v63 = vld [vmem:[%s6591_s19 + $0xc0] sm:$0xff] }
  0xf4   : > { %v1271_v1 = vadd.f32 %v1270_v0, %v1269_v3 }
  0xf6   : > { %1272 = vadd.xlane.f32.xlu0 %v1271_v1  ;;  %v6808_v1 = vsub.s32 0, %v6732_v53 }
  0xf8   : > { %v1292_v8 = vrot.slane %v1236_v5, %v6808_v1  ;;  %v1310_v10 = vrot.slane %v1237_v6, %v6808_v1  ;;  %v1648_v5 = vld [vmem:[%s6591_s19 + $0xb0] sm:$0xff] }
  0xf9   : > { %v1632_v6 = vld [vmem:[%s6591_s19 + $0x30] sm:$0xff] }
  0xfa   : > { %v1302_v15 = vcombine.low %v1292_v8, %v1296_v9  ;;  %v1320_v53 = vcombine.low %v1310_v10, %v1314_v11  ;;  %v1631_v8 = vld [vmem:[%s6591_s19 + $0x28] sm:$0xff]  ;;  %v1646_v9 = vld [vmem:[%s6591_s19 + $0xa0] sm:$0xff]  ;;  %v1645_v11 = vld [vmem:[%s6591_s19 + $0x98] sm:$0xff] }
  0xfb   : > { %v1630_v10 = vld [vmem:[%s6591_s19 + $0x20] sm:$0xff] }
 0x17f   : > { %v1273_v2 = vpop.xlane.xlu0 %1272 }
 0x180   : > { %v1274_v3 = vmul.f32 0.0026041667, %v1273_v2  ;;  %v1634_v2 = vld [vmem:[%s6591_s19 + $0x40] sm:$0xff] }
 0x182   : > { %v1275_v0 = vadd.f32 1e-05, %v1274_v3  ;;  %v1649_v3 = vld [vmem:[%s6591_s19 + $0xb8] sm:$0xff] }
 0x184   : > { %6269 = vrsqrt.f32 %v1275_v0  ;;  %v1633_v0 = vld [vmem:[%s6591_s19 + $0x38] sm:$0xff] }
 0x191   : > { %v6270_v12 = vpop.eup %6269 }
 0x192   : > { %v1284_v13 = vrot.slane %v6270_v12, %v6735_v54  ;;  %v1425_v54 = vrot.slane %v1420_v24, %v6808_v1  ;;  %v1629_v12 = vld [vmem:[%s6591_s19 + $0x18] sm:$0xff] }
 0x194   : > { %v1287_v16 = vmul.f32 %v1284_v13, %v6742_v59  ;;  %v1286_v18 = vmul.f32 %v1284_v13, %v6739_v58  ;;  %v1429_v59 = vrot.slane %v1420_v24, %v6811_v4  ;;  %v1644_v13 = vld [vmem:[%s6591_s19 + $0x90] sm:$0xff] }
 0x196   : > { %v1305_v19 = vmul.f32 %v1300_v14, %v1287_v16  ;;  %v1304_v20 = vmul.f32 %v1302_v15, %v1286_v18  ;;  %v1628_v14 = vld [vmem:[%s6591_s19 + $0x10] sm:$0xff]  ;;  %v1643_v15 = vld [vmem:[%s6591_s19 + $0x88] sm:$0xff]  ;;  %v1626_v18 = vld [vmem:[%s6591_s19] sm:$0xff] }
 0x197   : > { %v1627_v16 = vld [vmem:[%s6591_s19 + $0x8] sm:$0xff] }
 0x198   : > { %v1323_v21 = vadd.f32 %v1318_v17, %v1305_v19  ;;  %v1322_v22 = vadd.f32 %v1320_v53, %v1304_v20  ;;  %v1642_v17 = vld [vmem:[%s6591_s19 + $0x80] sm:$0xff] }
 0x19a   : > { %1571 = vmatmul.mubr.f32.vlgmr.msra.gmra.mxu1 %v1323_v21  ;;  %v1433_v23 = vcombine.high %v1322_v22, %v1322_v22  ;;  %v1577_v21 = vld [vmem:[%s7689_s6] sm:$0x3]  ;;  %s7710_s6 = sld [smem:[#allocation26_spill]] }
 0x19b   : > { %5485 = vmatpush3.msra.mxu1 %v1641_v36  ;;  %v1608_v24 = vrot.slane %v1577_v21, %v6811_v4  ;;  %v1766_v36 = vld [vmem:[%s1228_s1] sm:$0x1f]  ;;  %s6458_s1 = smov 16  }
 0x19c   : > { %1499 = vmatprep.mubr.f32.mxu0 %v1433_v23  ;;  %5486 = vmatprep.subr.mxu1 %v1656_v37  ;;  %v1604_v23 = vrot.slane %v1577_v21, %v6808_v1  ;;  %v1768_v37 = vsub.f32 1.0, %v1766_v36 }
 0x19d   : > { %1500 = vmatmul.mubr.f32.vlgmr.msra.gmra.mxu0 %v1322_v22  ;;  %5487 = vmatpush3.msra.mxu1 %v1640_v38  ;;  %v1578_v22 = vld [vmem:[%s7690_s8] sm:$0x3]  ;;  %s7711_s8 = sld [smem:[#allocation27_spill]] }
 0x19e   : > { %5488 = vmatprep.subr.mxu1 %v1655_v39 }
 0x19f   : > { %5489 = vmatpush3.msra.mxu1 %v1639_v40 }
 0x1a0   : > { %5490 = vmatprep.subr.mxu1 %v1654_v41 }
 0x1a1   : > { %5491 = vmatpush3.msra.mxu1 %v1638_v51 }
 0x1a2   : > { %5492 = vmatprep.subr.mxu1 %v1653_v52  ;;  %v5303_v52 = vld [vmem:[%s7693_s11] ss:$0 sm:$0xff]  ;;  %s7653_s11 = smov 112  }
 0x1a3   : > { %5493 = vmatpush3.msra.mxu1 %v1637_v55 }
 0x1a4   : > { %5494 = vmatprep.subr.mxu1 %v1652_v56 }
 0x1a5   : > { %5495 = vmatpush3.msra.mxu1 %v1636_v57 }
 0x1a6   : > { %5496 = vmatprep.subr.mxu1 %v1651_v60 }
 0x1a7   : > { %5497 = vmatpush3.msra.mxu1 %v1635_v62 }
 0x1a8   : > { %5498 = vmatprep.subr.mxu1 %v1650_v63  ;;  %v1966_v63 = vld [vmem:[%s6501_s29 + $0x8] sm:$0xf] }
 0x1a9   : > { %5499 = vmatpush3.msra.mxu1 %v1634_v2 }
 0x1aa   : > { %5500 = vmatprep.subr.mxu1 %v1649_v3  ;;  %v5301_v3 = vld [vmem:[%s7694_s16] ss:$0 sm:$0xff]  ;;  %s7702_s16 = sld [smem:[#allocation6_spill]] }
 0x1ab   : > { %5501 = vmatpush3.msra.mxu1 %v1633_v0 }
 0x1ac   : > { %5502 = vmatprep.subr.mxu1 %v1648_v5  ;;  %v5302_v5 = vld [vmem:[%s7695_s18] ss:$0 sm:$0xff]  ;;  %s7649_s18 = smov 96  }
 0x1ad   : > { %5503 = vmatpush3.msra.mxu1 %v1632_v6 }
 0x1ae   : > { %5504 = vmatprep.subr.mxu1 %v1647_v7 }
 0x1af   : > { %5505 = vmatpush3.msra.mxu1 %v1631_v8  ;;  %v1790_v8 = vld [vmem:[%s6491_s21 + $0x8] sm:$0xf] }
 0x1b0   : > { %5506 = vmatprep.subr.mxu1 %v1646_v9 }
 0x1b1   : > { %5507 = vmatpush3.msra.mxu1 %v1630_v10 }
 0x1b2   : > { %5508 = vmatprep.subr.mxu1 %v1645_v11 }
 0x1b3   : > { %5509 = vmatpush3.msra.mxu1 %v1629_v12 }
 0x1b4   : > { %5510 = vmatprep.subr.mxu1 %v1644_v13 }
 0x1b5   : > { %5511 = vmatpush3.msra.mxu1 %v1628_v14 }
 0x1b6   : > { %5512 = vmatprep.subr.mxu1 %v1643_v15 }
 0x1b7   : > { %5513 = vmatpush3.msra.mxu1 %v1627_v16 }
 0x1b8   : > { %5514 = vmatprep.subr.mxu1 %v1642_v17 }
 0x1b9   : > { %5515 = vmatpush3.msra.mxu1 %v1626_v18 }
 0x25a   : > { %v1572_v25 = vpop.f32.mrf.mxu1 }
 0x25c   : > { %v1574_v30 = vpop.f32.mrf.mxu1 }
 0x25d   : > { %v1501_v58 = vpop.f32.mrf.mxu0 }
 0x25e   : > { %v1502_v26 = vadd.f32 %v1501_v58, %v1425_v54  ;;  %v1621_v58 = vrot.slane %v1578_v22, %v6811_v4  ;;  %v6457_v4 = vmov 0  }
 0x25f   : > { %v1503_v27 = vpop.f32.mrf.mxu0  ;;  %6267 = vset.pattern.permute.xlu1 %v6457_v4  ;;  %6266 = vset.pattern.permute.xlu0 %v6457_v4 }
 0x260   : > { %v1573_v28 = vadd.f32 %v1572_v25, %v1502_v26  ;;  %v1504_v29 = vadd.f32 %v1503_v27, %v1429_v59  ;;  %v1617_v25 = vrot.slane %v1578_v22, %v6808_v1 }
 0x262   : > { %v1575_v31 = vadd.f32 %v1574_v30, %v1504_v29  ;;  %v1579_v32 = vsel %vm1241_vm0, %v1573_v28, 0.0 }
 0x264   : > { %v1580_v33 = vsel %vm1241_vm0, %v1575_v31, 0.0 }
 0x265   : > { %v1581_v34 = vadd.f32 %v1580_v33, %v1579_v32  ;;  %v5300_v33 = vld [vmem:[%s6596_s30] ss:$0 sm:$0xff] }
 0x267   : > { %1582 = vadd.xlane.f32.xlu1 %v1581_v34 }
 0x2f0   : > { %v1583_v42 = vpop.xlane.xlu1 %1582 }
 0x2f1   : > { %v1585_v43 = vmul.f32 0.00390625, %v1583_v42 }
 0x2f3   : > { %v6835_v44 = vsub.f32 %v1573_v28, %v1585_v43  ;;  %v6837_v45 = vsub.f32 %v1575_v31, %v1585_v43  ;;  %v1791_v43 = vld [vmem:[%s6496_s25] sm:$0xff] }
 0x2f4   : > { %5738 = vmatprep.mubr.msk.f32.mxu0 %vm1794_vm3, %v1791_v43 }
 0x2f5   : > { %v1588_v46 = vmul.f32 %v6835_v44, %v6835_v44  ;;  %v1589_v47 = vmul.f32 %v6837_v45, %v6837_v45 }
 0x2f7   : > { %v1590_v48 = vsel %vm1241_vm0, %v1588_v46, 0.0  ;;  %v1591_v49 = vsel %vm1241_vm0, %v1589_v47, 0.0  ;;  %v1789_v46 = vld [vmem:[%s6491_s21] sm:$0xff] }
 0x2f8   : > { %v1592_v50 = vadd.f32 %v1591_v49, %v1590_v48  ;;  %v1965_v47 = vld [vmem:[%s6501_s29] sm:$0xff] }
 0x2f9   : > { %v1767_v49 = vld [vmem:[%s1224_s15] sm:$0x1f]  ;;  %s7651_s15 = smov 64  }
 0x2fa   : > { %1593 = vadd.xlane.f32.xlu1 %v1592_v50 }
 0x383   : > { %v1594_v53 = vpop.xlane.xlu1 %1593 }
 0x384   : > { %v1595_v19 = vmul.f32 0.00390625, %v1594_v53 }
 0x386   : > { %v1596_v20 = vadd.f32 1e-05, %v1595_v19 }
 0x388   : > { %6271 = vrsqrt.f32 %v1596_v20 }
 0x395   : > { %v6272_v54 = vpop.eup %6271 }
 0x396   : > { %v1599_v59 = vmul.f32 %v6272_v54, %v6837_v45  ;;  %v1598_v26 = vmul.f32 %v6272_v54, %v6835_v44  ;;  %v1793_v44 = vld [vmem:[%s1220_s10] sm:$0xf]  ;;  %v1792_v45 = vld [vmem:[%s6496_s25 + $0x8] sm:$0xf]  ;;  %s7701_s10 = sld [smem:[#allocation8_spill]] }
 0x397   : > { %5736 = vmatprep.subr.msk.mxu0 %vm1801_vm2, %v1793_v44 }
 0x398   : > { %v1612_v27 = vmul.f32 %v1608_v24, %v1599_v59  ;;  %v1611_v28 = vmul.f32 %v1604_v23, %v1598_v26  ;;  %5737 = vmatpush3.msk.msra.mxu0 %vm1801_vm2, %v1793_v44 }
 0x399   : > { %5739 = vmatmul.mubr.msk.f32.vlgmr.msra.gmra.mxu0 %vm1794_vm3, %v1792_v45 }
 0x39a   : > { %v1625_v29 = vadd.f32 %v1621_v58, %v1612_v27  ;;  %v1624_v30 = vadd.f32 %v1617_v25, %v1611_v28  ;;  %5748 = vmatprep.mubr.msk.f32.mxu0 %vm1967_vm5, %v1965_v47  ;;  %v2140_v27 = vld [vmem:[%s7696_s0 + $0x38] sm:$0xff]  ;;  %v2139_v28 = vld [vmem:[%s7696_s0 + $0x30] sm:$0xff] }
 0x39c   : > { %1729 = vmatprep.mubr.f32.mxu1 %v1625_v29  ;;  %v2138_v29 = vld [vmem:[%s7696_s0 + $0x28] sm:$0xff] }
 0x39d   : > { %1730 = vmatmul.mubr.f32.vlgmr.msra.gmra.mxu1 %v1624_v30  ;;  %v2137_v30 = vld [vmem:[%s7696_s0 + $0x20] sm:$0xff] }
 0x39e   : > { %5743 = vmatprep.mubr.msk.f32.mxu1 %vm1880_vm4, %v1789_v46 }
 0x459   : > { %v5740_v9 = vpop.f32.mrf.mxu0 }
 0x45b   : > { %v1871_v10 = vpop.f32.mrf.mxu0 }
 0x45d   : > { %v5516_v31 = vpop.f32.mrf.mxu1 }
 0x45f   : > { %v5517_v32 = vpop.f32.mrf.mxu1 }
 0x460   : > { %v5518_v34 = vadd.f32 %v5517_v32, %v5516_v31  ;;  %v2136_v31 = vld [vmem:[%s7696_s0 + $0x18] sm:$0xff]  ;;  %v2135_v32 = vld [vmem:[%s7696_s0 + $0x10] sm:$0xff] }
 0x462   : > { %v1732_v35 = vadd.f32 %v5518_v34, %v5300_v33  ;;  %v2134_v33 = vld [vmem:[%s7696_s0 + $0x8] sm:$0xff]  ;;  %v2133_v34 = vld [vmem:[%s7696_s0] sm:$0xff] }
 0x464   : > { %v1738_v1 = vsel %vm1737_vm1, %v1732_v35, 0.0 }
 0x465   : > { %1739 = vadd.xlane.f32.xlu0 %v1738_v1  ;;  %v2062_v1 = vld [vmem:[%s7697_s26 + $0x8] sm:$0xf] }
 0x47b   : > { %1771 = vperm.xlu0 %6266, %v1768_v37  }
 0x4ee   : > { %v1740_v38 = vpop.xlane.xlu0 %1739 }
 0x4ef   : > { %v1742_v39 = vmul.f32 0.03125, %v1740_v38 }
 0x4f1   : > { %v1743_v40 = vsub.f32 %v1732_v35, %v1742_v39  ;;  %v2061_v35 = vld [vmem:[%s7697_s26] sm:$0xff] }
 0x4f3   : > { %v1744_v41 = vmul.f32 %v1743_v40, %v1743_v40 }
 0x4f5   : > { %v1745_v42 = vsel %vm1737_vm1, %v1744_v41, 0.0 }
 0x4f6   : > { %1746 = vadd.xlane.f32.xlu1 %v1745_v42  ;;  %v1772_v50 = vpop.permute.xlu0 %1771  ;;  %v5313_v42 = vld [vmem:[%s7698_s28] ss:$0 sm:$0xff] }
 0x4f7   : > { %v1774_v56 = vmul.f32 %v1772_v50, %v1767_v49 }
 0x507   : > { %1784 = vperm.xlu1 %6267, %v1766_v36  }
 0x57f   : > { %v1747_v48 = vpop.xlane.xlu1 %1746 }
 0x580   : > { %v1748_v51 = vmul.f32 0.03125, %v1747_v48 }
 0x582   : > { %v1749_v55 = vadd.f32 1e-05, %v1748_v51 }
 0x583   : > { %v1785_v57 = vpop.permute.xlu1 %1784 }
 0x584   : > { %6273 = vrsqrt.f32 %v1749_v55  ;;  %v1787_v60 = vmul.f32 %v5303_v52, %v1785_v57 }
 0x586   : > { %v1788_v62 = vadd.f32 %v1787_v60, %v1774_v56  ;;  %v2057_v60 = vld [vmem:[%s7699_s2] sm:$0xff] }
 0x588   : > { %5746 = vmatprep.subr.msk.mxu0 %vm1974_vm6, %v1788_v62 }
 0x589   : > { %5747 = vmatpush3.msk.msra.mxu0 %vm1974_vm6, %v1788_v62  ;;  %v2058_v62 = vld [vmem:[%s7699_s2 + $0x8] sm:$0xf]  ;;  %s7707_s2 = sld [smem:[#allocation24_spill]] }
 0x58a   : > { %5749 = vmatmul.mubr.msk.f32.vlgmr.msra.gmra.mxu0 %vm1967_vm5, %v1966_v63  ;;  %5795 = vmatprep.subr.mxu0 %v6456_v61  ;;  %v2070_v63 = vld [vmem:[%s7700_s7 + $0x38] sm:$0xff] }
 0x58b   : > { %5799 = vmatprep.mubr.msk.f32.mxu0 %vm6462_vm11, %v6456_v61 }
 0x591   : > { %v6274_v2 = vpop.eup %6273 }
 0x592   : > { %v1751_v0 = vmul.f32 %v6274_v2, %v1743_v40  ;;  %v2069_v2 = vld [vmem:[%s7700_s7 + $0x30] sm:$0xff] }
 0x594   : > { %v1758_v6 = vmul.f32 %v5301_v3, %v1751_v0  ;;  %v2060_v3 = vld [vmem:[%s7701_s10 + $0x8] sm:$0xf] }
 0x596   : > { %v1765_v7 = vadd.f32 %v5302_v5, %v1758_v6  ;;  %v2059_v6 = vld [vmem:[%s7701_s10] sm:$0xff] }
 0x598   : > { %5741 = vmatprep.subr.msk.mxu1 %vm1241_vm0, %v1765_v7 }
 0x599   : > { %5742 = vmatpush3.msk.msra.mxu1 %vm1241_vm0, %v1765_v7 }
 0x59a   : > { %5744 = vmatmul.mubr.msk.f32.vlgmr.msra.gmra.mxu1 %vm1880_vm4, %v1790_v8  ;;  %2171 = vmatprep.subr.mxu1 %v2140_v27 }
 0x59b   : > { %2211 = vmatprep.mubr.f32.mxu1 %v6456_v61  ;;  %2172 = vmatpush1.msra.mxu1 %v2139_v28 }
 0x59c   : > { %2173 = vmatprep.subr.mxu1 %v2138_v29 }
 0x59d   : > { %2174 = vmatpush1.msra.mxu1 %v2137_v30 }
 0x59e   : > { %2175 = vmatprep.subr.mxu1 %v2136_v31 }
 0x59f   : > { %2176 = vmatpush1.msra.mxu1 %v2135_v32 }
 0x5a0   : > { %2177 = vmatprep.subr.mxu1 %v2134_v33 }
 0x5a1   : > { %2178 = vmatpush1.msra.mxu1 %v2133_v34 }
 0x5a2   : > { %5751 = vmatprep.subr.mxu1 %v2070_v63 }
 0x64a   : > { %v5750_v12 = vpop.f32.mrf.mxu0 }
 0x64c   : > { %v2044_v17 = vpop.f32.mrf.mxu0 }
 0x65a   : > { %v5745_v11 = vpop.f32.mrf.mxu1 }
 0x65b   : > { %v1962_v13 = vadd.f32 %v5745_v11, %v5740_v9 }
 0x65c   : > { %v1956_v14 = vpop.f32.mrf.mxu1 }
 0x65d   : > { %v1957_v15 = vadd.f32 %v1956_v14, %v1871_v10  ;;  %v6909_v16 = vadd.f32 %v5750_v12, %v1962_v13 }
 0x65f   : > { %v6911_v18 = vadd.f32 %v2044_v17, %v1957_v15  ;;  %v2102_v53 = vsel %vm2101_vm7, %v6909_v16, 0.0  ;;  %v2068_v17 = vld [vmem:[%s7700_s7 + $0x28] sm:$0xff] }
 0x660   : > { %2103 = vadd.xlane.f32.xlu0 %v2102_v53 }
 0x661   : > { %v2098_v19 = vsel %vm2097_vm8, %v6911_v18, 0.0 }
 0x662   : > { %2099 = vadd.xlane.f32.xlu1 %v2098_v19  ;;  %v2067_v19 = vld [vmem:[%s7700_s7 + $0x20] sm:$0xff] }
 0x676   : > { %2250 = vrot.lane.b32.xlu0 %v2061_v35, %s6458_s1 }
 0x6e9   : > { %v2104_v20 = vpop.xlane.xlu0 %2103 }
 0x6ea   : > { %v2106_v21 = vmul.f32 0.03125, %v2104_v20 }
 0x6eb   : > { %v2100_v22 = vpop.xlane.xlu1 %2099 }
 0x6ec   : > { %v2105_v23 = vmul.f32 0.03125, %v2100_v22  ;;  %v2108_v24 = vsub.f32 %v6909_v16, %v2106_v21  ;;  %v2066_v21 = vld [vmem:[%s7700_s7 + $0x18] sm:$0xff]  ;;  %v2065_v22 = vld [vmem:[%s7700_s7 + $0x10] sm:$0xff] }
 0x6ed   : > { %v6944_v56 = vpop.permute.xlu0 %2250 }
 0x6ee   : > { %v2107_v54 = vsub.f32 %v6911_v18, %v2105_v23  ;;  %v2110_v58 = vmul.f32 %v2108_v24, %v2108_v24  ;;  %v2064_v23 = vld [vmem:[%s7700_s7 + $0x8] sm:$0xff] }
 0x6f0   : > { %v2109_v59 = vmul.f32 %v2107_v54, %v2107_v54  ;;  %v2114_v26 = vsel %vm2101_vm7, %v2110_v58, 0.0  ;;  %v2055_v58 = vld [vmem:[%s7702_s16] sm:$0xff] }
 0x6f2   : > { %v2111_v25 = vsel %vm2097_vm8, %v2109_v59, 0.0 }
 0x6f3   : > { %2112 = vadd.xlane.f32.xlu1 %v2111_v25  ;;  %v2056_v25 = vld [vmem:[%s7702_s16 + $0x8] sm:$0xf] }
 0x6f7   : > { %2115 = vadd.xlane.f32.xlu1 %v2114_v26 }
 0x708   : > { %2252 = vrot.lane.b32.xlu1 %v2062_v1, %s6458_s1  ;;  %s7703_s1 = sld [smem:[#allocation11_spill]] }
 0x77c   : > { %v2113_v4 = vpop.xlane.xlu1 %2112 }
 0x77d   : > { %v2117_v36 = vmul.f32 0.03125, %v2113_v4  ;;  %v2071_v4 = vld [vmem:[%s7703_s1] sm:$0xff] }
 0x77f   : > { %v2119_v37 = vadd.f32 1e-05, %v2117_v36 }
 0x780   : > { %v2116_v38 = vpop.xlane.xlu1 %2115 }
 0x781   : > { %6275 = vrsqrt.f32 %v2119_v37  ;;  %v2118_v39 = vmul.f32 0.03125, %v2116_v38 }
 0x783   : > { %v2120_v40 = vadd.f32 1e-05, %v2118_v39 }
 0x784   : > { %v6941_v51 = vpop.permute.xlu1 %2252 }
 0x785   : > { %6277 = vrsqrt.f32 %v2120_v40  ;;  %v2072_v40 = vld [vmem:[%s7703_s1 + $0x8] sm:$0xff] }
 0x78e   : > { %v6276_v41 = vpop.eup %6275 }
 0x78f   : > { %v2123_v43 = vmul.f32 %v6276_v41, %v2107_v54 }
 0x791   : > { %v2131_v44 = vmul.f32 %v5313_v42, %v2123_v43 }
 0x792   : > { %v6278_v45 = vpop.eup %6277 }
 0x793   : > { %5314 = vmatmul.mubr.msk.f32.vlgmr.msra.gmra.mxu1 %vm2097_vm8, %v2131_v44  ;;  %v2124_v46 = vmul.f32 %v6278_v45, %v2108_v24  ;;  %v2063_v24 = vld [vmem:[%s7700_s7] sm:$0xff] }
 0x794   : > { %2217 = vmatprep.mubr.f32.mxu1 %v6456_v61  ;;  %5752 = vmatpush3.msra.mxu1 %v2070_v63  ;;  %v2077_v63 = vld [vmem:[%s7703_s1 + $0x30] sm:$0xf] }
 0x795   : > { %v2132_v47 = vmul.f32 %v5313_v42, %v2124_v46  ;;  %5753 = vmatprep.subr.mxu1 %v2069_v2 }
 0x796   : > { %5754 = vmatpush3.msra.mxu1 %v2069_v2 }
 0x797   : > { %5315 = vmatmul.mubr.msk.f32.gmra.mxu1 %vm2097_vm8, %v2132_v47  ;;  %5755 = vmatprep.subr.mxu1 %v2068_v17  ;;  %v2073_v47 = vld [vmem:[%s7703_s1 + $0x10] sm:$0xff] }
 0x798   : > { %5756 = vmatpush3.msra.mxu1 %v2068_v17 }
 0x799   : > { %5757 = vmatprep.subr.mxu1 %v2067_v19 }
 0x79a   : > { %5758 = vmatpush3.msra.mxu1 %v2067_v19 }
 0x79b   : > { %5759 = vmatprep.subr.mxu1 %v2066_v21 }
 0x79c   : > { %5760 = vmatpush3.msra.mxu1 %v2066_v21 }
 0x79d   : > { %5761 = vmatprep.subr.mxu1 %v2065_v22 }
 0x79e   : > { %5762 = vmatpush3.msra.mxu1 %v2065_v22 }
 0x79f   : > { %5763 = vmatprep.subr.mxu1 %v2064_v23 }
 0x7a0   : > { %5764 = vmatpush3.msra.mxu1 %v2064_v23 }
 0x7a1   : > { %5765 = vmatprep.subr.mxu1 %v2063_v24 }
 0x7a2   : > { %5766 = vmatpush3.msra.mxu1 %v2063_v24 }
 0x7a3   : > { %5770 = vmatprep.subr.mxu1 %v6456_v61 }
 0x853   : > { %v6935_v48 = vpop.f32.mrf.mxu1 }
 0x854   : > { %v2224_v29 = vmul.f32 %v6935_v48, %v2055_v58 }
 0x855   : > { %v6937_v49 = vpop.f32.mrf.mxu1 }
 0x856   : > { %v2256_v57 = vmul.f32 %v6944_v56, %v6937_v49  ;;  %v2246_v8 = vmul.f32 %v6937_v49, %v2059_v6 }
 0x857   : > { %v6939_v50 = vpop.f32.mrf.mxu1 }
 0x858   : > { %v2225_v28 = vmul.f32 %v6939_v50, %v2056_v25 }
 0x859   : > { %v2221_v52 = vpop.f32.mrf.mxu1 }
 0x85a   : > { %v2257_v55 = vmul.f32 %v6941_v51, %v2221_v52  ;;  %v2247_v0 = vmul.f32 %v2221_v52, %v2060_v3 }
 0x85c   : > { %2262 = vrot.lane.b32.xlu1 %v2257_v55, %s7653_s11  ;;  %v2076_v55 = vld [vmem:[%s7703_s1 + $0x28] sm:$0xff] }
 0x860   : > { %2260 = vrot.lane.b32.xlu1 %v2256_v57, %s7653_s11  ;;  %s7706_s11 = sld [smem:[#allocation14_spill]] }
 0x864   : > { %2228 = vrot.lane.b32.xlu1 %v2057_v60, %s7651_s15 }
 0x868   : > { %2230 = vrot.lane.b32.xlu1 %v2058_v62, %s7651_s15 }
 0x8ce   : > { %v2263_v5 = vpop.permute.xlu1 %2262 }
 0x8cf   : > { %v6958_v7 = vadd.f32 %v2263_v5, %v2247_v0 }
 0x8d1   : > { %v2375_v9 = vmul.f32 %v6958_v7, %v6958_v7 }
 0x8d2   : > { %v2261_v10 = vpop.permute.xlu1 %2260 }
 0x8d3   : > { %v6963_v11 = vadd.f32 %v2261_v10, %v2246_v8  ;;  %v2381_v12 = vsel %vm2380_vm9, %v2375_v9, 0.0 }
 0x8d4   : > { %2382 = vadd.xlane.f32.xlu1 %v2381_v12 }
 0x8d5   : > { %v2374_v13 = vmul.f32 %v6963_v11, %v6963_v11 }
 0x8d6   : > { %v6969_v15 = vpop.permute.xlu1 %2228 }
 0x8d7   : > { %v2377_v14 = vsel %vm2376_vm10, %v2374_v13, 0.0  ;;  %v2234_v54 = vmul.f32 %v6969_v15, %v6935_v48 }
 0x8d8   : > { %2378 = vadd.xlane.f32.xlu0 %v2377_v14 }
 0x8da   : > { %v6972_v53 = vpop.permute.xlu1 %2230 }
 0x8db   : > { %v2235_v20 = vmul.f32 %v6972_v53, %v6939_v50  ;;  %v2074_v50 = vld [vmem:[%s7703_s1 + $0x18] sm:$0xff] }
 0x8e5   : > { %2240 = vrot.lane.b32.xlu1 %v2235_v20, %s7651_s15 }
 0x8e9   : > { %2535 = vrot.lane.b32.xlu1 %v2221_v52, %s7649_s18  ;;  %v2075_v52 = vld [vmem:[%s7703_s1 + $0x20] sm:$0xff] }
 0x8ee   : > { %2238 = vrot.lane.b32.xlu0 %v2234_v54, %s7651_s15  ;;  %s7705_s15 = sld [smem:[#allocation13_spill]] }
 0x8f2   : > { %2533 = vrot.lane.b32.xlu0 %v6937_v49, %s7649_s18  ;;  %s7704_s18 = sld [smem:[#allocation12_spill]] }
 0x8f8   : > { %v2079_v5 = vld [vmem:[%s7704_s18 + $0x8] sm:$0xff]  ;;  %v2078_v6 = vld [vmem:[%s7704_s18] sm:$0xff] }
 0x95d   : > { %v2383_v59 = vpop.xlane.xlu1 %2382 }
 0x95e   : > { %6279 = vrsqrt.f32 %v2383_v59  ;;  %vm2393_vm14 = vcmp.eq.f32.partialorder %v2383_v59, inf  ;;  %v2396_v38 = vand.u32 2147483648, %v2383_v59  ;;  %vm2395_vm15 = vcmp.eq.f32.partialorder %v2383_v59, 0.0 }
 0x961   : > { %v2379_v26 = vpop.xlane.xlu0 %2378  ;;  %v2241_v27 = vpop.permute.xlu1 %2240 }
 0x962   : > { %6281 = vrsqrt.f32 %v2379_v26  ;;  %v6995_v30 = vadd.f32 %v2241_v27, %v2225_v28  ;;  %vm2386_vm0 = vcmp.eq.f32.partialorder %v2379_v26, inf  ;;  %v2389_v45 = vand.u32 2147483648, %v2379_v26 }
 0x963   : > { %vm2388_vm1 = vcmp.eq.f32.partialorder %v2379_v26, 0.0 }
 0x964   : > { %v2269_v35 = vmul.f32 %v6995_v30, %v6995_v30 }
 0x965   : > { %v2239_v31 = vpop.permute.xlu0 %2238  ;;  %v2536_v32 = vpop.permute.xlu1 %2535 }
 0x966   : > { %v6997_v33 = vadd.f32 %v2239_v31, %v2224_v29  ;;  %5796 = vmatpush3.msk.msra.mxu0 %vm1801_vm2, %v2536_v32 }
 0x967   : > { %5797 = vmatprep.subr.mxu0 %v6456_v61 }
 0x968   : > { %v2268_v34 = vmul.f32 %v6997_v33, %v6997_v33 }
 0x969   : > { %v2534_v1 = vpop.permute.xlu0 %2533 }
 0x96a   : > { %5767 = vmatprep.mubr.msk.f32.mxu1 %vm2270_vm12, %v2268_v34  ;;  %5798 = vmatpush3.msra.mxu0 %v2534_v1  ;;  %v7092_v34 = vld [vmem:[%s7705_s15 + $0x30] sm:$0xf]  ;;  %v7098_v1 = vld [vmem:[%s7705_s15 + $0x28] sm:$0xff] }
 0x96b   : > { %v6280_v36 = vpop.eup %6279  ;;  %5768 = vmatmul.mubr.msk.f32.vlgmr.msra.gmra.mxu1 %vm2270_vm12, %v2269_v35  ;;  %5800 = vmatmul.mubr.msk.f32.vlgmr.msra.gmra.mxu0 %vm2406_vm13, %v2071_v4 }
 0x96c   : > { %v2392_v37 = vmul.f32 %v6280_v36, %v2383_v59  ;;  %5774 = vmatprep.mubr.msk.f32.mxu1 %vm6462_vm11, %v6456_v61  ;;  %5802 = vmatprep.mubr.msk.f32.mxu0 %vm6462_vm11, %v6456_v61 }
 0x96d   : > { %5845 = vmatprep.subr.mxu0 %v6456_v61 }
 0x96e   : > { %v2394_v39 = vsel %vm2393_vm14, %v2383_v59, %v2392_v37  ;;  %5846 = vmatpush3.msra.mxu0 %v2079_v5  ;;  %v7112_v37 = vld [vmem:[%s7705_s15 + $0x18] sm:$0xff]  ;;  %vm3044_vm14 = vcmask 420864  }
 0x96f   : > { %v6282_v41 = vpop.eup %6281  ;;  %v2397_v42 = vsel %vm2395_vm15, %v2396_v38, %v2394_v39  ;;  %5803 = vmatmul.mubr.msk.f32.gmra.mxu0 %vm2406_vm13, %v2072_v40  ;;  %5847 = vmatprep.subr.mxu0 %v6456_v61  ;;  %v7119_v39 = vld [vmem:[%s7705_s15 + $0x10] sm:$0xff]  ;;  %vm3040_vm15 = vcmask 424960  }
 0x970   : > { %v2399_v43 = vmax.f32 %v2397_v42, 1e-12  ;;  %v2385_v44 = vmul.f32 %v6282_v41, %v2379_v26  ;;  %5805 = vmatprep.mubr.msk.f32.mxu0 %vm6462_vm11, %v6456_v61  ;;  %5848 = vmatpush3.msra.mxu0 %v2078_v6  ;;  %v7125_v41 = vld [vmem:[%s7705_s15 + $0x8] sm:$0xff] }
 0x971   : > { %5887 = vmatprep.subr.msk.mxu0 %vm1801_vm2, %v7092_v34 }
 0x972   : > { %6283 = vrcp.f32 %v2399_v43  ;;  %v2387_v46 = vsel %vm2386_vm0, %v2379_v26, %v2385_v44  ;;  %v7132_v43 = vld [vmem:[%s7705_s15] sm:$0xff] }
 0x973   : > { %v2390_v48 = vsel %vm2388_vm1, %v2389_v45, %v2387_v46  ;;  %5806 = vmatmul.mubr.msk.f32.gmra.mxu0 %vm2406_vm13, %v2073_v47 }
 0x974   : > { %v2398_v49 = vmax.f32 %v2390_v48, 1e-12  ;;  %5808 = vmatprep.mubr.msk.f32.mxu0 %vm6462_vm11, %v6456_v61 }
 0x976   : > { %6285 = vrcp.f32 %v2398_v49 }
 0x977   : > { %5809 = vmatmul.mubr.msk.f32.gmra.mxu0 %vm2406_vm13, %v2074_v50 }
 0x978   : > { %5811 = vmatprep.mubr.msk.f32.mxu0 %vm6462_vm11, %v6456_v61 }
 0x97b   : > { %5812 = vmatmul.mubr.msk.f32.gmra.mxu0 %vm2406_vm13, %v2075_v52 }
 0x97c   : > { %5814 = vmatprep.mubr.msk.f32.mxu0 %vm6462_vm11, %v6456_v61 }
 0x97f   : > { %v6284_v57 = vpop.eup %6283  ;;  %5815 = vmatmul.mubr.msk.f32.gmra.mxu0 %vm2406_vm13, %v2076_v55 }
 0x980   : > { %v2403_v60 = vmul.f32 4.0, %v6284_v57  ;;  %5817 = vmatprep.mubr.msk.f32.mxu0 %vm6462_vm11, %v6456_v61 }
 0x982   : > { %v2405_v62 = vmul.f32 %v2403_v60, %v6958_v7 }
 0x983   : > { %v6286_v2 = vpop.eup %6285  ;;  %5818 = vmatmul.mubr.msk.f32.gmra.mxu0 %vm2406_vm13, %v2077_v63 }
 0x984   : > { %5771 = vmatpush3.msk.msra.mxu1 %vm1801_vm2, %v2405_v62  ;;  %v2401_v3 = vmul.f32 4.0, %v6286_v2  ;;  %5849 = vmatprep.mubr.msk.f32.mxu0 %vm6462_vm11, %v6456_v61 }
 0x985   : > { %5772 = vmatprep.subr.mxu1 %v6456_v61 }
 0x986   : > { %v2404_v0 = vmul.f32 %v2401_v3, %v6963_v11 }
 0x988   : > { %5773 = vmatpush3.msra.mxu1 %v2404_v0 }
 0x989   : > { %5775 = vmatmul.mubr.msk.f32.vlgmr.msra.gmra.mxu1 %vm2406_vm13, %v2071_v4  ;;  %5820 = vmatprep.subr.mxu1 %v6456_v61 }
 0x98a   : > { %5777 = vmatprep.mubr.msk.f32.mxu1 %vm6462_vm11, %v6456_v61  ;;  %5821 = vmatpush3.msra.mxu1 %v2079_v5 }
 0x98b   : > { %5822 = vmatprep.subr.mxu1 %v6456_v61 }
 0x98c   : > { %5823 = vmatpush3.msra.mxu1 %v2078_v6 }
 0x98d   : > { %5778 = vmatmul.mubr.msk.f32.gmra.mxu1 %vm2406_vm13, %v2072_v40 }
 0x98e   : > { %5780 = vmatprep.mubr.msk.f32.mxu1 %vm6462_vm11, %v6456_v61 }
 0x991   : > { %5781 = vmatmul.mubr.msk.f32.gmra.mxu1 %vm2406_vm13, %v2073_v47 }
 0x992   : > { %5783 = vmatprep.mubr.msk.f32.mxu1 %vm6462_vm11, %v6456_v61 }
 0x995   : > { %5784 = vmatmul.mubr.msk.f32.gmra.mxu1 %vm2406_vm13, %v2074_v50 }
 0x996   : > { %5786 = vmatprep.mubr.msk.f32.mxu1 %vm6462_vm11, %v6456_v61 }
 0x999   : > { %5787 = vmatmul.mubr.msk.f32.gmra.mxu1 %vm2406_vm13, %v2075_v52 }
 0x99a   : > { %5789 = vmatprep.mubr.msk.f32.mxu1 %vm6462_vm11, %v6456_v61 }
 0x99d   : > { %5790 = vmatmul.mubr.msk.f32.gmra.mxu1 %vm2406_vm13, %v2076_v55 }
 0x99e   : > { %5792 = vmatprep.mubr.msk.f32.mxu1 %vm6462_vm11, %v6456_v61 }
 0x9a1   : > { %5793 = vmatmul.mubr.msk.f32.gmra.mxu1 %vm2406_vm13, %v2077_v63 }
 0x9a2   : > { %5824 = vmatprep.mubr.msk.f32.mxu1 %vm6462_vm11, %v6456_v61 }
 0xa2b   : > { %v7068_v7 = vpop.f32.mrf.mxu1  ;;  %v2606_v35 = vpop.f32.mrf.mxu0 }
 0xa2c   : > { %5850 = vmatmul.mubr.msk.f32.vlgmr.msra.gmra.mxu0 %vm2376_vm10, %v2606_v35  ;;  %vm2361_vm5 = vcmp.eq.f32.partialorder %v7068_v7, inf  ;;  %vm2363_vm6 = vcmp.eq.f32.partialorder %v7068_v7, 0.0 }
 0xa2d   : > { %v2343_v8 = vpop.f32.mrf.mxu1  ;;  %v5801_v4 = vpop.f32.mrf.mxu0  ;;  %5852 = vmatprep.mubr.msk.f32.mxu0 %vm6462_vm11, %v6456_v61  ;;  %5888 = vmatpush3.msk.msra.mxu0 %vm1801_vm2, %v7092_v34 }
 0xa2e   : > { %6287 = vrsqrt.f32 %v2343_v8  ;;  %vm2354_vm3 = vcmp.eq.f32.partialorder %v2343_v8, inf  ;;  %v2357_v12 = vand.u32 2147483648, %v2343_v8  ;;  %vm2356_vm4 = vcmp.eq.f32.partialorder %v2343_v8, 0.0  ;;  %5889 = vmatprep.subr.mxu0 %v7098_v1  ;;  %v2089_v4 = vld [vmem:[%s7706_s11 + $0x10] sm:$0xff] }
 0xa2f   : > { %v2611_v36 = vpop.f32.mrf.mxu0  ;;  %5890 = vmatpush3.msra.mxu0 %v7098_v1 }
 0xa30   : > { %5853 = vmatmul.mubr.msk.f32.gmra.mxu0 %vm2376_vm10, %v2611_v36 }
 0xa31   : > { %v5804_v38 = vpop.f32.mrf.mxu0  ;;  %5855 = vmatprep.mubr.msk.f32.mxu0 %vm6462_vm11, %v6456_v61 }
 0xa33   : > { %v2616_v40 = vpop.f32.mrf.mxu0 }
 0xa34   : > { %5856 = vmatmul.mubr.msk.f32.gmra.mxu0 %vm2376_vm10, %v2616_v40 }
 0xa35   : > { %v5807_v42 = vpop.f32.mrf.mxu0  ;;  %5858 = vmatprep.mubr.msk.f32.mxu0 %vm6462_vm11, %v6456_v61 }
 0xa36   : > { %v2088_v42 = vld [vmem:[%s7706_s11 + $0x8] sm:$0xff] }
 0xa37   : > { %v2621_v44 = vpop.f32.mrf.mxu0 }
 0xa38   : > { %5859 = vmatmul.mubr.msk.f32.gmra.mxu0 %vm2376_vm10, %v2621_v44 }
 0xa39   : > { %v5810_v45 = vpop.f32.mrf.mxu0  ;;  %5861 = vmatprep.mubr.msk.f32.mxu0 %vm6462_vm11, %v6456_v61 }
 0xa3b   : > { %v6288_v9 = vpop.eup %6287  ;;  %v2626_v46 = vpop.f32.mrf.mxu0 }
 0xa3c   : > { %v2353_v10 = vmul.f32 %v6288_v9, %v2343_v8  ;;  %5862 = vmatmul.mubr.msk.f32.gmra.mxu0 %vm2376_vm10, %v2626_v46 }
 0xa3d   : > { %v5813_v47 = vpop.f32.mrf.mxu0  ;;  %5864 = vmatprep.mubr.msk.f32.mxu0 %vm6462_vm11, %v6456_v61 }
 0xa3e   : > { %v2355_v11 = vsel %vm2354_vm3, %v2343_v8, %v2353_v10  ;;  %v7149_v10 = vld [vmem:[%s7706_s11 + $0x30] sm:$0xf]  ;;  %v2087_v47 = vld [vmem:[%s7706_s11] sm:$0xff] }
 0xa3f   : > { %v2358_v13 = vsel %vm2356_vm4, %v2357_v12, %v2355_v11  ;;  %v2631_v48 = vpop.f32.mrf.mxu0  ;;  %v5341_v12 = vld [vmem:[%s7707_s2] ss:$0 sm:$0xff] }
 0xa40   : > { %v2366_v17 = vmax.f32 %v2358_v13, 1e-12  ;;  %5865 = vmatmul.mubr.msk.f32.gmra.mxu0 %vm2376_vm10, %v2631_v48  ;;  %v7154_v13 = vld [vmem:[%s7706_s11 + $0x28] sm:$0xff]  ;;  %v2777_v38 = vmul.f32 %v5341_v12, %v2089_v4  ;;  %v2776_v45 = vmul.f32 %v5341_v12, %v2088_v42 }
 0xa41   : > { %v5816_v49 = vpop.f32.mrf.mxu0  ;;  %5867 = vmatprep.mubr.msk.f32.mxu0 %vm6462_vm11, %v6456_v61 }
 0xa42   : > { %6289 = vrcp.f32 %v2366_v17  ;;  %v2781_v17 = vmul.f32 %v5341_v12, %v7149_v10  ;;  %v2775_v49 = vmul.f32 %v5341_v12, %v2087_v47 }
 0xa43   : > { %v2636_v50 = vpop.f32.mrf.mxu0  ;;  %6291 = vrsqrt.f32 %v7068_v7 }
 0xa44   : > { %5868 = vmatmul.mubr.msk.f32.gmra.mxu0 %vm2376_vm10, %v2636_v50 }
 0xa45   : > { %v5819_v52 = vpop.f32.mrf.mxu0 }
 0xa49   : > { %v2497_v14 = vpop.f32.mrf.mxu1 }
 0xa4a   : > { %5825 = vmatmul.mubr.msk.f32.vlgmr.msra.gmra.mxu1 %vm2376_vm10, %v2497_v14 }
 0xa4b   : > { %v5776_v19 = vpop.f32.mrf.mxu1  ;;  %5827 = vmatprep.mubr.msk.f32.mxu1 %vm6462_vm11, %v6456_v61 }
 0xa4d   : > { %v2502_v20 = vpop.f32.mrf.mxu1 }
 0xa4e   : > { %5828 = vmatmul.mubr.msk.f32.gmra.mxu1 %vm2376_vm10, %v2502_v20 }
 0xa4f   : > { %v5779_v21 = vpop.f32.mrf.mxu1  ;;  %5830 = vmatprep.mubr.msk.f32.mxu1 %vm6462_vm11, %v6456_v61  ;;  %v6290_v25 = vpop.eup %6289 }
 0xa50   : > { %v2369_v27 = vmul.f32 4.0, %v6290_v25  ;;  %v6292_v6 = vpop.eup %6291 }
 0xa51   : > { %v2507_v22 = vpop.f32.mrf.mxu1  ;;  %v2360_v11 = vmul.f32 %v6292_v6, %v7068_v7 }
 0xa52   : > { %5831 = vmatmul.mubr.msk.f32.gmra.mxu1 %vm2376_vm10, %v2507_v22  ;;  %v2372_v31 = vmul.f32 %v2369_v27, %v6997_v33  ;;  %v7106_v33 = vld [vmem:[%s7705_s15 + $0x20] sm:$0xff]  ;;  %v2780_v22 = vmul.f32 %v5341_v12, %v7154_v13 }
 0xa53   : > { %v5782_v23 = vpop.f32.mrf.mxu1  ;;  %5833 = vmatprep.mubr.msk.f32.mxu1 %vm6462_vm11, %v6456_v61  ;;  %5891 = vmatprep.subr.mxu0 %v7106_v33  ;;  %v2362_v20 = vsel %vm2361_vm5, %v7068_v7, %v2360_v11 }
 0xa54   : > { %5892 = vmatpush3.msra.mxu0 %v7106_v33 }
 0xa55   : > { %v2512_v24 = vpop.f32.mrf.mxu1  ;;  %5893 = vmatprep.subr.mxu0 %v7112_v37 }
 0xa56   : > { %5834 = vmatmul.mubr.msk.f32.gmra.mxu1 %vm2376_vm10, %v2512_v24  ;;  %5894 = vmatpush3.msra.mxu0 %v7112_v37  ;;  %v2364_v24 = vand.u32 2147483648, %v7068_v7 }
 0xa57   : > { %v5785_v54 = vpop.f32.mrf.mxu1  ;;  %5836 = vmatprep.mubr.msk.f32.mxu1 %vm6462_vm11, %v6456_v61  ;;  %5895 = vmatprep.subr.mxu0 %v7119_v39 }
 0xa58   : > { %5896 = vmatpush3.msra.mxu0 %v7119_v39  ;;  %v7164_v54 = vld [vmem:[%s7706_s11 + $0x20] sm:$0xff] }
 0xa59   : > { %v2517_v59 = vpop.f32.mrf.mxu1  ;;  %5897 = vmatprep.subr.mxu0 %v7125_v41  ;;  %v2779_v27 = vmul.f32 %v5341_v12, %v7164_v54 }
 0xa5a   : > { %5837 = vmatmul.mubr.msk.f32.gmra.mxu1 %vm2376_vm10, %v2517_v59  ;;  %5898 = vmatpush3.msra.mxu0 %v7125_v41 }
 0xa5b   : > { %v5788_v58 = vpop.f32.mrf.mxu1  ;;  %5839 = vmatprep.mubr.msk.f32.mxu1 %vm6462_vm11, %v6456_v61  ;;  %5899 = vmatprep.subr.mxu0 %v7132_v43 }
 0xa5c   : > { %5900 = vmatpush3.msra.mxu0 %v7132_v43  ;;  %v2365_v58 = vsel %vm2363_vm6, %v2364_v24, %v2362_v20 }
 0xa5d   : > { %v2522_v26 = vpop.f32.mrf.mxu1 }
 0xa5e   : > { %5840 = vmatmul.mubr.msk.f32.gmra.mxu1 %vm2376_vm10, %v2522_v26 }
 0xa5f   : > { %v5791_v28 = vpop.f32.mrf.mxu1  ;;  %5842 = vmatprep.mubr.msk.f32.mxu1 %vm6462_vm11, %v6456_v61 }
 0xa61   : > { %v2527_v29 = vpop.f32.mrf.mxu1 }
 0xa62   : > { %5843 = vmatmul.mubr.msk.f32.gmra.mxu1 %vm2376_vm10, %v2527_v29  ;;  %v2090_v29 = vld [vmem:[%s7706_s11 + $0x18] sm:$0xff] }
 0xa63   : > { %v5794_v32 = vpop.f32.mrf.mxu1  ;;  %5884 = vmatprep.mubr.msk.f32.mxu1 %vm2270_vm12, %v2372_v31  ;;  %v2367_v31 = vmax.f32 %v2365_v58, 1e-12  ;;  %v2778_v7 = vmul.f32 %v5341_v12, %v2090_v29  ;;  %v5349_v12 = vld [vmem:[%s7708_s3] ss:$0 sm:$0xff] }
 0xa64   : > { %v2929_v20 = vmul.f32 %v5349_v12, %v7154_v13  ;;  %v2927_v58 = vmul.f32 %v5349_v12, %v2090_v29 }
 0xa65   : > { %6293 = vrcp.f32 %v2367_v31 }
 0xa72   : > { %v6294_v52 = vpop.eup %6293 }
 0xb0a   : > { %v2727_v55 = vpop.f32.mrf.mxu1 }
 0xb0b   : > { %v2761_v48 = vmul.f32 %v2727_v55, %v7132_v43  ;;  %v2876_v55 = vpop.f32.mrf.mxu0 }
 0xb0c   : > { %v5826_v57 = vpop.f32.mrf.mxu1 }
 0xb0d   : > { %v2782_v57 = vadd.f32 %v2775_v49, %v2761_v48 }
 0xb0e   : > { %v2732_v60 = vpop.f32.mrf.mxu1 }
 0xb0f   : > { %v2762_v44 = vmul.f32 %v2732_v60, %v7125_v41  ;;  %v2371_v60 = vmul.f32 4.0, %v6294_v52  ;;  %v3226_v52 = vld [vmem:[%s7710_s6 + $0x30] sm:$0xff] }
 0xb10   : > { %v5829_v62 = vpop.f32.mrf.mxu1 }
 0xb11   : > { %v2783_v50 = vadd.f32 %v2776_v45, %v2762_v44  ;;  %v2373_v62 = vmul.f32 %v2371_v60, %v6995_v30  ;;  %v2930_v30 = vmul.f32 %v5349_v12, %v7149_v10  ;;  %v2925_v10 = vmul.f32 %v5349_v12, %v2088_v42  ;;  %v3224_v60 = vld [vmem:[%s7710_s6 + $0x20] sm:$0xff] }
 0xb12   : > { %v2737_v63 = vpop.f32.mrf.mxu1 }
 0xb13   : > { %v2763_v36 = vmul.f32 %v2737_v63, %v7119_v39  ;;  %v5851_v63 = vpop.f32.mrf.mxu0 }
 0xb14   : > { %v5832_v2 = vpop.f32.mrf.mxu1  ;;  %v3221_v63 = vld [vmem:[%s7710_s6 + $0x8] sm:$0xff] }
 0xb15   : > { %v2784_v46 = vadd.f32 %v2777_v38, %v2763_v36  ;;  %v2881_v2 = vpop.f32.mrf.mxu0 }
 0xb16   : > { %v2742_v3 = vpop.f32.mrf.mxu1 }
 0xb17   : > { %v2764_v32 = vmul.f32 %v2742_v3, %v7112_v37  ;;  %v5854_v3 = vpop.f32.mrf.mxu0 }
 0xb18   : > { %v5835_v0 = vpop.f32.mrf.mxu1 }
 0xb19   : > { %v2785_v40 = vadd.f32 %v2778_v7, %v2764_v32  ;;  %v2886_v0 = vpop.f32.mrf.mxu0  ;;  %v2094_v7 = vld [vmem:[%s7709_s5] sm:$0xff] }
 0xb1a   : > { %v2747_v5 = vpop.f32.mrf.mxu1 }
 0xb1b   : > { %v2765_v26 = vmul.f32 %v2747_v5, %v7106_v33  ;;  %v5857_v5 = vpop.f32.mrf.mxu0 }
 0xb1c   : > { %v5838_v8 = vpop.f32.mrf.mxu1 }
 0xb1d   : > { %v2786_v35 = vadd.f32 %v2779_v27, %v2765_v26  ;;  %v2891_v6 = vpop.f32.mrf.mxu0 }
 0xb1e   : > { %v2752_v9 = vpop.f32.mrf.mxu1 }
 0xb1f   : > { %v2766_v21 = vmul.f32 %v2752_v9, %v7098_v1  ;;  %v5860_v8 = vpop.f32.mrf.mxu0 }
 0xb20   : > { %v5841_v14 = vpop.f32.mrf.mxu1 }
 0xb21   : > { %v2787_v28 = vadd.f32 %v2780_v22, %v2766_v21  ;;  %v2896_v9 = vpop.f32.mrf.mxu0 }
 0xb22   : > { %v2757_v19 = vpop.f32.mrf.mxu1  ;;  %v2914_v22 = vmul.f32 %v2896_v9, %v7106_v33  ;;  %v2911_v33 = vmul.f32 %v2881_v2, %v7125_v41  ;;  %v2095_v41 = vld [vmem:[%s7709_s5 + $0x8] sm:$0xf]  ;;  %v3220_v2 = vld [vmem:[%s7710_s6] sm:$0xff] }
 0xb23   : > { %v2767_v23 = vmul.f32 %v2757_v19, %v7092_v34  ;;  %v5863_v11 = vpop.f32.mrf.mxu0 }
 0xb24   : > { %v5844_v59 = vpop.f32.mrf.mxu1 }
 0xb25   : > { %v2788_v25 = vadd.f32 %v2781_v17, %v2767_v23  ;;  %v2901_v14 = vpop.f32.mrf.mxu0  ;;  %v2928_v23 = vmul.f32 %v5349_v12, %v7164_v54 }
 0xb26   : > { %v2915_v19 = vmul.f32 %v2901_v14, %v7098_v1  ;;  %v2926_v1 = vmul.f32 %v5349_v12, %v2089_v4 }
 0xb27   : > { %5870 = vmatprep.subr.msk.mxu1 %vm2270_vm12, %v2788_v25  ;;  %v5866_v17 = vpop.f32.mrf.mxu0  ;;  %v2935_v31 = vadd.f32 %v2928_v23, %v2914_v22 }
 0xb28   : > { %5871 = vmatpush3.xpose.msk.msra.mxu1 %vm2270_vm12, %v2788_v25  ;;  %v2913_v25 = vmul.f32 %v2891_v6, %v7112_v37  ;;  %v2936_v26 = vadd.f32 %v2929_v20, %v2915_v19  ;;  %v2924_v37 = vmul.f32 %v5349_v12, %v2087_v47 }
 0xb29   : > { %5872 = vmatprep.subr.msk.mxu1 %vm2270_vm12, %v2787_v28  ;;  %v2906_v21 = vpop.f32.mrf.mxu0 }
 0xb2a   : > { %v2916_v24 = vmul.f32 %v2906_v21, %v7092_v34  ;;  %v2934_v13 = vadd.f32 %v2927_v58, %v2913_v25  ;;  %v2910_v34 = vmul.f32 %v2876_v55, %v7132_v43  ;;  %v3222_v55 = vld [vmem:[%s7710_s6 + $0x10] sm:$0xff] }
 0xb2b   : > { %v5869_v59 = vpop.f32.mrf.mxu0 }
 0xb2c   : > { %5873 = vmatpush3.xpose.msk.msra.mxu1 %vm2270_vm12, %v2787_v28  ;;  %v2937_v27 = vadd.f32 %v2930_v30, %v2916_v24  ;;  %v2912_v28 = vmul.f32 %v2886_v0, %v7119_v39  ;;  %v2932_v39 = vadd.f32 %v2925_v10, %v2911_v33  ;;  %v2931_v29 = vadd.f32 %v2924_v37, %v2910_v34  ;;  %v5367_v37 = vld [vmem:[%s7711_s8] ss:$0 sm:$0xff] }
 0xb2d   : > { %5874 = vmatprep.subr.msk.mxu1 %vm2270_vm12, %v2786_v35 }
 0xb2e   : > { %v2933_v54 = vadd.f32 %v2926_v1, %v2912_v28 }
 0xb30   : > { %5875 = vmatpush3.xpose.msk.msra.mxu1 %vm2270_vm12, %v2786_v35 }
 0xb31   : > { %5876 = vmatprep.subr.msk.mxu1 %vm2270_vm12, %v2785_v40 }
 0xb34   : > { %5877 = vmatpush3.xpose.msk.msra.mxu1 %vm2270_vm12, %v2785_v40 }
 0xb35   : > { %5878 = vmatprep.subr.msk.mxu1 %vm2270_vm12, %v2784_v46 }
 0xb38   : > { %5879 = vmatpush3.xpose.msk.msra.mxu1 %vm2270_vm12, %v2784_v46 }
 0xb39   : > { %5880 = vmatprep.subr.msk.mxu1 %vm2270_vm12, %v2783_v50 }
 0xb3c   : > { %5881 = vmatpush3.xpose.msk.msra.mxu1 %vm2270_vm12, %v2783_v50  ;;  %v3227_v50 = vld [vmem:[%s7710_s6 + $0x38] sm:$0xff] }
 0xb3d   : > { %5882 = vmatprep.subr.msk.mxu1 %vm2270_vm12, %v2782_v57  ;;  %5921 = vmatprep.subr.mxu0 %v3227_v50 }
 0xb40   : > { %5883 = vmatpush3.xpose.msk.msra.mxu1 %vm2270_vm12, %v2782_v57  ;;  %v3225_v57 = vld [vmem:[%s7710_s6 + $0x28] sm:$0xff] }
 0xb41   : > { %5904 = vmatprep.subr.msk.mxu1 %vm1801_vm2, %v2937_v27 }
 0xb43   : > { %5885 = vmatmul.mubr.msk.f32.vlgmr.msra.gmra.mxu1 %vm2270_vm12, %v2373_v62  ;;  %v3223_v62 = vld [vmem:[%s7710_s6 + $0x18] sm:$0xff] }
 0xb44   : > { %5905 = vmatpush3.msk.msra.mxu1 %vm1801_vm2, %v2937_v27 }
 0xb45   : > { %5906 = vmatprep.subr.mxu1 %v2936_v26 }
 0xb46   : > { %5907 = vmatpush3.msra.mxu1 %v2936_v26 }
 0xb47   : > { %5908 = vmatprep.subr.mxu1 %v2935_v31 }
 0xb48   : > { %5909 = vmatpush3.msra.mxu1 %v2935_v31 }
 0xb49   : > { %5910 = vmatprep.subr.mxu1 %v2934_v13 }
 0xb4a   : > { %5911 = vmatpush3.msra.mxu1 %v2934_v13 }
 0xb4b   : > { %5912 = vmatprep.subr.mxu1 %v2933_v54 }
 0xb4c   : > { %5913 = vmatpush3.msra.mxu1 %v2933_v54 }
 0xb4d   : > { %5914 = vmatprep.subr.mxu1 %v2932_v39 }
 0xb4e   : > { %5915 = vmatpush3.msra.mxu1 %v2932_v39 }
 0xb4f   : > { %5916 = vmatprep.subr.mxu1 %v2931_v29 }
 0xb50   : > { %5917 = vmatpush3.msra.mxu1 %v2931_v29 }
 0xc03   : > { %v5886_v32 = vpop.f32.mrf.mxu1 }
 0xc04   : > { %v3037_v43 = vadd.f32 %v5886_v32, %v2095_v41 }
 0xc05   : > { %v3031_v35 = vpop.f32.mrf.mxu1 }
 0xc06   : > { %v3032_v4 = vadd.f32 %v3031_v35, %v2094_v7  ;;  %v3045_v36 = vsel %vm3044_vm14, %v3037_v43, -inf }
 0xc07   : > { %3046 = vmax.xlane.f32.xlu0 %v3045_v36 }
 0xc08   : > { %v3041_v38 = vsel %vm3040_vm15, %v3032_v4, -inf }
 0xc09   : > { %3042 = vmax.xlane.f32.xlu1 %v3041_v38 }
 0xc90   : > { %v3047_v40 = vpop.xlane.xlu0 %3046 }
 0xc91   : > { %v3049_v42 = vsub.f32 %v3037_v43, %v3047_v40 }
 0xc92   : > { %v3043_v44 = vpop.xlane.xlu1 %3042 }
 0xc93   : > { %v3048_v45 = vsub.f32 %v3032_v4, %v3043_v44  ;;  %v3052_v46 = vmul.f32 1.442695, %v3049_v42 }
 0xc95   : > { %v3050_v47 = vmul.f32 1.442695, %v3048_v45 }
 0xc97   : > { %6295 = vpow2.f32 %v3050_v47 }
 0xc98   : > { %6297 = vpow2.f32 %v3052_v46 }
 0xca4   : > { %v6296_v48 = vpop.eup %6295 }
 0xca5   : > { %v6298_v49 = vpop.eup %6297  ;;  %5901 = vmatprep.mubr.msk.f32.mxu0 %vm3040_vm15, %v6296_v48  ;;  %5918 = vmatprep.mubr.msk.f32.mxu1 %vm3040_vm15, %v6296_v48  ;;  %v3388_v48 = vld [vmem:[%s7712_s9 + $0x38] sm:$0xff] }
 0xca6   : > { %5902 = vmatmul.mubr.msk.f32.vlgmr.msra.gmra.mxu0 %vm3040_vm15, %v6298_v49  ;;  %5919 = vmatmul.mubr.msk.f32.vlgmr.msra.gmra.mxu1 %vm3040_vm15, %v6298_v49  ;;  %v3387_v49 = vld [vmem:[%s7712_s9 + $0x30] sm:$0xff] }
 0xca7   : > { %3459 = vmatprep.mubr.f32.mxu1 %v6456_v61  ;;  %5922 = vmatpush3.msra.mxu0 %v3227_v50  ;;  %v3386_v50 = vld [vmem:[%s7712_s9 + $0x28] sm:$0xff] }
 0xca8   : > { %5923 = vmatprep.subr.mxu0 %v3226_v52  ;;  %3419 = vmatprep.subr.mxu1 %v3388_v48 }
 0xca9   : > { %5924 = vmatpush3.msra.mxu0 %v3226_v52  ;;  %v3385_v52 = vld [vmem:[%s7712_s9 + $0x20] sm:$0xff]  ;;  %3420 = vmatpush1.msra.mxu1 %v3387_v49 }
 0xcaa   : > { %5925 = vmatprep.subr.mxu0 %v3225_v57  ;;  %3421 = vmatprep.subr.mxu1 %v3386_v50 }
 0xcab   : > { %5926 = vmatpush3.msra.mxu0 %v3225_v57  ;;  %v3384_v57 = vld [vmem:[%s7712_s9 + $0x18] sm:$0xff]  ;;  %3422 = vmatpush1.msra.mxu1 %v3385_v52 }
 0xcac   : > { %5927 = vmatprep.subr.mxu0 %v3224_v60  ;;  %3423 = vmatprep.subr.mxu1 %v3384_v57 }
 0xcad   : > { %5928 = vmatpush3.msra.mxu0 %v3224_v60  ;;  %v3383_v60 = vld [vmem:[%s7712_s9 + $0x10] sm:$0xff] }
 0xcae   : > { %5929 = vmatprep.subr.mxu0 %v3223_v62  ;;  %3424 = vmatpush1.msra.mxu1 %v3383_v60 }
 0xcaf   : > { %5930 = vmatpush3.msra.mxu0 %v3223_v62  ;;  %v3382_v62 = vld [vmem:[%s7712_s9 + $0x8] sm:$0xff] }
 0xcb0   : > { %5931 = vmatprep.subr.mxu0 %v3222_v55  ;;  %3425 = vmatprep.subr.mxu1 %v3382_v62 }
 0xcb1   : > { %5932 = vmatpush3.msra.mxu0 %v3222_v55  ;;  %v3381_v55 = vld [vmem:[%s7712_s9] sm:$0xff] }
 0xcb2   : > { %5933 = vmatprep.subr.mxu0 %v3221_v63  ;;  %3426 = vmatpush1.msra.mxu1 %v3381_v55 }
 0xcb3   : > { %5934 = vmatpush3.msra.mxu0 %v3221_v63 }
 0xcb4   : > { %5935 = vmatprep.subr.mxu0 %v3220_v2 }
 0xcb5   : > { %5936 = vmatpush3.msra.mxu0 %v3220_v2 }
 0xd66   : > { %v5903_v3 = vpop.f32.mrf.mxu0  ;;  %v5920_v5 = vpop.f32.mrf.mxu1 }
 0xd67   : > { %6299 = vrcp.f32 %v5903_v3 }
 0xd68   : > { %v3129_v0 = vpop.f32.mrf.mxu0  ;;  %v3207_v9 = vpop.f32.mrf.mxu1 }
 0xd69   : > { %6301 = vrcp.f32 %v3129_v0 }
 0xd74   : > { %v6300_v6 = vpop.eup %6299 }
 0xd75   : > { %v3219_v12 = vmul.f32 %v6300_v6, %v5920_v5 }
 0xd76   : > { %v6302_v8 = vpop.eup %6301 }
 0xd77   : > { %v3218_v11 = vmul.f32 %v6302_v8, %v3207_v9 }
 0xd79   : > { %5937 = vmatprep.mubr.msk.f32.mxu0 %vm2270_vm12, %v3218_v11 }
 0xd7a   : > { %5938 = vmatmul.mubr.msk.f32.vlgmr.msra.gmra.mxu0 %vm2270_vm12, %v3219_v12  ;;  %v5368_v12 = vld [vmem:[%s7713_s12] ss:$0 sm:$0xff] }
 0xd7b   : > { %3696 = vmatprep.mubr.f32.mxu0 %v6456_v61 }
 0xe3a   : > { %v5939_v14 = vpop.f32.mrf.mxu0 }
 0xe3b   : > { %v3313_v17 = vsel %vm2101_vm7, %v5939_v14, 0.0 }
 0xe3c   : > { %3314 = vadd.xlane.f32.xlu1 %v3313_v17  ;;  %v3300_v19 = vpop.f32.mrf.mxu0 }
 0xe3d   : > { %v3310_v20 = vsel %vm2097_vm8, %v3300_v19, 0.0 }
 0xe3e   : > { %3311 = vadd.xlane.f32.xlu0 %v3310_v20  ;;  %v3503_v20 = vld [vmem:[%s6651_s4 + $0x78] sm:$0xff] }
 0xe3f   : > { %5940 = vmatprep.subr.mxu1 %v3503_v20 }
 0xec5   : > { %v3315_v30 = vpop.xlane.xlu1 %3314 }
 0xec6   : > { %v3317_v21 = vmul.f32 0.03125, %v3315_v30  ;;  %v3502_v30 = vld [vmem:[%s6651_s4 + $0x70] sm:$0xff] }
 0xec7   : > { %v3312_v22 = vpop.xlane.xlu0 %3311 }
 0xec8   : > { %v3319_v23 = vsub.f32 %v5939_v14, %v3317_v21  ;;  %v3316_v24 = vmul.f32 0.03125, %v3312_v22  ;;  %v3501_v21 = vld [vmem:[%s6651_s4 + $0x68] sm:$0xff]  ;;  %v3500_v22 = vld [vmem:[%s6651_s4 + $0x60] sm:$0xff] }
 0xeca   : > { %v3318_v59 = vsub.f32 %v3300_v19, %v3316_v24  ;;  %v3321_v25 = vmul.f32 %v3319_v23, %v3319_v23  ;;  %v3498_v24 = vld [vmem:[%s6651_s4 + $0x50] sm:$0xff] }
 0xecc   : > { %v3325_v58 = vsel %vm2101_vm7, %v3321_v25, 0.0  ;;  %v3320_v26 = vmul.f32 %v3318_v59, %v3318_v59  ;;  %v3496_v25 = vld [vmem:[%s6651_s4 + $0x40] sm:$0xff] }
 0xecd   : > { %3326 = vadd.xlane.f32.xlu1 %v3325_v58  ;;  %v3495_v58 = vld [vmem:[%s6651_s4 + $0x38] sm:$0xff] }
 0xece   : > { %v3322_v27 = vsel %vm2097_vm8, %v3320_v26, 0.0  ;;  %v3494_v26 = vld [vmem:[%s6651_s4 + $0x30] sm:$0xff] }
 0xecf   : > { %3323 = vadd.xlane.f32.xlu0 %v3322_v27  ;;  %v3493_v27 = vld [vmem:[%s6651_s4 + $0x28] sm:$0xff] }
 0xf56   : > { %v3327_v28 = vpop.xlane.xlu1 %3326 }
 0xf57   : > { %v3329_v1 = vmul.f32 0.03125, %v3327_v28  ;;  %v3492_v28 = vld [vmem:[%s6651_s4 + $0x20] sm:$0xff] }
 0xf58   : > { %v3324_v31 = vpop.xlane.xlu0 %3323 }
 0xf59   : > { %v3331_v33 = vadd.f32 1e-05, %v3329_v1  ;;  %v3328_v10 = vmul.f32 0.03125, %v3324_v31  ;;  %v3491_v1 = vld [vmem:[%s6651_s4 + $0x18] sm:$0xff]  ;;  %v3490_v31 = vld [vmem:[%s6651_s4 + $0x10] sm:$0xff] }
 0xf5b   : > { %6303 = vrsqrt.f32 %v3331_v33  ;;  %v3330_v13 = vadd.f32 1e-05, %v3328_v10  ;;  %v3489_v33 = vld [vmem:[%s6651_s4 + $0x8] sm:$0xff]  ;;  %v3488_v10 = vld [vmem:[%s6651_s4] sm:$0xff] }
 0xf5d   : > { %6305 = vrsqrt.f32 %v3330_v13 }
 0xf68   : > { %v6304_v34 = vpop.eup %6303 }
 0xf69   : > { %v3335_v54 = vmul.f32 %v6304_v34, %v3319_v23  ;;  %v3499_v23 = vld [vmem:[%s6651_s4 + $0x58] sm:$0xff] }
 0xf6a   : > { %v6306_v39 = vpop.eup %6305 }
 0xf6b   : > { %v3343_v29 = vmul.f32 %v5367_v37, %v3335_v54  ;;  %v3334_v41 = vmul.f32 %v6306_v39, %v3318_v59  ;;  %v3497_v59 = vld [vmem:[%s6651_s4 + $0x48] sm:$0xff] }
 0xf6d   : > { %v7232_v32 = vadd.f32 %v3343_v29, %v6909_v16  ;;  %v3342_v7 = vmul.f32 %v5367_v37, %v3334_v41 }
 0xf6f   : > { %v3350_v43 = vsel %vm2101_vm7, %v7232_v32, 0.0  ;;  %v7237_v35 = vadd.f32 %v3342_v7, %v6911_v18 }
 0xf70   : > { %3351 = vadd.xlane.f32.xlu1 %v3350_v43 }
 0xf71   : > { %v3347_v4 = vsel %vm2097_vm8, %v7237_v35, 0.0 }
 0xf72   : > { %3348 = vadd.xlane.f32.xlu0 %v3347_v4 }
 0xff9   : > { %v3352_v36 = vpop.xlane.xlu1 %3351 }
 0xffa   : > { %v3354_v38 = vmul.f32 0.03125, %v3352_v36 }
 0xffb   : > { %v3349_v16 = vpop.xlane.xlu0 %3348 }
 0xffc   : > { %v3356_v40 = vsub.f32 %v7232_v32, %v3354_v38  ;;  %v3353_v42 = vmul.f32 0.03125, %v3349_v16 }
 0xffe   : > { %v3355_v18 = vsub.f32 %v7237_v35, %v3353_v42  ;;  %v3358_v44 = vmul.f32 %v3356_v40, %v3356_v40 }
0x1000   : > { %v3362_v45 = vsel %vm2101_vm7, %v3358_v44, 0.0  ;;  %v3357_v46 = vmul.f32 %v3355_v18, %v3355_v18 }
0x1001   : > { %3363 = vadd.xlane.f32.xlu1 %v3362_v45 }
0x1002   : > { %v3359_v47 = vsel %vm2097_vm8, %v3357_v46, 0.0 }
0x1003   : > { %3360 = vadd.xlane.f32.xlu0 %v3359_v47 }
0x108a   : > { %v3364_v63 = vpop.xlane.xlu1 %3363 }
0x108b   : > { %v3366_v2 = vmul.f32 0.03125, %v3364_v63 }
0x108c   : > { %v3361_v3 = vpop.xlane.xlu0 %3360 }
0x108d   : > { %v3368_v0 = vadd.f32 1e-05, %v3366_v2  ;;  %v3365_v5 = vmul.f32 0.03125, %v3361_v3  ;;  %v5382_v3 = vld [vmem:[%s7696_s0 + $0x78] sm:$0xff] }
0x108e   : > { %3656 = vmatprep.subr.mxu0 %v5382_v3 }
0x108f   : > { %v3367_v6 = vadd.f32 1e-05, %v3365_v5  ;;  %6307 = vrsqrt.f32 %v3368_v0  ;;  %v5381_v0 = vld [vmem:[%s7696_s0 + $0x70] sm:$0xff]  ;;  %v5380_v5 = vld [vmem:[%s7696_s0 + $0x68] sm:$0xff] }
0x1090   : > { %3657 = vmatpush1.msra.mxu0 %v5381_v0 }
0x1091   : > { %6309 = vrsqrt.f32 %v3367_v6  ;;  %v5379_v6 = vld [vmem:[%s7696_s0 + $0x60] sm:$0xff]  ;;  %3658 = vmatprep.subr.mxu0 %v5380_v5 }
0x1092   : > { %3659 = vmatpush1.msra.mxu0 %v5379_v6 }
0x109c   : > { %v6308_v8 = vpop.eup %6307 }
0x109d   : > { %v3372_v17 = vmul.f32 %v6308_v8, %v3356_v40  ;;  %v5378_v8 = vld [vmem:[%s7696_s0 + $0x58] sm:$0xff] }
0x109e   : > { %v6310_v9 = vpop.eup %6309  ;;  %3660 = vmatprep.subr.mxu0 %v5378_v8 }
0x109f   : > { %v3371_v11 = vmul.f32 %v6310_v9, %v3355_v18  ;;  %v3380_v19 = vmul.f32 %v5368_v12, %v3372_v17  ;;  %v5377_v9 = vld [vmem:[%s7696_s0 + $0x50] sm:$0xff] }
0x10a0   : > { %3661 = vmatpush1.msra.mxu0 %v5377_v9  ;;  %v6383_v9 = vld [vmem:[%s7703_s1] sm:$0xff] }
0x10a1   : > { %v3379_v14 = vmul.f32 %v5368_v12, %v3371_v11  ;;  %v5376_v11 = vld [vmem:[%s7696_s0 + $0x48] sm:$0xff]  ;;  %v5375_v12 = vld [vmem:[%s7696_s0 + $0x40] sm:$0xff]  ;;  %s7714_s0 = smov 112  }
0x10a2   : > { %3662 = vmatprep.subr.mxu0 %v5376_v11 }
0x10a3   : > { %5369 = vmatmul.mubr.msk.f32.vlgmr.msra.gmra.mxu1 %vm2097_vm8, %v3379_v14  ;;  %3663 = vmatpush1.msra.mxu0 %v5375_v12  ;;  %v6371_v14 = vld [vmem:[%s7700_s7 + $0x38] sm:$0xff]  ;;  %v6384_v12 = vld [vmem:[%s7704_s18 + $0x8] sm:$0xff] }
0x10a4   : > { %3465 = vmatprep.mubr.f32.mxu1 %v6456_v61  ;;  %5941 = vmatpush3.msra.mxu1 %v3503_v20 }
0x10a5   : > { %5942 = vmatprep.subr.mxu1 %v3502_v30  ;;  %5975 = vmatprep.subr.mxu0 %v6371_v14 }
0x10a6   : > { %5943 = vmatpush3.msra.mxu1 %v3502_v30 }
0x10a7   : > { %5370 = vmatmul.mubr.msk.f32.gmra.mxu1 %vm2097_vm8, %v3380_v19  ;;  %5944 = vmatprep.subr.mxu1 %v3501_v21 }
0x10a8   : > { %5945 = vmatpush3.msra.mxu1 %v3501_v21 }
0x10a9   : > { %5946 = vmatprep.subr.mxu1 %v3500_v22 }
0x10aa   : > { %5947 = vmatpush3.msra.mxu1 %v3500_v22 }
0x10ab   : > { %5948 = vmatprep.subr.mxu1 %v3499_v23 }
0x10ac   : > { %5949 = vmatpush3.msra.mxu1 %v3499_v23 }
0x10ad   : > { %5950 = vmatprep.subr.mxu1 %v3498_v24 }
0x10ae   : > { %5951 = vmatpush3.msra.mxu1 %v3498_v24 }
0x10af   : > { %5952 = vmatprep.subr.mxu1 %v3497_v59 }
0x10b0   : > { %5953 = vmatpush3.msra.mxu1 %v3497_v59 }
0x10b1   : > { %5954 = vmatprep.subr.mxu1 %v3496_v25 }
0x10b2   : > { %5955 = vmatpush3.msra.mxu1 %v3496_v25  ;;  %v5374_v25 = vld [vmem:[%s7698_s28 + $0x1] ss:$0 sm:$0xff] }
0x10b3   : > { %5956 = vmatprep.subr.mxu1 %v3495_v58 }
0x10b4   : > { %5957 = vmatpush3.msra.mxu1 %v3495_v58 }
0x10b5   : > { %5958 = vmatprep.subr.mxu1 %v3494_v26 }
0x10b6   : > { %5959 = vmatpush3.msra.mxu1 %v3494_v26 }
0x10b7   : > { %5960 = vmatprep.subr.mxu1 %v3493_v27 }
0x10b8   : > { %5961 = vmatpush3.msra.mxu1 %v3493_v27 }
0x10b9   : > { %5962 = vmatprep.subr.mxu1 %v3492_v28 }
0x10ba   : > { %5963 = vmatpush3.msra.mxu1 %v3492_v28  ;;  %v6372_v28 = vld [vmem:[%s7700_s7 + $0x30] sm:$0xff] }
0x10bb   : > { %5964 = vmatprep.subr.mxu1 %v3491_v1 }
0x10bc   : > { %5965 = vmatpush3.msra.mxu1 %v3491_v1  ;;  %v6373_v1 = vld [vmem:[%s7700_s7 + $0x28] sm:$0xff] }
0x10bd   : > { %5966 = vmatprep.subr.mxu1 %v3490_v31 }
0x10be   : > { %5967 = vmatpush3.msra.mxu1 %v3490_v31  ;;  %v6374_v31 = vld [vmem:[%s7700_s7 + $0x20] sm:$0xff] }
0x10bf   : > { %5968 = vmatprep.subr.mxu1 %v3489_v33 }
0x10c0   : > { %5969 = vmatpush3.msra.mxu1 %v3489_v33  ;;  %v6375_v33 = vld [vmem:[%s7700_s7 + $0x18] sm:$0xff] }
0x10c1   : > { %5970 = vmatprep.subr.mxu1 %v3488_v10 }
0x10c2   : > { %5971 = vmatpush3.msra.mxu1 %v3488_v10  ;;  %v6376_v10 = vld [vmem:[%s7700_s7 + $0x10] sm:$0xff] }
0x10c3   : > { %6019 = vmatprep.subr.mxu1 %v6456_v61 }
0x1163   : > { %v3461_v13 = vpop.f32.mrf.mxu1 }
0x1165   : > { %v3463_v34 = vpop.f32.mrf.mxu1 }
0x1166   : > { %v5371_v37 = vmul.f32 -1.442695, %v3463_v34 }
0x1167   : > { %v3467_v54 = vpop.f32.mrf.mxu1 }
0x1168   : > { %6311 = vpow2.f32 %v5371_v37 }
0x1169   : > { %v3469_v39 = vpop.f32.mrf.mxu1 }
0x116a   : > { %v5372_v29 = vmul.f32 -1.442695, %v3469_v39 }
0x116c   : > { %6313 = vpow2.f32 %v5372_v29 }
0x1175   : > { %v6312_v41 = vpop.eup %6311 }
0x1176   : > { %v3478_v7 = vadd.f32 1.0, %v6312_v41 }
0x1178   : > { %6315 = vrcp.f32 %v3478_v7 }
0x1179   : > { %v6314_v43 = vpop.eup %6313 }
0x117a   : > { %v3479_v4 = vadd.f32 1.0, %v6314_v43  ;;  %v6379_v43 = vld [vmem:[%s7701_s10] sm:$0xff] }
0x117c   : > { %6317 = vrcp.f32 %v3479_v4 }
0x1185   : > { %v6316_v36 = vpop.eup %6315 }
0x1186   : > { %v3484_v38 = vmul.f32 %v6316_v36, %v3463_v34  ;;  %v6378_v34 = vld [vmem:[%s7700_s7] sm:$0xff] }
0x1188   : > { %v3486_v16 = vmul.f32 %v3484_v38, %v3461_v13  ;;  %v6377_v13 = vld [vmem:[%s7700_s7 + $0x8] sm:$0xff]  ;;  %s7716_s7 = smov 96  }
0x1189   : > { %v6318_v40 = vpop.eup %6317 }
0x118a   : > { %v3485_v42 = vmul.f32 %v6318_v40, %v3469_v39  ;;  %5972 = vmatprep.mubr.f32.mxu1 %v3486_v16  ;;  %v6380_v16 = vld [vmem:[%s7701_s10 + $0x8] sm:$0xf] }
0x118c   : > { %v3487_v18 = vmul.f32 %v3485_v42, %v3467_v54 }
0x118e   : > { %5973 = vmatmul.mubr.f32.vlgmr.msra.gmra.mxu1 %v3487_v18 }
0x118f   : > { %6023 = vmatprep.mubr.msk.f32.mxu1 %vm6462_vm11, %v6456_v61 }
0x124e   : > { %v5974_v44 = vpop.f32.mrf.mxu1 }
0x124f   : > { %v7277_v45 = vadd.f32 %v5974_v44, %v7232_v32 }
0x1250   : > { %v3570_v46 = vpop.f32.mrf.mxu1 }
0x1251   : > { %v7280_v47 = vadd.f32 %v3570_v46, %v7237_v35  ;;  %v3586_v48 = vsel %vm2101_vm7, %v7277_v45, 0.0 }
0x1252   : > { %3587 = vadd.xlane.f32.xlu1 %v3586_v48 }
0x1253   : > { %v3583_v49 = vsel %vm2097_vm8, %v7280_v47, 0.0 }
0x1254   : > { %3584 = vadd.xlane.f32.xlu0 %v3583_v49 }
0x12db   : > { %v3588_v50 = vpop.xlane.xlu1 %3587 }
0x12dc   : > { %v3590_v52 = vmul.f32 0.03125, %v3588_v50 }
0x12dd   : > { %v3585_v32 = vpop.xlane.xlu0 %3584 }
0x12de   : > { %v3592_v57 = vsub.f32 %v7277_v45, %v3590_v52  ;;  %v3589_v35 = vmul.f32 0.03125, %v3585_v32  ;;  %v6381_v52 = vld [vmem:[%s7702_s16] sm:$0xff] }
0x12e0   : > { %v3591_v60 = vsub.f32 %v7280_v47, %v3589_v35  ;;  %v3594_v62 = vmul.f32 %v3592_v57, %v3592_v57 }
0x12e2   : > { %v3598_v55 = vsel %vm2101_vm7, %v3594_v62, 0.0  ;;  %v3593_v63 = vmul.f32 %v3591_v60, %v3591_v60 }
0x12e3   : > { %3599 = vadd.xlane.f32.xlu1 %v3598_v55 }
0x12e4   : > { %v3595_v2 = vsel %vm2097_vm8, %v3593_v63, 0.0 }
0x12e5   : > { %3596 = vadd.xlane.f32.xlu0 %v3595_v2 }
0x136c   : > { %v3600_v17 = vpop.xlane.xlu1 %3599 }
0x136d   : > { %v3602_v19 = vmul.f32 0.03125, %v3600_v17 }
0x136e   : > { %v3597_v20 = vpop.xlane.xlu0 %3596 }
0x136f   : > { %v3604_v30 = vadd.f32 1e-05, %v3602_v19  ;;  %v3601_v21 = vmul.f32 0.03125, %v3597_v20 }
0x1371   : > { %v3603_v22 = vadd.f32 1e-05, %v3601_v21  ;;  %6319 = vrsqrt.f32 %v3604_v30  ;;  %v6385_v30 = vld [vmem:[%s7704_s18] sm:$0xff] }
0x1373   : > { %6321 = vrsqrt.f32 %v3603_v22  ;;  %v6386_v22 = vld [vmem:[%s7703_s1 + $0x8] sm:$0xff] }
0x137e   : > { %v6320_v23 = vpop.eup %6319 }
0x137f   : > { %v3608_v26 = vmul.f32 %v6320_v23, %v3592_v57  ;;  %v7360_v23 = vld [vmem:[%s7705_s15 + $0x30] sm:$0xf] }
0x1380   : > { %v6322_v24 = vpop.eup %6321 }
0x1381   : > { %v3607_v59 = vmul.f32 %v6322_v24, %v3591_v60  ;;  %v3616_v27 = vmul.f32 %v5374_v25, %v3608_v26  ;;  %v6389_v26 = vld [vmem:[%s7703_s1 + $0x18] sm:$0xff] }
0x1383   : > { %v3615_v58 = vmul.f32 %v5374_v25, %v3607_v59 }
0x1385   : > { %5383 = vmatmul.mubr.msk.f32.vlgmr.msra.gmra.mxu0 %vm2097_vm8, %v3615_v58  ;;  %v6388_v58 = vld [vmem:[%s7703_s1 + $0x10] sm:$0xff] }
0x1386   : > { %3702 = vmatprep.mubr.f32.mxu0 %v6456_v61  ;;  %5976 = vmatpush3.msra.mxu0 %v6371_v14 }
0x1387   : > { %5977 = vmatprep.subr.mxu0 %v6372_v28 }
0x1388   : > { %5978 = vmatpush3.msra.mxu0 %v6372_v28 }
0x1389   : > { %5384 = vmatmul.mubr.msk.f32.gmra.mxu0 %vm2097_vm8, %v3616_v27  ;;  %5979 = vmatprep.subr.mxu0 %v6373_v1  ;;  %v6390_v27 = vld [vmem:[%s7703_s1 + $0x20] sm:$0xff] }
0x138a   : > { %5980 = vmatpush3.msra.mxu0 %v6373_v1  ;;  %v6391_v1 = vld [vmem:[%s7703_s1 + $0x28] sm:$0xff] }
0x138b   : > { %5981 = vmatprep.subr.mxu0 %v6374_v31 }
0x138c   : > { %5982 = vmatpush3.msra.mxu0 %v6374_v31 }
0x138d   : > { %5983 = vmatprep.subr.mxu0 %v6375_v33 }
0x138e   : > { %5984 = vmatpush3.msra.mxu0 %v6375_v33 }
0x138f   : > { %5985 = vmatprep.subr.mxu0 %v6376_v10 }
0x1390   : > { %5986 = vmatpush3.msra.mxu0 %v6376_v10 }
0x1391   : > { %5987 = vmatprep.subr.mxu0 %v6377_v13 }
0x1392   : > { %5988 = vmatpush3.msra.mxu0 %v6377_v13  ;;  %v6392_v13 = vld [vmem:[%s7703_s1 + $0x30] sm:$0xf] }
0x1393   : > { %5989 = vmatprep.subr.mxu0 %v6378_v34 }
0x1394   : > { %5990 = vmatpush3.msra.mxu0 %v6378_v34 }
0x1395   : > { %5994 = vmatprep.subr.mxu0 %v6456_v61 }
0x1445   : > { %v3698_v37 = vpop.f32.mrf.mxu0 }
0x1446   : > { %v3711_v49 = vmul.f32 %v3698_v37, %v6969_v15  ;;  %v3709_v32 = vmul.f32 %v6381_v52, %v3698_v37 }
0x1447   : > { %v3700_v54 = vpop.f32.mrf.mxu0 }
0x1448   : > { %v3725_v39 = vmul.f32 %v3700_v54, %v6944_v56  ;;  %v3723_v4 = vmul.f32 %v6379_v43, %v3700_v54 }
0x1449   : > { %v3704_v29 = vpop.f32.mrf.mxu0 }
0x144a   : > { %3729 = vrot.lane.b32.xlu1 %v3725_v39, %s7714_s0  ;;  %v3712_v48 = vmul.f32 %v3704_v29, %v6972_v53  ;;  %v6382_v53 = vld [vmem:[%s7702_s16 + $0x8] sm:$0xf] }
0x144b   : > { %v3706_v41 = vpop.f32.mrf.mxu0  ;;  %v3710_v62 = vmul.f32 %v6382_v53, %v3704_v29 }
0x144c   : > { %v3726_v7 = vmul.f32 %v3706_v41, %v6941_v51  ;;  %v3724_v40 = vmul.f32 %v6380_v16, %v3706_v41 }
0x144e   : > { %3731 = vrot.lane.b32.xlu0 %v3726_v7, %s7714_s0  ;;  %s7715_s0 = smov 64  }
0x14bc   : > { %v3730_v36 = vpop.permute.xlu1 %3729 }
0x14bd   : > { %v7316_v38 = vadd.f32 %v3730_v36, %v3723_v4 }
0x14bf   : > { %v3842_v42 = vmul.f32 %v7316_v38, %v7316_v38 }
0x14c0   : > { %v3732_v56 = vpop.permute.xlu0 %3731 }
0x14c1   : > { %v7321_v18 = vadd.f32 %v3732_v56, %v3724_v40  ;;  %v3844_v44 = vsel %vm2376_vm10, %v3842_v42, 0.0 }
0x14c2   : > { %3845 = vadd.xlane.f32.xlu0 %v3844_v44 }
0x14c3   : > { %v3843_v51 = vmul.f32 %v7321_v18, %v7321_v18 }
0x14c5   : > { %v3847_v46 = vsel %vm2380_vm9, %v3843_v51, 0.0 }
0x14c6   : > { %3848 = vadd.xlane.f32.xlu1 %v3847_v46 }
0x14d7   : > { %3717 = vrot.lane.b32.xlu1 %v3712_v48, %s7715_s0 }
0x14d8   : > { %3715 = vrot.lane.b32.xlu0 %v3711_v49, %s7715_s0 }
0x14db   : > { %3979 = vrot.lane.b32.xlu1 %v3706_v41, %s7716_s7 }
0x14dc   : > { %3977 = vrot.lane.b32.xlu0 %v3700_v54, %s7716_s7  ;;  %s5483_s7 = sshll.u32 %s7718_s23, 4 }
0x14dd   : > { %s1233_s0 = scalar_lea.vmem %s6666_s24, %s5483_s7 }
0x154b   : > { %v3846_v50 = vpop.xlane.xlu0 %3845 }
0x154c   : > { %6323 = vrsqrt.f32 %v3846_v50  ;;  %vm3852_vm9 = vcmp.eq.f32.partialorder %v3846_v50, inf  ;;  %v3855_v8 = vand.u32 2147483648, %v3846_v50  ;;  %vm3854_vm0 = vcmp.eq.f32.partialorder %v3846_v50, 0.0 }
0x154f   : > { %v3716_v57 = vpop.permute.xlu0 %3715  ;;  %v3849_v35 = vpop.xlane.xlu1 %3848 }
0x1550   : > { %v7334_v60 = vadd.f32 %v3716_v57, %v3709_v32  ;;  %6325 = vrsqrt.f32 %v3849_v35  ;;  %vm3859_vm1 = vcmp.eq.f32.partialorder %v3849_v35, inf  ;;  %v3862_v21 = vand.u32 2147483648, %v3849_v35 }
0x1551   : > { %vm3861_vm3 = vcmp.eq.f32.partialorder %v3849_v35, 0.0 }
0x1552   : > { %v3737_v15 = vmul.f32 %v7334_v60, %v7334_v60 }
0x1553   : > { %v3718_v55 = vpop.permute.xlu1 %3717  ;;  %v3978_v5 = vpop.permute.xlu0 %3977 }
0x1554   : > { %v7339_v63 = vadd.f32 %v3718_v55, %v3710_v62  ;;  %5991 = vmatprep.mubr.msk.f32.mxu0 %vm2270_vm12, %v3737_v15  ;;  %v7442_v55 = vld [vmem:[%s7705_s15 + $0x28] sm:$0xff] }
0x1556   : > { %v3738_v2 = vmul.f32 %v7339_v63, %v7339_v63 }
0x1557   : > { %v3980_v3 = vpop.permute.xlu1 %3979 }
0x1558   : > { %5992 = vmatmul.mubr.msk.f32.vlgmr.msra.gmra.mxu0 %vm2270_vm12, %v3738_v2  ;;  %6020 = vmatpush3.msk.msra.mxu1 %vm1801_vm2, %v3980_v3  ;;  %v7448_v2 = vld [vmem:[%s7705_s15 + $0x20] sm:$0xff] }
0x1559   : > { %v6324_v0 = vpop.eup %6323  ;;  %6021 = vmatprep.subr.mxu1 %v6456_v61  ;;  %5998 = vmatprep.mubr.msk.f32.mxu0 %vm6462_vm11, %v6456_v61 }
0x155a   : > { %v3851_v6 = vmul.f32 %v6324_v0, %v3846_v50  ;;  %6022 = vmatpush3.msra.mxu1 %v3978_v5  ;;  %v7455_v0 = vld [vmem:[%s7705_s15 + $0x18] sm:$0xff] }
0x155b   : > { %6024 = vmatmul.mubr.msk.f32.vlgmr.msra.gmra.mxu1 %vm2406_vm13, %v6383_v9  ;;  %6069 = vmatprep.subr.mxu1 %v6456_v61 }
0x155c   : > { %v3853_v11 = vsel %vm3852_vm9, %v3846_v50, %v3851_v6  ;;  %6026 = vmatprep.mubr.msk.f32.mxu1 %vm6462_vm11, %v6456_v61  ;;  %6070 = vmatpush3.msra.mxu1 %v6384_v12  ;;  %v7461_v6 = vld [vmem:[%s7705_s15 + $0x10] sm:$0xff] }
0x155d   : > { %v6326_v14 = vpop.eup %6325  ;;  %v3856_v17 = vsel %vm3854_vm0, %v3855_v8, %v3853_v11  ;;  %6071 = vmatprep.subr.mxu1 %v6456_v61 }
0x155e   : > { %v3858_v19 = vmul.f32 %v6326_v14, %v3849_v35  ;;  %v3864_v20 = vmax.f32 %v3856_v17, 1e-12  ;;  %6072 = vmatpush3.msra.mxu1 %v6385_v30 }
0x155f   : > { %6027 = vmatmul.mubr.msk.f32.gmra.mxu1 %vm2406_vm13, %v6386_v22  ;;  %6111 = vmatprep.subr.msk.mxu1 %vm1801_vm2, %v7360_v23 }
0x1560   : > { %v3860_v24 = vsel %vm3859_vm1, %v3849_v35, %v3858_v19  ;;  %6029 = vmatprep.mubr.msk.f32.mxu1 %vm6462_vm11, %v6456_v61  ;;  %6327 = vrcp.f32 %v3864_v20 }
0x1561   : > { %v3863_v59 = vsel %vm3861_vm3, %v3862_v21, %v3860_v24 }
0x1562   : > { %v3865_v25 = vmax.f32 %v3863_v59, 1e-12 }
0x1563   : > { %6030 = vmatmul.mubr.msk.f32.gmra.mxu1 %vm2406_vm13, %v6388_v58 }
0x1564   : > { %6329 = vrcp.f32 %v3865_v25  ;;  %6032 = vmatprep.mubr.msk.f32.mxu1 %vm6462_vm11, %v6456_v61 }
0x1567   : > { %6033 = vmatmul.mubr.msk.f32.gmra.mxu1 %vm2406_vm13, %v6389_v26 }
0x1568   : > { %6035 = vmatprep.mubr.msk.f32.mxu1 %vm6462_vm11, %v6456_v61 }
0x156b   : > { %6036 = vmatmul.mubr.msk.f32.gmra.mxu1 %vm2406_vm13, %v6390_v27 }
0x156c   : > { %6038 = vmatprep.mubr.msk.f32.mxu1 %vm6462_vm11, %v6456_v61 }
0x156d   : > { %v6328_v28 = vpop.eup %6327 }
0x156e   : > { %v3867_v10 = vmul.f32 4.0, %v6328_v28 }
0x156f   : > { %6039 = vmatmul.mubr.msk.f32.gmra.mxu1 %vm2406_vm13, %v6391_v1 }
0x1570   : > { %6041 = vmatprep.mubr.msk.f32.mxu1 %vm6462_vm11, %v6456_v61  ;;  %v3870_v37 = vmul.f32 %v3867_v10, %v7316_v38 }
0x1571   : > { %v6330_v31 = vpop.eup %6329 }
0x1572   : > { %v3869_v33 = vmul.f32 4.0, %v6330_v31 }
0x1573   : > { %6042 = vmatmul.mubr.msk.f32.gmra.mxu1 %vm2406_vm13, %v6392_v13 }
0x1574   : > { %v3871_v34 = vmul.f32 %v3869_v33, %v7321_v18  ;;  %6073 = vmatprep.mubr.msk.f32.mxu1 %vm6462_vm11, %v6456_v61 }
0x1576   : > { %5995 = vmatpush3.msk.msra.mxu0 %vm1801_vm2, %v3871_v34 }
0x1577   : > { %5996 = vmatprep.subr.mxu0 %v6456_v61 }
0x1578   : > { %5997 = vmatpush3.msra.mxu0 %v3870_v37  ;;  %v5411_v37 = vld [vmem:[%s7707_s2 + $0x1] ss:$0 sm:$0xff] }
0x1579   : > { %5999 = vmatmul.mubr.msk.f32.vlgmr.msra.gmra.mxu0 %vm2406_vm13, %v6383_v9  ;;  %6044 = vmatprep.subr.mxu0 %v6456_v61  ;;  %v7468_v9 = vld [vmem:[%s7705_s15 + $0x8] sm:$0xff] }
0x157a   : > { %6001 = vmatprep.mubr.msk.f32.mxu0 %vm6462_vm11, %v6456_v61  ;;  %6045 = vmatpush3.msra.mxu0 %v6384_v12  ;;  %v7474_v12 = vld [vmem:[%s7705_s15] sm:$0xff] }
0x157b   : > { %6046 = vmatprep.subr.mxu0 %v6456_v61 }
0x157c   : > { %6047 = vmatpush3.msra.mxu0 %v6385_v30 }
0x157d   : > { %6002 = vmatmul.mubr.msk.f32.gmra.mxu0 %vm2406_vm13, %v6386_v22 }
0x157e   : > { %6004 = vmatprep.mubr.msk.f32.mxu0 %vm6462_vm11, %v6456_v61 }
0x1581   : > { %6005 = vmatmul.mubr.msk.f32.gmra.mxu0 %vm2406_vm13, %v6388_v58 }
0x1582   : > { %6007 = vmatprep.mubr.msk.f32.mxu0 %vm6462_vm11, %v6456_v61 }
0x1585   : > { %6008 = vmatmul.mubr.msk.f32.gmra.mxu0 %vm2406_vm13, %v6389_v26 }
0x1586   : > { %6010 = vmatprep.mubr.msk.f32.mxu0 %vm6462_vm11, %v6456_v61 }
0x1589   : > { %6011 = vmatmul.mubr.msk.f32.gmra.mxu0 %vm2406_vm13, %v6390_v27 }
0x158a   : > { %6013 = vmatprep.mubr.msk.f32.mxu0 %vm6462_vm11, %v6456_v61 }
0x158d   : > { %6014 = vmatmul.mubr.msk.f32.gmra.mxu0 %vm2406_vm13, %v6391_v1 }
0x158e   : > { %6016 = vmatprep.mubr.msk.f32.mxu0 %vm6462_vm11, %v6456_v61 }
0x1591   : > { %6017 = vmatmul.mubr.msk.f32.gmra.mxu0 %vm2406_vm13, %v6392_v13 }
0x1592   : > { %6048 = vmatprep.mubr.msk.f32.mxu0 %vm6462_vm11, %v6456_v61 }
0x1618   : > { %v7413_v54 = vpop.f32.mrf.mxu0 }
0x161a   : > { %v3811_v39 = vpop.f32.mrf.mxu0 }
0x161b   : > { %6331 = vrsqrt.f32 %v3811_v39  ;;  %vm3822_vm4 = vcmp.eq.f32.partialorder %v3811_v39, inf  ;;  %v3825_v43 = vand.u32 2147483648, %v3811_v39  ;;  %vm3824_vm5 = vcmp.eq.f32.partialorder %v3811_v39, 0.0  ;;  %v4050_v62 = vpop.f32.mrf.mxu1 }
0x161c   : > { %6074 = vmatmul.mubr.msk.f32.vlgmr.msra.gmra.mxu1 %vm2376_vm10, %v4050_v62 }
0x161d   : > { %v6025_v15 = vpop.f32.mrf.mxu1  ;;  %6076 = vmatprep.mubr.msk.f32.mxu1 %vm6462_vm11, %v6456_v61  ;;  %6112 = vmatpush3.msk.msra.mxu1 %vm1801_vm2, %v7360_v23 }
0x161e   : > { %6113 = vmatprep.subr.mxu1 %v7442_v55 }
0x161f   : > { %6114 = vmatpush3.msra.mxu1 %v7442_v55 }
0x1620   : > { %6115 = vmatprep.subr.mxu1 %v7448_v2 }
0x1621   : > { %6116 = vmatpush3.msra.mxu1 %v7448_v2 }
0x1622   : > { %6117 = vmatprep.subr.mxu1 %v7455_v0 }
0x1623   : > { %6118 = vmatpush3.msra.mxu1 %v7455_v0 }
0x1624   : > { %6119 = vmatprep.subr.mxu1 %v7461_v6 }
0x1625   : > { %6120 = vmatpush3.msra.mxu1 %v7461_v6 }
0x1626   : > { %6121 = vmatprep.subr.mxu1 %v7468_v9 }
0x1627   : > { %6122 = vmatpush3.msra.mxu1 %v7468_v9 }
0x1628   : > { %v6332_v29 = vpop.eup %6331  ;;  %6123 = vmatprep.subr.mxu1 %v7474_v12 }
0x1629   : > { %v3821_v41 = vmul.f32 %v6332_v29, %v3811_v39  ;;  %6124 = vmatpush3.msra.mxu1 %v7474_v12  ;;  %v7491_v29 = vld [vmem:[%s7706_s11 + $0x30] sm:$0xf] }
0x162b   : > { %v3823_v7 = vsel %vm3822_vm4, %v3811_v39, %v3821_v41  ;;  %v4226_v41 = vmul.f32 %v7491_v29, %v5411_v37 }
0x162c   : > { %v3826_v4 = vsel %vm3824_vm5, %v3825_v43, %v3823_v7 }
0x162d   : > { %v3834_v38 = vmax.f32 %v3826_v4, 1e-12 }
0x162f   : > { %6333 = vrcp.f32 %v3834_v38 }
0x1630   : > { %6335 = vrsqrt.f32 %v7413_v54 }
0x1639   : > { %v3941_v36 = vpop.f32.mrf.mxu0 }
0x163a   : > { %6049 = vmatmul.mubr.msk.f32.vlgmr.msra.gmra.mxu0 %vm2376_vm10, %v3941_v36  ;;  %v7498_v36 = vld [vmem:[%s7706_s11 + $0x28] sm:$0xff] }
0x163b   : > { %v6000_v16 = vpop.f32.mrf.mxu0  ;;  %6051 = vmatprep.mubr.msk.f32.mxu0 %vm6462_vm11, %v6456_v61  ;;  %v4225_v38 = vmul.f32 %v7498_v36, %v5411_v37 }
0x163c   : > { %v6334_v48 = vpop.eup %6333 }
0x163d   : > { %v3946_v40 = vpop.f32.mrf.mxu0  ;;  %v3837_v52 = vmul.f32 4.0, %v6334_v48  ;;  %v6336_v33 = vpop.eup %6335 }
0x163e   : > { %6052 = vmatmul.mubr.msk.f32.gmra.mxu0 %vm2376_vm10, %v3946_v40  ;;  %v3828_v34 = vmul.f32 %v6336_v33, %v7413_v54  ;;  %v3832_v40 = vand.u32 2147483648, %v7413_v54  ;;  %v5420_v33 = vld [vmem:[%s7708_s3 + $0x1] ss:$0 sm:$0xff] }
0x163f   : > { %v6003_v42 = vpop.f32.mrf.mxu0  ;;  %6054 = vmatprep.mubr.msk.f32.mxu0 %vm6462_vm11, %v6456_v61  ;;  %v3840_v35 = vmul.f32 %v3837_v52, %v7334_v60  ;;  %v4055_v60 = vpop.f32.mrf.mxu1  ;;  %v6402_v52 = vld [vmem:[%s7706_s11 + $0x18] sm:$0xff] }
0x1640   : > { %6077 = vmatmul.mubr.msk.f32.gmra.mxu1 %vm2376_vm10, %v4055_v60  ;;  %v6404_v60 = vld [vmem:[%s7706_s11 + $0x8] sm:$0xff] }
0x1641   : > { %v3951_v56 = vpop.f32.mrf.mxu0  ;;  %v6028_v3 = vpop.f32.mrf.mxu1  ;;  %6079 = vmatprep.mubr.msk.f32.mxu1 %vm6462_vm11, %v6456_v61 }
0x1642   : > { %6055 = vmatmul.mubr.msk.f32.gmra.mxu0 %vm2376_vm10, %v3951_v56  ;;  %v4221_v3 = vmul.f32 %v6404_v60, %v5411_v37 }
0x1643   : > { %v6006_v18 = vpop.f32.mrf.mxu0  ;;  %6057 = vmatprep.mubr.msk.f32.mxu0 %vm6462_vm11, %v6456_v61  ;;  %v4060_v5 = vpop.f32.mrf.mxu1 }
0x1644   : > { %6080 = vmatmul.mubr.msk.f32.gmra.mxu1 %vm2376_vm10, %v4060_v5 }
0x1645   : > { %v3956_v44 = vpop.f32.mrf.mxu0  ;;  %v6031_v8 = vpop.f32.mrf.mxu1  ;;  %6082 = vmatprep.mubr.msk.f32.mxu1 %vm6462_vm11, %v6456_v61 }
0x1646   : > { %6058 = vmatmul.mubr.msk.f32.gmra.mxu0 %vm2376_vm10, %v3956_v44 }
0x1647   : > { %v6009_v51 = vpop.f32.mrf.mxu0  ;;  %6060 = vmatprep.mubr.msk.f32.mxu0 %vm6462_vm11, %v6456_v61  ;;  %v4065_v11 = vpop.f32.mrf.mxu1 }
0x1648   : > { %6083 = vmatmul.mubr.msk.f32.gmra.mxu1 %vm2376_vm10, %v4065_v11  ;;  %v6401_v51 = vld [vmem:[%s7706_s11 + $0x20] sm:$0xff] }
0x1649   : > { %v3961_v46 = vpop.f32.mrf.mxu0  ;;  %v6034_v14 = vpop.f32.mrf.mxu1  ;;  %6085 = vmatprep.mubr.msk.f32.mxu1 %vm6462_vm11, %v6456_v61  ;;  %v6405_v11 = vld [vmem:[%s7706_s11] sm:$0xff] }
0x164a   : > { %6061 = vmatmul.mubr.msk.f32.gmra.mxu0 %vm2376_vm10, %v3961_v46  ;;  %v4224_v46 = vmul.f32 %v6401_v51, %v5411_v37  ;;  %v4220_v14 = vmul.f32 %v6405_v11, %v5411_v37 }
0x164b   : > { %v6012_v49 = vpop.f32.mrf.mxu0  ;;  %6063 = vmatprep.mubr.msk.f32.mxu0 %vm6462_vm11, %v6456_v61  ;;  %v4070_v17 = vpop.f32.mrf.mxu1 }
0x164c   : > { %6086 = vmatmul.mubr.msk.f32.gmra.mxu1 %vm2376_vm10, %v4070_v17 }
0x164d   : > { %v3966_v50 = vpop.f32.mrf.mxu0  ;;  %v6037_v19 = vpop.f32.mrf.mxu1  ;;  %6088 = vmatprep.mubr.msk.f32.mxu1 %vm6462_vm11, %v6456_v61 }
0x164e   : > { %6064 = vmatmul.mubr.msk.f32.gmra.mxu0 %vm2376_vm10, %v3966_v50 }
0x164f   : > { %v6015_v32 = vpop.f32.mrf.mxu0  ;;  %6066 = vmatprep.mubr.msk.f32.mxu0 %vm6462_vm11, %v6456_v61  ;;  %v4075_v20 = vpop.f32.mrf.mxu1 }
0x1650   : > { %6089 = vmatmul.mubr.msk.f32.gmra.mxu1 %vm2376_vm10, %v4075_v20 }
0x1651   : > { %v3971_v57 = vpop.f32.mrf.mxu0  ;;  %v6040_v30 = vpop.f32.mrf.mxu1  ;;  %6091 = vmatprep.mubr.msk.f32.mxu1 %vm6462_vm11, %v6456_v61  ;;  %vm3831_vm11 = vcmp.eq.f32.partialorder %v7413_v54, 0.0 }
0x1652   : > { %6067 = vmatmul.mubr.msk.f32.gmra.mxu0 %vm2376_vm10, %v3971_v57 }
0x1653   : > { %v6018_v53 = vpop.f32.mrf.mxu0  ;;  %6108 = vmatprep.mubr.msk.f32.mxu0 %vm2270_vm12, %v3840_v35  ;;  %v4080_v21 = vpop.f32.mrf.mxu1  ;;  %v6403_v35 = vld [vmem:[%s7706_s11 + $0x10] sm:$0xff] }
0x1654   : > { %6092 = vmatmul.mubr.msk.f32.gmra.mxu1 %vm2376_vm10, %v4080_v21  ;;  %vm3829_vm10 = vcmp.eq.f32.partialorder %v7413_v54, inf  ;;  %v4222_v53 = vmul.f32 %v6403_v35, %v5411_v37 }
0x1655   : > { %v6043_v22 = vpop.f32.mrf.mxu1  ;;  %v3830_v43 = vsel %vm3829_vm10, %v7413_v54, %v3828_v34  ;;  %v4223_v54 = vmul.f32 %v6402_v52, %v5411_v37  ;;  %v4375_v37 = vmul.f32 %v7498_v36, %v5420_v33 }
0x1656   : > { %v3833_v18 = vsel %vm3831_vm11, %v3832_v40, %v3830_v43 }
0x1657   : > { %v3835_v49 = vmax.f32 %v3833_v18, 1e-12  ;;  %v4372_v18 = vmul.f32 %v6403_v35, %v5420_v33 }
0x1659   : > { %6337 = vrcp.f32 %v3835_v49  ;;  %v6407_v49 = vld [vmem:[%s7709_s5] sm:$0xff] }
0x1666   : > { %v6338_v19 = vpop.eup %6337 }
0x1667   : > { %v3839_v30 = vmul.f32 4.0, %v6338_v19  ;;  %v5438_v19 = vld [vmem:[%s7710_s6 + $0x50] sm:$0xff] }
0x1669   : > { %v3841_v21 = vmul.f32 %v3839_v30, %v7339_v63  ;;  %v4376_v63 = vmul.f32 %v7491_v29, %v5420_v33  ;;  %v5436_v30 = vld [vmem:[%s7710_s6 + $0x40] sm:$0xff] }
0x16dc   : > { %v4321_v22 = vpop.f32.mrf.mxu1 }
0x16fa   : > { %v4171_v24 = vpop.f32.mrf.mxu0 }
0x16fb   : > { %v4205_v8 = vmul.f32 %v7474_v12, %v4171_v24  ;;  %v6075_v24 = vpop.f32.mrf.mxu1 }
0x16fc   : > { %v6050_v59 = vpop.f32.mrf.mxu0 }
0x16fd   : > { %v4227_v20 = vadd.f32 %v4220_v14, %v4205_v8  ;;  %v5442_v8 = vld [vmem:[%s7710_s6 + $0x70] sm:$0xff]  ;;  %v5440_v14 = vld [vmem:[%s7710_s6 + $0x60] sm:$0xff] }
0x16fe   : > { %v4176_v25 = vpop.f32.mrf.mxu0 }
0x16ff   : > { %v4206_v15 = vmul.f32 %v7468_v9, %v4176_v25 }
0x1700   : > { %v6053_v58 = vpop.f32.mrf.mxu0  ;;  %v4326_v59 = vpop.f32.mrf.mxu1 }
0x1701   : > { %v4228_v17 = vadd.f32 %v4221_v3, %v4206_v15  ;;  %v4356_v29 = vmul.f32 %v7468_v9, %v4326_v59 }
0x1702   : > { %v4181_v26 = vpop.f32.mrf.mxu0  ;;  %v6078_v25 = vpop.f32.mrf.mxu1 }
0x1703   : > { %v4207_v57 = vmul.f32 %v7461_v6, %v4181_v26 }
0x1704   : > { %v6056_v27 = vpop.f32.mrf.mxu0  ;;  %v4331_v58 = vpop.f32.mrf.mxu1 }
0x1705   : > { %v4229_v5 = vadd.f32 %v4222_v53, %v4207_v57 }
0x1706   : > { %v4186_v28 = vpop.f32.mrf.mxu0  ;;  %v6081_v26 = vpop.f32.mrf.mxu1 }
0x1707   : > { %v4208_v50 = vmul.f32 %v7455_v0, %v4186_v28 }
0x1708   : > { %v6059_v1 = vpop.f32.mrf.mxu0  ;;  %v4336_v27 = vpop.f32.mrf.mxu1 }
0x1709   : > { %v4230_v62 = vadd.f32 %v4223_v54, %v4208_v50 }
0x170a   : > { %v4191_v31 = vpop.f32.mrf.mxu0  ;;  %v6084_v28 = vpop.f32.mrf.mxu1 }
0x170b   : > { %v4209_v44 = vmul.f32 %v7448_v2, %v4191_v31 }
0x170c   : > { %v6062_v10 = vpop.f32.mrf.mxu0  ;;  %v4341_v1 = vpop.f32.mrf.mxu1 }
0x170d   : > { %v4231_v32 = vadd.f32 %v4224_v46, %v4209_v44  ;;  %v6406_v46 = vld [vmem:[%s7709_s5 + $0x8] sm:$0xf] }
0x170e   : > { %v4196_v13 = vpop.f32.mrf.mxu0  ;;  %v6087_v31 = vpop.f32.mrf.mxu1 }
0x170f   : > { %v4210_v4 = vmul.f32 %v7442_v55, %v4196_v13 }
0x1710   : > { %v6065_v39 = vpop.f32.mrf.mxu0  ;;  %v4346_v10 = vpop.f32.mrf.mxu1 }
0x1711   : > { %v4232_v48 = vadd.f32 %v4225_v38, %v4210_v4  ;;  %v4360_v34 = vmul.f32 %v7442_v55, %v4346_v10  ;;  %v4358_v38 = vmul.f32 %v7455_v0, %v4336_v27  ;;  %v4370_v0 = vmul.f32 %v6405_v11, %v5420_v33  ;;  %v5441_v11 = vld [vmem:[%s7710_s6 + $0x68] sm:$0xff] }
0x1712   : > { %v4201_v7 = vpop.f32.mrf.mxu0  ;;  %v6090_v13 = vpop.f32.mrf.mxu1 }
0x1713   : > { %v4211_v16 = vmul.f32 %v7360_v23, %v4201_v7  ;;  %v4374_v7 = vmul.f32 %v6401_v51, %v5420_v33  ;;  %v4382_v40 = vadd.f32 %v4375_v37, %v4360_v34 }
0x1714   : > { %v6068_v42 = vpop.f32.mrf.mxu0  ;;  %v4351_v39 = vpop.f32.mrf.mxu1 }
0x1715   : > { %v4233_v56 = vadd.f32 %v4226_v41, %v4211_v16  ;;  %v4359_v41 = vmul.f32 %v7448_v2, %v4341_v1  ;;  %v4361_v43 = vmul.f32 %v7360_v23, %v4351_v39  ;;  %v4373_v16 = vmul.f32 %v6402_v52, %v5420_v33 }
0x1716   : > { %v6093_v4 = vpop.f32.mrf.mxu1  ;;  %v4371_v2 = vmul.f32 %v6404_v60, %v5420_v33  ;;  %v4355_v23 = vmul.f32 %v7474_v12, %v4321_v22 }
0x1717   : > { %6094 = vmatprep.subr.msk.mxu0 %vm2270_vm12, %v4233_v56  ;;  %v4383_v42 = vadd.f32 %v4376_v63, %v4361_v43  ;;  %v4381_v55 = vadd.f32 %v4374_v7, %v4359_v41  ;;  %v4380_v36 = vadd.f32 %v4373_v16, %v4358_v38 }
0x1718   : > { %6095 = vmatpush3.xpose.msk.msra.mxu0 %vm2270_vm12, %v4233_v56  ;;  %v4357_v56 = vmul.f32 %v7461_v6, %v4331_v58  ;;  %v4378_v6 = vadd.f32 %v4371_v2, %v4356_v29  ;;  %v4377_v51 = vadd.f32 %v4370_v0, %v4355_v23  ;;  %v5447_v29 = vld [vmem:[%s7711_s8 + $0x1] ss:$0 sm:$0xff] }
0x1719   : > { %6096 = vmatprep.subr.msk.mxu0 %vm2270_vm12, %v4232_v48 }
0x171a   : > { %v4379_v44 = vadd.f32 %v4372_v18, %v4357_v56 }
0x171c   : > { %6097 = vmatpush3.xpose.msk.msra.mxu0 %vm2270_vm12, %v4232_v48 }
0x171d   : > { %6098 = vmatprep.subr.msk.mxu0 %vm2270_vm12, %v4231_v32 }
0x1720   : > { %6099 = vmatpush3.xpose.msk.msra.mxu0 %vm2270_vm12, %v4231_v32 }
0x1721   : > { %6100 = vmatprep.subr.msk.mxu0 %vm2270_vm12, %v4230_v62 }
0x1724   : > { %6101 = vmatpush3.xpose.msk.msra.mxu0 %vm2270_vm12, %v4230_v62 }
0x1725   : > { %6102 = vmatprep.subr.msk.mxu0 %vm2270_vm12, %v4229_v5 }
0x1728   : > { %6103 = vmatpush3.xpose.msk.msra.mxu0 %vm2270_vm12, %v4229_v5  ;;  %v5443_v5 = vld [vmem:[%s7710_s6 + $0x78] sm:$0xff] }
0x1729   : > { %6104 = vmatprep.subr.msk.mxu0 %vm2270_vm12, %v4228_v17  ;;  %6145 = vmatprep.subr.mxu1 %v5443_v5 }
0x172c   : > { %6105 = vmatpush3.xpose.msk.msra.mxu0 %vm2270_vm12, %v4228_v17  ;;  %v5439_v17 = vld [vmem:[%s7710_s6 + $0x58] sm:$0xff] }
0x172d   : > { %6106 = vmatprep.subr.msk.mxu0 %vm2270_vm12, %v4227_v20 }
0x1730   : > { %6107 = vmatpush3.xpose.msk.msra.mxu0 %vm2270_vm12, %v4227_v20  ;;  %v5437_v20 = vld [vmem:[%s7710_s6 + $0x48] sm:$0xff] }
0x1731   : > { %6128 = vmatprep.subr.msk.mxu0 %vm1801_vm2, %v4383_v42 }
0x1733   : > { %6109 = vmatmul.mubr.msk.f32.vlgmr.msra.gmra.mxu0 %vm2270_vm12, %v3841_v21 }
0x1734   : > { %6129 = vmatpush3.msk.msra.mxu0 %vm1801_vm2, %v4383_v42 }
0x1735   : > { %6130 = vmatprep.subr.mxu0 %v4382_v40 }
0x1736   : > { %6131 = vmatpush3.msra.mxu0 %v4382_v40 }
0x1737   : > { %6132 = vmatprep.subr.mxu0 %v4381_v55 }
0x1738   : > { %6133 = vmatpush3.msra.mxu0 %v4381_v55 }
0x1739   : > { %6134 = vmatprep.subr.mxu0 %v4380_v36 }
0x173a   : > { %6135 = vmatpush3.msra.mxu0 %v4380_v36 }
0x173b   : > { %6136 = vmatprep.subr.mxu0 %v4379_v44 }
0x173c   : > { %6137 = vmatpush3.msra.mxu0 %v4379_v44 }
0x173d   : > { %6138 = vmatprep.subr.mxu0 %v4378_v6 }
0x173e   : > { %6139 = vmatpush3.msra.mxu0 %v4378_v6 }
0x173f   : > { %6140 = vmatprep.subr.mxu0 %v4377_v51 }
0x1740   : > { %6141 = vmatpush3.msra.mxu0 %v4377_v51 }
0x17f3   : > { %v6110_v9 = vpop.f32.mrf.mxu0 }
0x17f4   : > { %v4483_v48 = vadd.f32 %v6406_v46, %v6110_v9 }
0x17f5   : > { %v4477_v12 = vpop.f32.mrf.mxu0 }
0x17f6   : > { %v4478_v50 = vadd.f32 %v6407_v49, %v4477_v12  ;;  %v4489_v52 = vsel %vm3044_vm14, %v4483_v48, -inf }
0x17f7   : > { %4490 = vmax.xlane.f32.xlu0 %v4489_v52 }
0x17f8   : > { %v4486_v54 = vsel %vm3040_vm15, %v4478_v50, -inf }
0x17f9   : > { %4487 = vmax.xlane.f32.xlu1 %v4486_v54 }
0x1880   : > { %v4491_v32 = vpop.xlane.xlu0 %4490 }
0x1881   : > { %v4493_v57 = vsub.f32 %v4483_v48, %v4491_v32 }
0x1882   : > { %v4488_v35 = vpop.xlane.xlu1 %4487 }
0x1883   : > { %v4492_v53 = vsub.f32 %v4478_v50, %v4488_v35  ;;  %v4496_v62 = vmul.f32 1.442695, %v4493_v57  ;;  %v5457_v35 = vld [vmem:[%s7712_s9 + $0x78] sm:$0xff] }
0x1884   : > { %4864 = vmatprep.subr.mxu0 %v5457_v35 }
0x1885   : > { %v4494_v15 = vmul.f32 1.442695, %v4492_v53  ;;  %v5456_v53 = vld [vmem:[%s7712_s9 + $0x70] sm:$0xff] }
0x1887   : > { %6339 = vpow2.f32 %v4494_v15  ;;  %v5454_v15 = vld [vmem:[%s7712_s9 + $0x60] sm:$0xff] }
0x1888   : > { %6341 = vpow2.f32 %v4496_v62  ;;  %v5455_v62 = vld [vmem:[%s7712_s9 + $0x68] sm:$0xff] }
0x1894   : > { %v6340_v60 = vpop.eup %6339 }
0x1895   : > { %v6342_v3 = vpop.eup %6341  ;;  %6125 = vmatprep.mubr.msk.f32.mxu1 %vm3040_vm15, %v6340_v60  ;;  %6142 = vmatprep.mubr.msk.f32.mxu0 %vm3040_vm15, %v6340_v60  ;;  %v5453_v60 = vld [vmem:[%s7712_s9 + $0x58] sm:$0xff] }
0x1896   : > { %6126 = vmatmul.mubr.msk.f32.vlgmr.msra.gmra.mxu1 %vm3040_vm15, %v6342_v3  ;;  %6143 = vmatmul.mubr.msk.f32.vlgmr.msra.gmra.mxu0 %vm3040_vm15, %v6342_v3  ;;  %v5452_v3 = vld [vmem:[%s7712_s9 + $0x50] sm:$0xff] }
0x1897   : > { %4904 = vmatprep.mubr.f32.mxu0 %v6456_v61  ;;  %6146 = vmatpush3.msra.mxu1 %v5443_v5  ;;  %v5451_v5 = vld [vmem:[%s7712_s9 + $0x48] sm:$0xff] }
0x1898   : > { %6147 = vmatprep.subr.mxu1 %v5442_v8  ;;  %4865 = vmatpush1.msra.mxu0 %v5456_v53 }
0x1899   : > { %6148 = vmatpush3.msra.mxu1 %v5442_v8  ;;  %4866 = vmatprep.subr.mxu0 %v5455_v62  ;;  %v5450_v8 = vld [vmem:[%s7712_s9 + $0x40] sm:$0xff] }
0x189a   : > { %6149 = vmatprep.subr.mxu1 %v5441_v11  ;;  %4867 = vmatpush1.msra.mxu0 %v5454_v15 }
0x189b   : > { %6150 = vmatpush3.msra.mxu1 %v5441_v11  ;;  %4868 = vmatprep.subr.mxu0 %v5453_v60 }
0x189c   : > { %6151 = vmatprep.subr.mxu1 %v5440_v14  ;;  %4869 = vmatpush1.msra.mxu0 %v5452_v3 }
0x189d   : > { %6152 = vmatpush3.msra.mxu1 %v5440_v14  ;;  %4870 = vmatprep.subr.mxu0 %v5451_v5 }
0x189e   : > { %6153 = vmatprep.subr.mxu1 %v5439_v17  ;;  %4871 = vmatpush1.msra.mxu0 %v5450_v8 }
0x189f   : > { %6154 = vmatpush3.msra.mxu1 %v5439_v17 }
0x18a0   : > { %6155 = vmatprep.subr.mxu1 %v5438_v19 }
0x18a1   : > { %6156 = vmatpush3.msra.mxu1 %v5438_v19 }
0x18a2   : > { %6157 = vmatprep.subr.mxu1 %v5437_v20 }
0x18a3   : > { %6158 = vmatpush3.msra.mxu1 %v5437_v20 }
0x18a4   : > { %6159 = vmatprep.subr.mxu1 %v5436_v30 }
0x18a5   : > { %6160 = vmatpush3.msra.mxu1 %v5436_v30 }
0x1956   : > { %v6127_v21 = vpop.f32.mrf.mxu1  ;;  %v6144_v24 = vpop.f32.mrf.mxu0 }
0x1957   : > { %6343 = vrcp.f32 %v6127_v21 }
0x1958   : > { %v4570_v22 = vpop.f32.mrf.mxu1  ;;  %v4648_v58 = vpop.f32.mrf.mxu0 }
0x1959   : > { %6345 = vrcp.f32 %v4570_v22 }
0x1964   : > { %v6344_v59 = vpop.eup %6343 }
0x1965   : > { %v4660_v27 = vmul.f32 %v6344_v59, %v6144_v24  ;;  %v5449_v59 = vld [vmem:[%s7713_s12 + $0x1] ss:$0 sm:$0xff] }
0x1966   : > { %v6346_v25 = vpop.eup %6345 }
0x1967   : > { %v4659_v26 = vmul.f32 %v6346_v25, %v4648_v58 }
0x1969   : > { %6161 = vmatprep.mubr.msk.f32.mxu1 %vm2270_vm12, %v4659_v26 }
0x196a   : > { %6162 = vmatmul.mubr.msk.f32.vlgmr.msra.gmra.mxu1 %vm2270_vm12, %v4660_v27  ;;  %v5477_v27 = vld [vmem:[%s6651_s4 + $0xf8] sm:$0xff] }
0x196b   : > { %6164 = vmatprep.subr.mxu0 %v5477_v27 }
0x1a2a   : > { %v6163_v28 = vpop.f32.mrf.mxu1 }
0x1a2b   : > { %v4756_v1 = vsel %vm2101_vm7, %v6163_v28, 0.0 }
0x1a2c   : > { %4757 = vadd.xlane.f32.xlu1 %v4756_v1  ;;  %v4742_v31 = vpop.f32.mrf.mxu1  ;;  %v5475_v1 = vld [vmem:[%s6651_s4 + $0xe8] sm:$0xff] }
0x1a2d   : > { %v4753_v33 = vsel %vm2097_vm8, %v4742_v31, 0.0 }
0x1a2e   : > { %4754 = vadd.xlane.f32.xlu0 %v4753_v33  ;;  %v5472_v33 = vld [vmem:[%s6651_s4 + $0xd0] sm:$0xff] }
0x1ab5   : > { %v4758_v10 = vpop.xlane.xlu1 %4757 }
0x1ab6   : > { %v4760_v13 = vmul.f32 0.03125, %v4758_v10  ;;  %v5471_v10 = vld [vmem:[%s6651_s4 + $0xc8] sm:$0xff] }
0x1ab7   : > { %v4755_v34 = vpop.xlane.xlu0 %4754 }
0x1ab8   : > { %v4762_v37 = vsub.f32 %v6163_v28, %v4760_v13  ;;  %v4759_v63 = vmul.f32 0.03125, %v4755_v34  ;;  %v5476_v28 = vld [vmem:[%s6651_s4 + $0xf0] sm:$0xff]  ;;  %v5470_v13 = vld [vmem:[%s6651_s4 + $0xc0] sm:$0xff]  ;;  %v5469_v34 = vld [vmem:[%s6651_s4 + $0xb8] sm:$0xff] }
0x1aba   : > { %v4761_v39 = vsub.f32 %v4742_v31, %v4759_v63  ;;  %v4764_v41 = vmul.f32 %v4762_v37, %v4762_v37  ;;  %v5474_v31 = vld [vmem:[%s6651_s4 + $0xe0] sm:$0xff]  ;;  %v5467_v63 = vld [vmem:[%s6651_s4 + $0xa8] sm:$0xff] }
0x1abc   : > { %v4768_v7 = vsel %vm2101_vm7, %v4764_v41, 0.0  ;;  %v4763_v43 = vmul.f32 %v4761_v39, %v4761_v39  ;;  %v5465_v41 = vld [vmem:[%s6651_s4 + $0x98] sm:$0xff] }
0x1abd   : > { %4769 = vadd.xlane.f32.xlu1 %v4768_v7  ;;  %v5464_v7 = vld [vmem:[%s6651_s4 + $0x90] sm:$0xff] }
0x1abe   : > { %v4765_v4 = vsel %vm2097_vm8, %v4763_v43, 0.0  ;;  %v5463_v43 = vld [vmem:[%s6651_s4 + $0x88] sm:$0xff] }
0x1abf   : > { %4766 = vadd.xlane.f32.xlu0 %v4765_v4  ;;  %v5462_v4 = vld [vmem:[%s6651_s4 + $0x80] sm:$0xff] }
0x1b46   : > { %v4770_v38 = vpop.xlane.xlu1 %4769 }
0x1b47   : > { %v4772_v16 = vmul.f32 0.03125, %v4770_v38 }
0x1b48   : > { %v4767_v40 = vpop.xlane.xlu0 %4766 }
0x1b49   : > { %v4774_v42 = vadd.f32 1e-05, %v4772_v16  ;;  %v4771_v56 = vmul.f32 0.03125, %v4767_v40 }
0x1b4b   : > { %6347 = vrsqrt.f32 %v4774_v42  ;;  %v4773_v18 = vadd.f32 1e-05, %v4771_v56 }
0x1b4d   : > { %6349 = vrsqrt.f32 %v4773_v18 }
0x1b58   : > { %v6348_v55 = vpop.eup %6347 }
0x1b59   : > { %v4778_v2 = vmul.f32 %v6348_v55, %v4762_v37  ;;  %v5468_v37 = vld [vmem:[%s6651_s4 + $0xb0] sm:$0xff] }
0x1b5a   : > { %v6350_v36 = vpop.eup %6349 }
0x1b5b   : > { %v4786_v23 = vmul.f32 %v5447_v29, %v4778_v2  ;;  %v4777_v0 = vmul.f32 %v6350_v36, %v4761_v39  ;;  %v5466_v39 = vld [vmem:[%s6651_s4 + $0xa0] sm:$0xff] }
0x1b5d   : > { %v7567_v44 = vadd.f32 %v4786_v23, %v7277_v45  ;;  %v4785_v6 = vmul.f32 %v5447_v29, %v4777_v0 }
0x1b5f   : > { %v4794_v51 = vsel %vm2101_vm7, %v7567_v44, 0.0  ;;  %v7572_v9 = vadd.f32 %v4785_v6, %v7280_v47 }
0x1b60   : > { %4795 = vadd.xlane.f32.xlu1 %v4794_v51 }
0x1b61   : > { %v4791_v46 = vsel %vm2097_vm8, %v7572_v9, 0.0 }
0x1b62   : > { %4792 = vadd.xlane.f32.xlu0 %v4791_v46 }
0x1be9   : > { %v4796_v48 = vpop.xlane.xlu1 %4795 }
0x1bea   : > { %v4798_v12 = vmul.f32 0.03125, %v4796_v48 }
0x1beb   : > { %v4793_v45 = vpop.xlane.xlu0 %4792 }
0x1bec   : > { %v4800_v49 = vsub.f32 %v7567_v44, %v4798_v12  ;;  %v4797_v50 = vmul.f32 0.03125, %v4793_v45 }
0x1bee   : > { %v4799_v47 = vsub.f32 %v7572_v9, %v4797_v50  ;;  %v4802_v52 = vmul.f32 %v4800_v49, %v4800_v49 }
0x1bf0   : > { %v4806_v54 = vsel %vm2101_vm7, %v4802_v52, 0.0  ;;  %v4801_v32 = vmul.f32 %v4799_v47, %v4799_v47 }
0x1bf1   : > { %4807 = vadd.xlane.f32.xlu1 %v4806_v54 }
0x1bf2   : > { %v4803_v57 = vsel %vm2097_vm8, %v4801_v32, 0.0 }
0x1bf3   : > { %4804 = vadd.xlane.f32.xlu0 %v4803_v57 }
0x1c7a   : > { %v4808_v11 = vpop.xlane.xlu1 %4807 }
0x1c7b   : > { %v4810_v14 = vmul.f32 0.03125, %v4808_v11 }
0x1c7c   : > { %v4805_v17 = vpop.xlane.xlu0 %4804 }
0x1c7d   : > { %v4812_v19 = vadd.f32 1e-05, %v4810_v14  ;;  %v4809_v20 = vmul.f32 0.03125, %v4805_v17 }
0x1c7f   : > { %v4811_v30 = vadd.f32 1e-05, %v4809_v20  ;;  %6351 = vrsqrt.f32 %v4812_v19 }
0x1c81   : > { %6353 = vrsqrt.f32 %v4811_v30  ;;  %v5075_v30 = vld [vmem:[%s6661_s14 + $0x18] sm:$0xff] }
0x1c82   : > { %6199 = vmatprep.subr.mxu1 %v5075_v30 }
0x1c83   : > { %6200 = vmatpush3.msra.mxu1 %v5075_v30 }
0x1c8c   : > { %v6352_v21 = vpop.eup %6351 }
0x1c8d   : > { %v4816_v58 = vmul.f32 %v6352_v21, %v4800_v49  ;;  %v5074_v21 = vld [vmem:[%s6661_s14 + $0x10] sm:$0xff] }
0x1c8e   : > { %v6354_v22 = vpop.eup %6353  ;;  %6201 = vmatprep.subr.mxu1 %v5074_v21 }
0x1c8f   : > { %v4815_v24 = vmul.f32 %v6354_v22, %v4799_v47  ;;  %v4824_v26 = vmul.f32 %v5449_v59, %v4816_v58  ;;  %v5073_v22 = vld [vmem:[%s6661_s14 + $0x8] sm:$0xff]  ;;  %6202 = vmatpush3.msra.mxu1 %v5074_v21 }
0x1c90   : > { %6203 = vmatprep.subr.mxu1 %v5073_v22 }
0x1c91   : > { %v4823_v25 = vmul.f32 %v5449_v59, %v4815_v24  ;;  %v5072_v24 = vld [vmem:[%s6661_s14] sm:$0xff]  ;;  %6204 = vmatpush3.msra.mxu1 %v5073_v22 }
0x1c92   : > { %6205 = vmatprep.subr.mxu1 %v5072_v24 }
0x1c93   : > { %5458 = vmatmul.mubr.msk.f32.vlgmr.msra.gmra.mxu0 %vm2097_vm8, %v4823_v25  ;;  %6206 = vmatpush3.msra.mxu1 %v5072_v24 }
0x1c94   : > { %4910 = vmatprep.mubr.f32.mxu0 %v6456_v61  ;;  %6165 = vmatpush3.msra.mxu0 %v5477_v27  ;;  %v5473_v61 = vld [vmem:[%s6651_s4 + $0xd8] sm:$0xff] }
0x1c95   : > { %6166 = vmatprep.subr.mxu0 %v5476_v28 }
0x1c96   : > { %6167 = vmatpush3.msra.mxu0 %v5476_v28 }
0x1c97   : > { %5459 = vmatmul.mubr.msk.f32.gmra.mxu0 %vm2097_vm8, %v4824_v26  ;;  %6168 = vmatprep.subr.mxu0 %v5475_v1 }
0x1c98   : > { %6169 = vmatpush3.msra.mxu0 %v5475_v1 }
0x1c99   : > { %6170 = vmatprep.subr.mxu0 %v5474_v31 }
0x1c9a   : > { %6171 = vmatpush3.msra.mxu0 %v5474_v31 }
0x1c9b   : > { %6172 = vmatprep.subr.mxu0 %v5473_v61 }
0x1c9c   : > { %6173 = vmatpush3.msra.mxu0 %v5473_v61 }
0x1c9d   : > { %6174 = vmatprep.subr.mxu0 %v5472_v33 }
0x1c9e   : > { %6175 = vmatpush3.msra.mxu0 %v5472_v33  ;;  %v5478_v33 = vld [vmem:[%s6656_s13] ss:$0 sm:$0xff] }
0x1c9f   : > { %6176 = vmatprep.subr.mxu0 %v5471_v10 }
0x1ca0   : > { %6177 = vmatpush3.msra.mxu0 %v5471_v10 }
0x1ca1   : > { %6178 = vmatprep.subr.mxu0 %v5470_v13 }
0x1ca2   : > { %6179 = vmatpush3.msra.mxu0 %v5470_v13 }
0x1ca3   : > { %6180 = vmatprep.subr.mxu0 %v5469_v34 }
0x1ca4   : > { %6181 = vmatpush3.msra.mxu0 %v5469_v34 }
0x1ca5   : > { %6182 = vmatprep.subr.mxu0 %v5468_v37 }
0x1ca6   : > { %6183 = vmatpush3.msra.mxu0 %v5468_v37 }
0x1ca7   : > { %6184 = vmatprep.subr.mxu0 %v5467_v63 }
0x1ca8   : > { %6185 = vmatpush3.msra.mxu0 %v5467_v63 }
0x1ca9   : > { %6186 = vmatprep.subr.mxu0 %v5466_v39 }
0x1caa   : > { %6187 = vmatpush3.msra.mxu0 %v5466_v39 }
0x1cab   : > { %6188 = vmatprep.subr.mxu0 %v5465_v41 }
0x1cac   : > { %6189 = vmatpush3.msra.mxu0 %v5465_v41 }
0x1cad   : > { %6190 = vmatprep.subr.mxu0 %v5464_v7 }
0x1cae   : > { %6191 = vmatpush3.msra.mxu0 %v5464_v7 }
0x1caf   : > { %6192 = vmatprep.subr.mxu0 %v5463_v43 }
0x1cb0   : > { %6193 = vmatpush3.msra.mxu0 %v5463_v43 }
0x1cb1   : > { %6194 = vmatprep.subr.mxu0 %v5462_v4 }
0x1cb2   : > { %6195 = vmatpush3.msra.mxu0 %v5462_v4 }
0x1d53   : > { %v4906_v38 = vpop.f32.mrf.mxu0 }
0x1d55   : > { %v4908_v16 = vpop.f32.mrf.mxu0 }
0x1d56   : > { %v5460_v40 = vmul.f32 -1.442695, %v4908_v16 }
0x1d57   : > { %v4912_v42 = vpop.f32.mrf.mxu0 }
0x1d58   : > { %6355 = vpow2.f32 %v5460_v40 }
0x1d59   : > { %v4914_v56 = vpop.f32.mrf.mxu0 }
0x1d5a   : > { %v5461_v18 = vmul.f32 -1.442695, %v4914_v56 }
0x1d5c   : > { %6357 = vpow2.f32 %v5461_v18 }
0x1d65   : > { %v6356_v55 = vpop.eup %6355 }
0x1d66   : > { %v4923_v29 = vadd.f32 1.0, %v6356_v55 }
0x1d68   : > { %6359 = vrcp.f32 %v4923_v29 }
0x1d69   : > { %v6358_v2 = vpop.eup %6357 }
0x1d6a   : > { %v4924_v36 = vadd.f32 1.0, %v6358_v2 }
0x1d6c   : > { %6361 = vrcp.f32 %v4924_v36 }
0x1d75   : > { %v6360_v23 = vpop.eup %6359 }
0x1d76   : > { %v4929_v0 = vmul.f32 %v6360_v23, %v4908_v16 }
0x1d78   : > { %v4931_v6 = vmul.f32 %v4929_v0, %v4906_v38 }
0x1d79   : > { %v6362_v51 = vpop.eup %6361 }
0x1d7a   : > { %v4930_v46 = vmul.f32 %v6362_v51, %v4914_v56  ;;  %6196 = vmatprep.mubr.f32.mxu0 %v4931_v6 }
0x1d7c   : > { %v4932_v48 = vmul.f32 %v4930_v46, %v4912_v42 }
0x1d7e   : > { %6197 = vmatmul.mubr.f32.vlgmr.msra.gmra.mxu0 %v4932_v48 }
0x1e3e   : > { %v6198_v12 = vpop.f32.mrf.mxu0 }
0x1e3f   : > { %v5026_v45 = vadd.f32 %v6198_v12, %v7567_v44 }
0x1e40   : > { %v5016_v49 = vpop.f32.mrf.mxu0 }
0x1e41   : > { %v5025_v50 = vadd.f32 %v5016_v49, %v7572_v9  ;;  %v5030_v47 = vsel %vm2101_vm7, %v5026_v45, -inf }
0x1e42   : > { %5031 = vmax.xlane.f32.xlu1 %v5030_v47 }
0x1e43   : > { %v5027_v52 = vsel %vm2097_vm8, %v5025_v50, -inf }
0x1e44   : > { %5028 = vmax.xlane.f32.xlu0 %v5027_v52 }
0x1ecb   : > { %v5032_v54 = vpop.xlane.xlu1 %5031 }
0x1ecc   : > { %6363 = vrcp.f32 %v5032_v54 }
0x1ecd   : > { %v5029_v32 = vpop.xlane.xlu0 %5028 }
0x1ece   : > { %6365 = vrcp.f32 %v5029_v32 }
0x1ed9   : > { %v6364_v57 = vpop.eup %6363 }
0x1eda   : > { %v5036_v35 = vmul.f32 %v6364_v57, %v5026_v45 }
0x1edb   : > { %v6366_v53 = vpop.eup %6365 }
0x1edc   : > { %v5041_v62 = vsel %vm2101_vm7, %v5036_v35, 0.0  ;;  %v5034_v15 = vmul.f32 %v6366_v53, %v5025_v50 }
0x1edd   : > { %5042 = vadd.xlane.f32.xlu1 %v5041_v62 }
0x1ede   : > { %v5038_v44 = vsel %vm2097_vm8, %v5034_v15, 0.0 }
0x1edf   : > { %5039 = vadd.xlane.f32.xlu0 %v5038_v44 }
0x1f66   : > { %v5043_v9 = vpop.xlane.xlu1 %5042 }
0x1f67   : > { %v5045_v60 = vmul.f32 0.03125, %v5043_v9 }
0x1f68   : > { %v5040_v3 = vpop.xlane.xlu0 %5039 }
0x1f69   : > { %v5047_v5 = vsub.f32 %v5036_v35, %v5045_v60  ;;  %v5044_v8 = vmul.f32 0.03125, %v5040_v3 }
0x1f6b   : > { %v5046_v11 = vsub.f32 %v5034_v15, %v5044_v8  ;;  %v5049_v14 = vmul.f32 %v5047_v5, %v5047_v5 }
0x1f6d   : > { %v5053_v17 = vsel %vm2101_vm7, %v5049_v14, 0.0  ;;  %v5048_v19 = vmul.f32 %v5046_v11, %v5046_v11 }
0x1f6e   : > { %5054 = vadd.xlane.f32.xlu1 %v5053_v17 }
0x1f6f   : > { %v5050_v20 = vsel %vm2097_vm8, %v5048_v19, 0.0 }
0x1f70   : > { %5051 = vadd.xlane.f32.xlu0 %v5050_v20 }
0x1ff7   : > { %v5055_v59 = vpop.xlane.xlu1 %5054 }
0x1ff8   : > { %v5057_v25 = vmul.f32 0.03125, %v5055_v59 }
0x1ff9   : > { %v5052_v58 = vpop.xlane.xlu0 %5051 }
0x1ffa   : > { %v5059_v26 = vadd.f32 1e-05, %v5057_v25  ;;  %v5056_v27 = vmul.f32 0.03125, %v5052_v58 }
0x1ffc   : > { %6367 = vrsqrt.f32 %v5059_v26  ;;  %v5058_v28 = vadd.f32 1e-05, %v5056_v27 }
0x1ffe   : > { %6369 = vrsqrt.f32 %v5058_v28 }
0x2009   : > { %v6368_v1 = vpop.eup %6367 }
0x200a   : > { %v5063_v61 = vmul.f32 %v6368_v1, %v5047_v5 }
0x200b   : > { %v6370_v31 = vpop.eup %6369 }
0x200c   : > { %v5062_v10 = vmul.f32 %v6370_v31, %v5046_v11  ;;  %v5071_v34 = vmul.f32 %v5478_v33, %v5063_v61 }
0x200e   : > { %v5070_v13 = vmul.f32 %v5478_v33, %v5062_v10 }
0x2010   : > { %6207 = vmatprep.mubr.msk.f32.mxu1 %vm2097_vm8, %v5070_v13 }
0x2011   : > { %6208 = vmatmul.mubr.msk.f32.vlgmr.msra.gmra.mxu1 %vm2097_vm8, %v5071_v34 }
0x20d1   : > { %v6209_v37 = vpop.f32.mrf.mxu1 }
0x20d2   : > { %5158 = vst.msk [vmem:[%s1233_s0 + $0x8] sm:$0xf] %vm2101_vm7, %v6209_v37 }
0x20d3   : > { %v5148_v63 = vpop.f32.mrf.mxu1 }
0x20d4   : > { %5157 = vst.msk [vmem:[%s1233_s0] sm:$0xff] %vm2097_vm8, %v5148_v63 }
0x20d5 PF: > { %s89_s22 = sadd.s32 1, %s6414_s22  }
0x20d6   : > { %p86_p4 = scmp.ge.s32.totalorder %s89_s22, 4  }
0x20d8   :  { %88 = sbr.rel (!%p86_p4) target bundleno = 71 (0x47), region = 263 }

</bundles_post_ra>
